<compile_context>
chip_gen: v7x
topology: tpu7x:2x2x1
jax: 0.10.0
libtpu: 0.0.40
codegen_flags: <defaults>
</compile_context>

<pallas_src>
from functools import partial

import jax
import jax.numpy as jnp
from jax import lax
from jax.experimental import pallas as pl
from jax.experimental.pallas import tpu as pltpu

F32 = jnp.float32
BF16 = jnp.bfloat16

# channel layout inside the merged activation scratch (H+2, W+2, 24):
#   [0:16]  upsampled encoder-2 output (written twice: raw conv, then folded)
#   [16:24] encoder-1 output (U-Net skip connection)
_UP0, _UPC = 0, 16
_SK0, _SKC = 16, 8
_ACT_C = 24


# ---------------------------------------------------------------------------
# In-kernel helpers
# ---------------------------------------------------------------------------

def _conv3x3(scr_ref, c0, cin, w_ref, cout, H, W):
    """Direct 3x3 stride-1 conv on a zero-bordered (H+2, W+2, C) scratch.

    9 tap matmuls: bf16 MXU operands, f32 accumulation.  Weights are already
    bf16 (pre-cast in the wrapper); activations are cast per tap.
    """
    HW = H * W
    acc = jnp.zeros((HW, cout), F32)
    for i in range(3):
        for j in range(3):
            tap = scr_ref[pl.ds(i, H), pl.ds(j, W), pl.ds(c0, cin)]
            tap = tap.reshape(HW, cin).astype(BF16)
            acc = acc + jnp.dot(tap, w_ref[i, j], preferred_element_type=F32)
    return acc


def _tile_forward(x_ref, w1_ref, b1_ref, w2_ref, b2_ref, w3_ref, b3_ref,
                  w4_ref, b4_ref, xpad_ref, act_ref, H, W):
    """Full U-Net forward for one batch element; returns (1, H*W) f32 logits."""
    HW = H * W

    # ---- stage the (unpadded) image into the zero-bordered scratch ----------
    xpad_ref[pl.ds(1, H), pl.ds(1, W), :] = x_ref[...].astype(F32)

    # ---- encoder stage 1: 3 -> 8, ReLU (this is the U-Net skip) -------------
    e1 = jnp.maximum(_conv3x3(xpad_ref, 0, 3, w1_ref, 8, H, W) + b1_ref[...], 0.0)
    act_ref[pl.ds(1, H), pl.ds(1, W), pl.ds(_SK0, _SKC)] = e1.reshape(H, W, _SKC)

    # ---- encoder stage 2 + folded 2x nearest upsample ------------------------
    # stride-2 conv followed by 2x nearest upsample == stride-1 conv at full
    # resolution followed by an exact parity select: u[y,x] = o2[y-y%2, x-x%2].
    o2 = jnp.maximum(_conv3x3(act_ref, _SK0, _SKC, w2_ref, 16, H, W) + b2_ref[...],
                     0.0).reshape(H, W, _UPC)
    act_ref[pl.ds(1, H), pl.ds(1, W), pl.ds(_UP0, _UPC)] = o2            # raw conv
    r01 = act_ref[pl.ds(0, H), pl.ds(1, W), pl.ds(_UP0, _UPC)]           # (y-1, x)
    r10 = act_ref[pl.ds(1, H), pl.ds(0, W), pl.ds(_UP0, _UPC)]           # (y, x-1)
    r00 = act_ref[pl.ds(0, H), pl.ds(0, W), pl.ds(_UP0, _UPC)]           # (y-1, x-1)
    odd_row = (lax.broadcasted_iota(jnp.int32, (H, W, _UPC), 0) & 1) == 1
    odd_col = (lax.broadcasted_iota(jnp.int32, (H, W, _UPC), 1) & 1) == 1
    t = jnp.where(odd_row, r01, o2)
    tp = jnp.where(odd_row, r00, r10)
    u = jnp.where(odd_col, tp, t)
    act_ref[pl.ds(1, H), pl.ds(1, W), pl.ds(_UP0, _UPC)] = u             # folded

    # ---- decoder: concat([up, skip]) -> 8 as ONE K=24 conv, ReLU -------------
    d = jnp.maximum(_conv3x3(act_ref, 0, _ACT_C, w3_ref, 8, H, W) + b3_ref[...],
                    0.0)                                                  # (HW, 8)

    # ---- fused 1x1 segmentation head (8 -> 1), lane-dense (1, HW) ------------
    hd = (d * w4_ref[...]).T                                              # (8, HW)
    return jnp.sum(hd, axis=0, keepdims=True) + b4_ref[...]              # (1, HW)


# ---------------------------------------------------------------------------
# Kernels (grid over batch; scratch borders zeroed once at step 0)
# ---------------------------------------------------------------------------

def _unet_kernel(x_ref, w1_ref, b1_ref, w2_ref, b2_ref, w3_ref, b3_ref,
                 w4_ref, b4_ref, out_ref, xpad_ref, act_ref, *, H, W):
    @pl.when(pl.program_id(0) == 0)
    def _():
        # interiors are fully rewritten every step; 1-px borders never touched
        xpad_ref[...] = jnp.zeros_like(xpad_ref)
        act_ref[...] = jnp.zeros_like(act_ref)

    out_ref[...] = _tile_forward(x_ref, w1_ref, b1_ref, w2_ref, b2_ref,
                                 w3_ref, b3_ref, w4_ref, b4_ref,
                                 xpad_ref, act_ref, H, W)


def _unet_loss_kernel(x_ref, m_ref, w1_ref, b1_ref, w2_ref, b2_ref, w3_ref,
                      b3_ref, w4_ref, b4_ref, out_ref, sums_ref,
                      xpad_ref, act_ref, acc_ref, *, H, W):
    n = pl.program_id(0)

    @pl.when(n == 0)
    def _():
        xpad_ref[...] = jnp.zeros_like(xpad_ref)
        act_ref[...] = jnp.zeros_like(act_ref)
        acc_ref[0] = 0.0
        acc_ref[1] = 0.0
        acc_ref[2] = 0.0
        acc_ref[3] = 0.0

    logits = _tile_forward(x_ref, w1_ref, b1_ref, w2_ref, b2_ref,
                           w3_ref, b3_ref, w4_ref, b4_ref,
                           xpad_ref, act_ref, H, W)
    out_ref[...] = logits

    # fused Dice / BCEWithLogits partial sums (accumulated in SMEM)
    x = logits
    t = m_ref[...]
    p = jax.nn.sigmoid(x)
    bce = jnp.maximum(x, 0.0) - x * t + jnp.log1p(jnp.exp(-jnp.abs(x)))
    acc_ref[0] = acc_ref[0] + jnp.sum(p * t)    # intersection
    acc_ref[1] = acc_ref[1] + jnp.sum(p)        # sum of probabilities
    acc_ref[2] = acc_ref[2] + jnp.sum(t)        # sum of targets
    acc_ref[3] = acc_ref[3] + jnp.sum(bce)      # total BCE (pre-mean)

    @pl.when(n == pl.num_programs(0) - 1)
    def _():
        sums_ref[0] = acc_ref[0]
        sums_ref[1] = acc_ref[1]
        sums_ref[2] = acc_ref[2]
        sums_ref[3] = acc_ref[3]


# ---------------------------------------------------------------------------
# pallas_call wrapper
# ---------------------------------------------------------------------------

def _unet_pallas(params, x, mask, H, W):
    N = x.shape[0]
    HW = H * W
    const = lambda r: (lambda n: (0,) * r)

    x_spec = pl.BlockSpec((None, H, W, 3), lambda n: (n, 0, 0, 0))
    out_spec = pl.BlockSpec((None, 1, HW), lambda n: (n, 0, 0))
    w_specs = [
        pl.BlockSpec((3, 3, 3, 8), const(4)),
        pl.BlockSpec((1, 8), const(2)),
        pl.BlockSpec((3, 3, 8, 16), const(4)),
        pl.BlockSpec((1, 16), const(2)),
        pl.BlockSpec((3, 3, _ACT_C, 8), const(4)),
        pl.BlockSpec((1, 8), const(2)),
        pl.BlockSpec((1, 8), const(2)),
        pl.BlockSpec((1, 1), const(2)),
    ]
    scratches = [
        pltpu.VMEM((H + 2, W + 2, 3), F32),        # zero-bordered padded input
        pltpu.VMEM((H + 2, W + 2, _ACT_C), F32),   # merged up(e2) [0:16] + skip e1 [16:24]
    ]
    w_args = (params["w1"], params["b1"], params["w2"], params["b2"],
              params["w3"], params["b3"], params["w4"], params["b4"])
    # "arbitrary" (sequential) grid so the program_id==0 scratch-border init is
    # guaranteed to run before every other step on every core.
    cparams = pltpu.CompilerParams(dimension_semantics=("arbitrary",))

    if mask is None:
        return pl.pallas_call(
            partial(_unet_kernel, H=H, W=W),
            out_shape=jax.ShapeDtypeStruct((N, 1, HW), F32),
            grid_spec=pltpu.PrefetchScalarGridSpec(
                num_scalar_prefetch=0,
                grid=(N,),
                in_specs=[x_spec] + w_specs,
                out_specs=out_spec,
                scratch_shapes=scratches),
            compiler_params=cparams,
        )(x, *w_args)

    m_spec = pl.BlockSpec((None, 1, HW), lambda n: (n, 0, 0))
    sums_spec = pl.BlockSpec((4,), lambda n: (0,),
                             memory_space=pltpu.MemorySpace.SMEM)
    return pl.pallas_call(
        partial(_unet_loss_kernel, H=H, W=W),
        out_shape=(jax.ShapeDtypeStruct((N, 1, HW), F32),
                   jax.ShapeDtypeStruct((4,), F32)),
        grid_spec=pltpu.PrefetchScalarGridSpec(
            num_scalar_prefetch=0,
            grid=(N,),
            in_specs=[x_spec, m_spec] + w_specs,
            out_specs=[out_spec, sums_spec],
            scratch_shapes=scratches + [pltpu.SMEM((4,), F32)]),
        compiler_params=cparams,
    )(x, mask, *w_args)


# ---------------------------------------------------------------------------
# SegmentationModel (tiny U-Net, in_channels=3, classes=1, activation=None)
# ---------------------------------------------------------------------------

def init_params(key):
    ks = jax.random.split(key, 4)
    return {
        # encoder stage 1: 3 -> 8
        "w1": jax.random.normal(ks[0], (3, 3, 3, 8), F32) * 0.1,
        "b1": jnp.zeros((1, 8), F32),
        # encoder stage 2: 8 -> 16 (stride-2, folded with the 2x upsample)
        "w2": jax.random.normal(ks[1], (3, 3, 8, 16), F32) * 0.1,
        "b2": jnp.zeros((1, 16), F32),
        # decoder: concat([up(e2) 16ch, skip e1 8ch]) = 24 -> 8 (single weight)
        "w3": jax.random.normal(ks[2], (3, 3, _ACT_C, 8), F32) * 0.1,
        "b3": jnp.zeros((1, 8), F32),
        # segmentation head: 1x1, 8 -> 1, no activation (VPU weighted sum)
        "w4": jax.random.normal(ks[3], (1, 8), F32) * 0.1,
        "b4": jnp.zeros((1, 1), F32),
    }


def segmentation_forward(params, images, masks=None):
    """images: (N, 3, H, W) NCHW; masks: optional (N, 1, H, W)."""
    N, C, H, W = images.shape
    assert C == 3 and H % 2 == 0 and W % 2 == 0 and W % 8 == 0

    # single NCHW -> NHWC transpose + bf16 cast; padding happens in-kernel.
    x = jnp.transpose(images, (0, 2, 3, 1)).astype(BF16)
    p = {**params,
         "w1": params["w1"].astype(BF16),
         "w2": params["w2"].astype(BF16),
         "w3": params["w3"].astype(BF16)}

    if masks is None:
        out = _unet_pallas(p, x, None, H, W)               # (N, 1, H*W)
        return out.reshape(N, 1, H, W)

    m = masks.astype(F32).reshape(N, 1, H * W)
    out, s = _unet_pallas(p, x, m, H, W)
    logits = out.reshape(N, 1, H, W)
    # smp DiceLoss(mode='binary'): soft dice over (batch, spatial), smooth=0, eps=1e-7
    dice = 1.0 - (2.0 * s[0]) / jnp.maximum(s[1] + s[2], 1e-7)
    # nn.BCEWithLogitsLoss(): mean reduction
    bce = s[3] / jnp.float32(N * H * W)
    # TODO(synk): smp DiceLoss also zeroes loss for classes absent from y_true; omitted.
    return logits, dice + bce


# ---------------------------------------------------------------------------

if __name__ == "__main__":
    params = init_params(jax.random.PRNGKey(42))

    key = jax.random.PRNGKey(0)
    kimg, kmask = jax.random.split(key)
    images = jax.random.normal(kimg, (2, 3, 16, 16), F32)
    masks = (jax.random.uniform(kmask, (2, 1, 16, 16)) > 0.5).astype(F32)

    # path with masks -> (logits, loss)
    logits, loss = segmentation_forward(params, images, masks)
    jax.block_until_ready((logits, loss))
    assert logits.shape == (2, 1, 16, 16)
    assert loss.shape == ()
    assert bool(jnp.isfinite(loss))

    # path without masks -> logits only
    logits_only = segmentation_forward(params, images)
    jax.block_until_ready(logits_only)
    assert logits_only.shape == (2, 1, 16, 16)
    assert bool(jnp.all(jnp.isfinite(logits_only)))

    print("KERNEL_OK")
</pallas_src>

<mosaic_0001>
module attributes {stable_mosaic.version = 11 : i64} {
  func.func @_unet_loss_kernel(%arg0: i32, %arg1: memref<1x16x16x3xbf16, #tpu.memory_space<vmem>>, %arg2: memref<1x1x256xf32, #tpu.memory_space<vmem>>, %arg3: memref<3x3x3x8xbf16, #tpu.memory_space<vmem>>, %arg4: memref<1x8xf32, #tpu.memory_space<vmem>>, %arg5: memref<3x3x8x16xbf16, #tpu.memory_space<vmem>>, %arg6: memref<1x16xf32, #tpu.memory_space<vmem>>, %arg7: memref<3x3x24x8xbf16, #tpu.memory_space<vmem>>, %arg8: memref<1x8xf32, #tpu.memory_space<vmem>>, %arg9: memref<1x8xf32, #tpu.memory_space<vmem>>, %arg10: memref<1x1xf32, #tpu.memory_space<vmem>>, %arg11: memref<1x1x256xf32, #tpu.memory_space<vmem>>, %arg12: memref<4xf32, #tpu.memory_space<smem>>, %arg13: memref<18x18x3xf32, #tpu.memory_space<vmem>>, %arg14: memref<18x18x24xf32, #tpu.memory_space<vmem>>, %arg15: memref<4xf32, #tpu.memory_space<smem>>) attributes {dimension_semantics = [#tpu.dimension_semantics<arbitrary>], iteration_bounds = array<i64: 2>, scalar_prefetch = 0 : i64, scratch_operands = 3 : i64, tpu.core_type = #tpu.core_type<tc>, window_params = [{transform_indices = @transform_0, window_bounds = array<i64: 1, 16, 16, 3>}, {transform_indices = @transform_1, window_bounds = array<i64: 1, 1, 256>}, {pipeline_mode = #tpu.pipeline_mode<synchronous>, transform_indices = @transform_2, window_bounds = array<i64: 3, 3, 3, 8>}, {pipeline_mode = #tpu.pipeline_mode<synchronous>, transform_indices = @transform_3, window_bounds = array<i64: 1, 8>}, {pipeline_mode = #tpu.pipeline_mode<synchronous>, transform_indices = @transform_4, window_bounds = array<i64: 3, 3, 8, 16>}, {pipeline_mode = #tpu.pipeline_mode<synchronous>, transform_indices = @transform_5, window_bounds = array<i64: 1, 16>}, {pipeline_mode = #tpu.pipeline_mode<synchronous>, transform_indices = @transform_6, window_bounds = array<i64: 3, 3, 24, 8>}, {pipeline_mode = #tpu.pipeline_mode<synchronous>, transform_indices = @transform_7, window_bounds = array<i64: 1, 8>}, {pipeline_mode = #tpu.pipeline_mode<synchronous>, transform_indices = @transform_8, window_bounds = array<i64: 1, 8>}, {pipeline_mode = #tpu.pipeline_mode<synchronous>, transform_indices = @transform_9, window_bounds = array<i64: 1, 1>}, {transform_indices = @transform_10, window_bounds = array<i64: 1, 1, 256>}, {transform_indices = @transform_11, window_bounds = array<i64: 4>}]} {
    %c0_i32 = arith.constant 0 : i32
    %0 = arith.cmpi eq, %arg0, %c0_i32 : i32
    %1 = arith.extui %0 : i1 to i32
    %c0_i32_0 = arith.constant 0 : i32
    %2 = arith.cmpi ne, %1, %c0_i32_0 : i32
    scf.if %2 {
      %cst_279 = arith.constant 0.000000e+00 : f32
      %296 = vector.broadcast %cst_279 : f32 to vector<18x18x3xf32>
      %c0_280 = arith.constant 0 : index
      %c0_281 = arith.constant 0 : index
      %c0_282 = arith.constant 0 : index
      %297 = vector.load %arg13[%c0_280, %c0_281, %c0_282] : memref<18x18x3xf32, #tpu.memory_space<vmem>>, vector<18x18x3xf32>
      tpu.vector_store %arg13[%c0_280, %c0_281, %c0_282], %296 {strides = array<i32>} : memref<18x18x3xf32, #tpu.memory_space<vmem>>, vector<18x18x3xf32>,
      %cst_283 = arith.constant 0.000000e+00 : f32
      %298 = vector.broadcast %cst_283 : f32 to vector<18x18x24xf32>
      %c0_284 = arith.constant 0 : index
      %c0_285 = arith.constant 0 : index
      %c0_286 = arith.constant 0 : index
      %299 = vector.load %arg14[%c0_284, %c0_285, %c0_286] : memref<18x18x24xf32, #tpu.memory_space<vmem>>, vector<18x18x24xf32>
      tpu.vector_store %arg14[%c0_284, %c0_285, %c0_286], %298 {strides = array<i32>} : memref<18x18x24xf32, #tpu.memory_space<vmem>>, vector<18x18x24xf32>,
      %cst_287 = arith.constant 0.000000e+00 : f32
      %c0_288 = arith.constant 0 : index
      %300 = memref.load %arg15[%c0_288] : memref<4xf32, #tpu.memory_space<smem>>
      memref.store %cst_287, %arg15[%c0_288] : memref<4xf32, #tpu.memory_space<smem>>
      %cst_289 = arith.constant 0.000000e+00 : f32
      %c1_290 = arith.constant 1 : index
      %301 = memref.load %arg15[%c1_290] : memref<4xf32, #tpu.memory_space<smem>>
      memref.store %cst_289, %arg15[%c1_290] : memref<4xf32, #tpu.memory_space<smem>>
      %cst_291 = arith.constant 0.000000e+00 : f32
      %c2_292 = arith.constant 2 : index
      %302 = memref.load %arg15[%c2_292] : memref<4xf32, #tpu.memory_space<smem>>
      memref.store %cst_291, %arg15[%c2_292] : memref<4xf32, #tpu.memory_space<smem>>
      %cst_293 = arith.constant 0.000000e+00 : f32
      %c3_294 = arith.constant 3 : index
      %303 = memref.load %arg15[%c3_294] : memref<4xf32, #tpu.memory_space<smem>>
      memref.store %cst_293, %arg15[%c3_294] : memref<4xf32, #tpu.memory_space<smem>>
    } else {
    }
    %c0 = arith.constant 0 : index
    %c0_1 = arith.constant 0 : index
    %c0_2 = arith.constant 0 : index
    %c0_3 = arith.constant 0 : index
    %3 = vector.load %arg1[%c0, %c0_1, %c0_2, %c0_3] : memref<1x16x16x3xbf16, #tpu.memory_space<vmem>>, vector<1x16x16x3xbf16>
    %4 = vector.shape_cast %3 : vector<1x16x16x3xbf16> to vector<16x16x3xbf16>
    %5 = arith.extf %4 : vector<16x16x3xbf16> to vector<16x16x3xf32>
    %c1 = arith.constant 1 : index
    %c1_4 = arith.constant 1 : index
    %c0_5 = arith.constant 0 : index
    %6 = vector.load %arg13[%c1, %c1_4, %c0_5] : memref<18x18x3xf32, #tpu.memory_space<vmem>>, vector<16x16x3xf32>
    tpu.vector_store %arg13[%c1, %c1_4, %c0_5], %5 {strides = array<i32>} : memref<18x18x3xf32, #tpu.memory_space<vmem>>, vector<16x16x3xf32>,
    %cst = arith.constant 0.000000e+00 : f32
    %7 = vector.broadcast %cst : f32 to vector<256x8xf32>
    %c0_6 = arith.constant 0 : index
    %c0_7 = arith.constant 0 : index
    %c0_8 = arith.constant 0 : index
    %8 = vector.load %arg13[%c0_6, %c0_7, %c0_8] : memref<18x18x3xf32, #tpu.memory_space<vmem>>, vector<16x16x3xf32>
    %9 = vector.shape_cast %8 : vector<16x16x3xf32> to vector<256x3xf32>
    %10 = arith.truncf %9 : vector<256x3xf32> to vector<256x3xbf16>
    %c0_9 = arith.constant 0 : index
    %c0_10 = arith.constant 0 : index
    %c0_11 = arith.constant 0 : index
    %c0_12 = arith.constant 0 : index
    %11 = vector.load %arg3[%c0_9, %c0_10, %c0_11, %c0_12] : memref<3x3x3x8xbf16, #tpu.memory_space<vmem>>, vector<1x1x3x8xbf16>
    %12 = vector.shape_cast %11 : vector<1x1x3x8xbf16> to vector<3x8xbf16>
    %cst_13 = arith.constant dense<0.000000e+00> : vector<256x8xf32>
    %13 = tpu.matmul %10, %12, %cst_13 {dimension_numbers = #tpu.dot_dimension_numbers<[1], [0], [0], [1], [0, 0, 1, 1], [], []>} : vector<256x3xbf16>, vector<3x8xbf16>, vector<256x8xf32> -> vector<256x8xf32>
    %14 = arith.addf %7, %13 : vector<256x8xf32>
    %c0_14 = arith.constant 0 : index
    %c1_15 = arith.constant 1 : index
    %c0_16 = arith.constant 0 : index
    %15 = vector.load %arg13[%c0_14, %c1_15, %c0_16] : memref<18x18x3xf32, #tpu.memory_space<vmem>>, vector<16x16x3xf32>
    %16 = vector.shape_cast %15 : vector<16x16x3xf32> to vector<256x3xf32>
    %17 = arith.truncf %16 : vector<256x3xf32> to vector<256x3xbf16>
    %c0_17 = arith.constant 0 : index
    %c1_18 = arith.constant 1 : index
    %c0_19 = arith.constant 0 : index
    %c0_20 = arith.constant 0 : index
    %18 = vector.load %arg3[%c0_17, %c1_18, %c0_19, %c0_20] : memref<3x3x3x8xbf16, #tpu.memory_space<vmem>>, vector<1x1x3x8xbf16>
    %19 = vector.shape_cast %18 : vector<1x1x3x8xbf16> to vector<3x8xbf16>
    %cst_21 = arith.constant dense<0.000000e+00> : vector<256x8xf32>
    %20 = tpu.matmul %17, %19, %cst_21 {dimension_numbers = #tpu.dot_dimension_numbers<[1], [0], [0], [1], [0, 0, 1, 1], [], []>} : vector<256x3xbf16>, vector<3x8xbf16>, vector<256x8xf32> -> vector<256x8xf32>
    %21 = arith.addf %14, %20 : vector<256x8xf32>
    %c0_22 = arith.constant 0 : index
    %c2 = arith.constant 2 : index
    %c0_23 = arith.constant 0 : index
    %22 = vector.load %arg13[%c0_22, %c2, %c0_23] : memref<18x18x3xf32, #tpu.memory_space<vmem>>, vector<16x16x3xf32>
    %23 = vector.shape_cast %22 : vector<16x16x3xf32> to vector<256x3xf32>
    %24 = arith.truncf %23 : vector<256x3xf32> to vector<256x3xbf16>
    %c0_24 = arith.constant 0 : index
    %c2_25 = arith.constant 2 : index
    %c0_26 = arith.constant 0 : index
    %c0_27 = arith.constant 0 : index
    %25 = vector.load %arg3[%c0_24, %c2_25, %c0_26, %c0_27] : memref<3x3x3x8xbf16, #tpu.memory_space<vmem>>, vector<1x1x3x8xbf16>
    %26 = vector.shape_cast %25 : vector<1x1x3x8xbf16> to vector<3x8xbf16>
    %cst_28 = arith.constant dense<0.000000e+00> : vector<256x8xf32>
    %27 = tpu.matmul %24, %26, %cst_28 {dimension_numbers = #tpu.dot_dimension_numbers<[1], [0], [0], [1], [0, 0, 1, 1], [], []>} : vector<256x3xbf16>, vector<3x8xbf16>, vector<256x8xf32> -> vector<256x8xf32>
    %28 = arith.addf %21, %27 : vector<256x8xf32>
    %c1_29 = arith.constant 1 : index
    %c0_30 = arith.constant 0 : index
    %c0_31 = arith.constant 0 : index
    %29 = vector.load %arg13[%c1_29, %c0_30, %c0_31] : memref<18x18x3xf32, #tpu.memory_space<vmem>>, vector<16x16x3xf32>
    %30 = vector.shape_cast %29 : vector<16x16x3xf32> to vector<256x3xf32>
    %31 = arith.truncf %30 : vector<256x3xf32> to vector<256x3xbf16>
    %c1_32 = arith.constant 1 : index
    %c0_33 = arith.constant 0 : index
    %c0_34 = arith.constant 0 : index
    %c0_35 = arith.constant 0 : index
    %32 = vector.load %arg3[%c1_32, %c0_33, %c0_34, %c0_35] : memref<3x3x3x8xbf16, #tpu.memory_space<vmem>>, vector<1x1x3x8xbf16>
    %33 = vector.shape_cast %32 : vector<1x1x3x8xbf16> to vector<3x8xbf16>
    %cst_36 = arith.constant dense<0.000000e+00> : vector<256x8xf32>
    %34 = tpu.matmul %31, %33, %cst_36 {dimension_numbers = #tpu.dot_dimension_numbers<[1], [0], [0], [1], [0, 0, 1, 1], [], []>} : vector<256x3xbf16>, vector<3x8xbf16>, vector<256x8xf32> -> vector<256x8xf32>
    %35 = arith.addf %28, %34 : vector<256x8xf32>
    %c1_37 = arith.constant 1 : index
    %c1_38 = arith.constant 1 : index
    %c0_39 = arith.constant 0 : index
    %36 = vector.load %arg13[%c1_37, %c1_38, %c0_39] : memref<18x18x3xf32, #tpu.memory_space<vmem>>, vector<16x16x3xf32>
    %37 = vector.shape_cast %36 : vector<16x16x3xf32> to vector<256x3xf32>
    %38 = arith.truncf %37 : vector<256x3xf32> to vector<256x3xbf16>
    %c1_40 = arith.constant 1 : index
    %c1_41 = arith.constant 1 : index
    %c0_42 = arith.constant 0 : index
    %c0_43 = arith.constant 0 : index
    %39 = vector.load %arg3[%c1_40, %c1_41, %c0_42, %c0_43] : memref<3x3x3x8xbf16, #tpu.memory_space<vmem>>, vector<1x1x3x8xbf16>
    %40 = vector.shape_cast %39 : vector<1x1x3x8xbf16> to vector<3x8xbf16>
    %cst_44 = arith.constant dense<0.000000e+00> : vector<256x8xf32>
    %41 = tpu.matmul %38, %40, %cst_44 {dimension_numbers = #tpu.dot_dimension_numbers<[1], [0], [0], [1], [0, 0, 1, 1], [], []>} : vector<256x3xbf16>, vector<3x8xbf16>, vector<256x8xf32> -> vector<256x8xf32>
    %42 = arith.addf %35, %41 : vector<256x8xf32>
    %c1_45 = arith.constant 1 : index
    %c2_46 = arith.constant 2 : index
    %c0_47 = arith.constant 0 : index
    %43 = vector.load %arg13[%c1_45, %c2_46, %c0_47] : memref<18x18x3xf32, #tpu.memory_space<vmem>>, vector<16x16x3xf32>
    %44 = vector.shape_cast %43 : vector<16x16x3xf32> to vector<256x3xf32>
    %45 = arith.truncf %44 : vector<256x3xf32> to vector<256x3xbf16>
    %c1_48 = arith.constant 1 : index
    %c2_49 = arith.constant 2 : index
    %c0_50 = arith.constant 0 : index
    %c0_51 = arith.constant 0 : index
    %46 = vector.load %arg3[%c1_48, %c2_49, %c0_50, %c0_51] : memref<3x3x3x8xbf16, #tpu.memory_space<vmem>>, vector<1x1x3x8xbf16>
    %47 = vector.shape_cast %46 : vector<1x1x3x8xbf16> to vector<3x8xbf16>
    %cst_52 = arith.constant dense<0.000000e+00> : vector<256x8xf32>
    %48 = tpu.matmul %45, %47, %cst_52 {dimension_numbers = #tpu.dot_dimension_numbers<[1], [0], [0], [1], [0, 0, 1, 1], [], []>} : vector<256x3xbf16>, vector<3x8xbf16>, vector<256x8xf32> -> vector<256x8xf32>
    %49 = arith.addf %42, %48 : vector<256x8xf32>
    %c2_53 = arith.constant 2 : index
    %c0_54 = arith.constant 0 : index
    %c0_55 = arith.constant 0 : index
    %50 = vector.load %arg13[%c2_53, %c0_54, %c0_55] : memref<18x18x3xf32, #tpu.memory_space<vmem>>, vector<16x16x3xf32>
    %51 = vector.shape_cast %50 : vector<16x16x3xf32> to vector<256x3xf32>
    %52 = arith.truncf %51 : vector<256x3xf32> to vector<256x3xbf16>
    %c2_56 = arith.constant 2 : index
    %c0_57 = arith.constant 0 : index
    %c0_58 = arith.constant 0 : index
    %c0_59 = arith.constant 0 : index
    %53 = vector.load %arg3[%c2_56, %c0_57, %c0_58, %c0_59] : memref<3x3x3x8xbf16, #tpu.memory_space<vmem>>, vector<1x1x3x8xbf16>
    %54 = vector.shape_cast %53 : vector<1x1x3x8xbf16> to vector<3x8xbf16>
    %cst_60 = arith.constant dense<0.000000e+00> : vector<256x8xf32>
    %55 = tpu.matmul %52, %54, %cst_60 {dimension_numbers = #tpu.dot_dimension_numbers<[1], [0], [0], [1], [0, 0, 1, 1], [], []>} : vector<256x3xbf16>, vector<3x8xbf16>, vector<256x8xf32> -> vector<256x8xf32>
    %56 = arith.addf %49, %55 : vector<256x8xf32>
    %c2_61 = arith.constant 2 : index
    %c1_62 = arith.constant 1 : index
    %c0_63 = arith.constant 0 : index
    %57 = vector.load %arg13[%c2_61, %c1_62, %c0_63] : memref<18x18x3xf32, #tpu.memory_space<vmem>>, vector<16x16x3xf32>
    %58 = vector.shape_cast %57 : vector<16x16x3xf32> to vector<256x3xf32>
    %59 = arith.truncf %58 : vector<256x3xf32> to vector<256x3xbf16>
    %c2_64 = arith.constant 2 : index
    %c1_65 = arith.constant 1 : index
    %c0_66 = arith.constant 0 : index
    %c0_67 = arith.constant 0 : index
    %60 = vector.load %arg3[%c2_64, %c1_65, %c0_66, %c0_67] : memref<3x3x3x8xbf16, #tpu.memory_space<vmem>>, vector<1x1x3x8xbf16>
    %61 = vector.shape_cast %60 : vector<1x1x3x8xbf16> to vector<3x8xbf16>
    %cst_68 = arith.constant dense<0.000000e+00> : vector<256x8xf32>
    %62 = tpu.matmul %59, %61, %cst_68 {dimension_numbers = #tpu.dot_dimension_numbers<[1], [0], [0], [1], [0, 0, 1, 1], [], []>} : vector<256x3xbf16>, vector<3x8xbf16>, vector<256x8xf32> -> vector<256x8xf32>
    %63 = arith.addf %56, %62 : vector<256x8xf32>
    %c2_69 = arith.constant 2 : index
    %c2_70 = arith.constant 2 : index
    %c0_71 = arith.constant 0 : index
    %64 = vector.load %arg13[%c2_69, %c2_70, %c0_71] : memref<18x18x3xf32, #tpu.memory_space<vmem>>, vector<16x16x3xf32>
    %65 = vector.shape_cast %64 : vector<16x16x3xf32> to vector<256x3xf32>
    %66 = arith.truncf %65 : vector<256x3xf32> to vector<256x3xbf16>
    %c2_72 = arith.constant 2 : index
    %c2_73 = arith.constant 2 : index
    %c0_74 = arith.constant 0 : index
    %c0_75 = arith.constant 0 : index
    %67 = vector.load %arg3[%c2_72, %c2_73, %c0_74, %c0_75] : memref<3x3x3x8xbf16, #tpu.memory_space<vmem>>, vector<1x1x3x8xbf16>
    %68 = vector.shape_cast %67 : vector<1x1x3x8xbf16> to vector<3x8xbf16>
    %cst_76 = arith.constant dense<0.000000e+00> : vector<256x8xf32>
    %69 = tpu.matmul %66, %68, %cst_76 {dimension_numbers = #tpu.dot_dimension_numbers<[1], [0], [0], [1], [0, 0, 1, 1], [], []>} : vector<256x3xbf16>, vector<3x8xbf16>, vector<256x8xf32> -> vector<256x8xf32>
    %70 = arith.addf %63, %69 : vector<256x8xf32>
    %c0_77 = arith.constant 0 : index
    %c0_78 = arith.constant 0 : index
    %71 = vector.load %arg4[%c0_77, %c0_78] : memref<1x8xf32, #tpu.memory_space<vmem>>, vector<1x8xf32>
    %72 = vector.broadcast %71 : vector<1x8xf32> to vector<256x8xf32>
    %73 = arith.addf %70, %72 : vector<256x8xf32>
    %cst_79 = arith.constant 0.000000e+00 : f32
    %74 = vector.broadcast %cst_79 : f32 to vector<256x8xf32>
    %75 = arith.maximumf %73, %74 : vector<256x8xf32>
    %76 = vector.shape_cast %75 : vector<256x8xf32> to vector<16x16x8xf32>
    %c1_80 = arith.constant 1 : index
    %c1_81 = arith.constant 1 : index
    %c16 = arith.constant 16 : index
    %77 = vector.load %arg14[%c1_80, %c1_81, %c16] : memref<18x18x24xf32, #tpu.memory_space<vmem>>, vector<16x16x8xf32>
    tpu.vector_store %arg14[%c1_80, %c1_81, %c16], %76 {strides = array<i32>} : memref<18x18x24xf32, #tpu.memory_space<vmem>>, vector<16x16x8xf32>,
    %cst_82 = arith.constant 0.000000e+00 : f32
    %78 = vector.broadcast %cst_82 : f32 to vector<256x16xf32>
    %c0_83 = arith.constant 0 : index
    %c0_84 = arith.constant 0 : index
    %c16_85 = arith.constant 16 : index
    %79 = vector.load %arg14[%c0_83, %c0_84, %c16_85] : memref<18x18x24xf32, #tpu.memory_space<vmem>>, vector<16x16x8xf32>
    %80 = vector.shape_cast %79 : vector<16x16x8xf32> to vector<256x8xf32>
    %81 = arith.truncf %80 : vector<256x8xf32> to vector<256x8xbf16>
    %c0_86 = arith.constant 0 : index
    %c0_87 = arith.constant 0 : index
    %c0_88 = arith.constant 0 : index
    %c0_89 = arith.constant 0 : index
    %82 = vector.load %arg5[%c0_86, %c0_87, %c0_88, %c0_89] : memref<3x3x8x16xbf16, #tpu.memory_space<vmem>>, vector<1x1x8x16xbf16>
    %83 = vector.shape_cast %82 : vector<1x1x8x16xbf16> to vector<8x16xbf16>
    %cst_90 = arith.constant dense<0.000000e+00> : vector<256x16xf32>
    %84 = tpu.matmul %81, %83, %cst_90 {dimension_numbers = #tpu.dot_dimension_numbers<[1], [0], [0], [1], [0, 0, 1, 1], [], []>} : vector<256x8xbf16>, vector<8x16xbf16>, vector<256x16xf32> -> vector<256x16xf32>
    %85 = arith.addf %78, %84 : vector<256x16xf32>
    %c0_91 = arith.constant 0 : index
    %c1_92 = arith.constant 1 : index
    %c16_93 = arith.constant 16 : index
    %86 = vector.load %arg14[%c0_91, %c1_92, %c16_93] : memref<18x18x24xf32, #tpu.memory_space<vmem>>, vector<16x16x8xf32>
    %87 = vector.shape_cast %86 : vector<16x16x8xf32> to vector<256x8xf32>
    %88 = arith.truncf %87 : vector<256x8xf32> to vector<256x8xbf16>
    %c0_94 = arith.constant 0 : index
    %c1_95 = arith.constant 1 : index
    %c0_96 = arith.constant 0 : index
    %c0_97 = arith.constant 0 : index
    %89 = vector.load %arg5[%c0_94, %c1_95, %c0_96, %c0_97] : memref<3x3x8x16xbf16, #tpu.memory_space<vmem>>, vector<1x1x8x16xbf16>
    %90 = vector.shape_cast %89 : vector<1x1x8x16xbf16> to vector<8x16xbf16>
    %cst_98 = arith.constant dense<0.000000e+00> : vector<256x16xf32>
    %91 = tpu.matmul %88, %90, %cst_98 {dimension_numbers = #tpu.dot_dimension_numbers<[1], [0], [0], [1], [0, 0, 1, 1], [], []>} : vector<256x8xbf16>, vector<8x16xbf16>, vector<256x16xf32> -> vector<256x16xf32>
    %92 = arith.addf %85, %91 : vector<256x16xf32>
    %c0_99 = arith.constant 0 : index
    %c2_100 = arith.constant 2 : index
    %c16_101 = arith.constant 16 : index
    %93 = vector.load %arg14[%c0_99, %c2_100, %c16_101] : memref<18x18x24xf32, #tpu.memory_space<vmem>>, vector<16x16x8xf32>
    %94 = vector.shape_cast %93 : vector<16x16x8xf32> to vector<256x8xf32>
    %95 = arith.truncf %94 : vector<256x8xf32> to vector<256x8xbf16>
    %c0_102 = arith.constant 0 : index
    %c2_103 = arith.constant 2 : index
    %c0_104 = arith.constant 0 : index
    %c0_105 = arith.constant 0 : index
    %96 = vector.load %arg5[%c0_102, %c2_103, %c0_104, %c0_105] : memref<3x3x8x16xbf16, #tpu.memory_space<vmem>>, vector<1x1x8x16xbf16>
    %97 = vector.shape_cast %96 : vector<1x1x8x16xbf16> to vector<8x16xbf16>
    %cst_106 = arith.constant dense<0.000000e+00> : vector<256x16xf32>
    %98 = tpu.matmul %95, %97, %cst_106 {dimension_numbers = #tpu.dot_dimension_numbers<[1], [0], [0], [1], [0, 0, 1, 1], [], []>} : vector<256x8xbf16>, vector<8x16xbf16>, vector<256x16xf32> -> vector<256x16xf32>
    %99 = arith.addf %92, %98 : vector<256x16xf32>
    %c1_107 = arith.constant 1 : index
    %c0_108 = arith.constant 0 : index
    %c16_109 = arith.constant 16 : index
    %100 = vector.load %arg14[%c1_107, %c0_108, %c16_109] : memref<18x18x24xf32, #tpu.memory_space<vmem>>, vector<16x16x8xf32>
    %101 = vector.shape_cast %100 : vector<16x16x8xf32> to vector<256x8xf32>
    %102 = arith.truncf %101 : vector<256x8xf32> to vector<256x8xbf16>
    %c1_110 = arith.constant 1 : index
    %c0_111 = arith.constant 0 : index
    %c0_112 = arith.constant 0 : index
    %c0_113 = arith.constant 0 : index
    %103 = vector.load %arg5[%c1_110, %c0_111, %c0_112, %c0_113] : memref<3x3x8x16xbf16, #tpu.memory_space<vmem>>, vector<1x1x8x16xbf16>
    %104 = vector.shape_cast %103 : vector<1x1x8x16xbf16> to vector<8x16xbf16>
    %cst_114 = arith.constant dense<0.000000e+00> : vector<256x16xf32>
    %105 = tpu.matmul %102, %104, %cst_114 {dimension_numbers = #tpu.dot_dimension_numbers<[1], [0], [0], [1], [0, 0, 1, 1], [], []>} : vector<256x8xbf16>, vector<8x16xbf16>, vector<256x16xf32> -> vector<256x16xf32>
    %106 = arith.addf %99, %105 : vector<256x16xf32>
    %c1_115 = arith.constant 1 : index
    %c1_116 = arith.constant 1 : index
    %c16_117 = arith.constant 16 : index
    %107 = vector.load %arg14[%c1_115, %c1_116, %c16_117] : memref<18x18x24xf32, #tpu.memory_space<vmem>>, vector<16x16x8xf32>
    %108 = vector.shape_cast %107 : vector<16x16x8xf32> to vector<256x8xf32>
    %109 = arith.truncf %108 : vector<256x8xf32> to vector<256x8xbf16>
    %c1_118 = arith.constant 1 : index
    %c1_119 = arith.constant 1 : index
    %c0_120 = arith.constant 0 : index
    %c0_121 = arith.constant 0 : index
    %110 = vector.load %arg5[%c1_118, %c1_119, %c0_120, %c0_121] : memref<3x3x8x16xbf16, #tpu.memory_space<vmem>>, vector<1x1x8x16xbf16>
    %111 = vector.shape_cast %110 : vector<1x1x8x16xbf16> to vector<8x16xbf16>
    %cst_122 = arith.constant dense<0.000000e+00> : vector<256x16xf32>
    %112 = tpu.matmul %109, %111, %cst_122 {dimension_numbers = #tpu.dot_dimension_numbers<[1], [0], [0], [1], [0, 0, 1, 1], [], []>} : vector<256x8xbf16>, vector<8x16xbf16>, vector<256x16xf32> -> vector<256x16xf32>
    %113 = arith.addf %106, %112 : vector<256x16xf32>
    %c1_123 = arith.constant 1 : index
    %c2_124 = arith.constant 2 : index
    %c16_125 = arith.constant 16 : index
    %114 = vector.load %arg14[%c1_123, %c2_124, %c16_125] : memref<18x18x24xf32, #tpu.memory_space<vmem>>, vector<16x16x8xf32>
    %115 = vector.shape_cast %114 : vector<16x16x8xf32> to vector<256x8xf32>
    %116 = arith.truncf %115 : vector<256x8xf32> to vector<256x8xbf16>
    %c1_126 = arith.constant 1 : index
    %c2_127 = arith.constant 2 : index
    %c0_128 = arith.constant 0 : index
    %c0_129 = arith.constant 0 : index
    %117 = vector.load %arg5[%c1_126, %c2_127, %c0_128, %c0_129] : memref<3x3x8x16xbf16, #tpu.memory_space<vmem>>, vector<1x1x8x16xbf16>
    %118 = vector.shape_cast %117 : vector<1x1x8x16xbf16> to vector<8x16xbf16>
    %cst_130 = arith.constant dense<0.000000e+00> : vector<256x16xf32>
    %119 = tpu.matmul %116, %118, %cst_130 {dimension_numbers = #tpu.dot_dimension_numbers<[1], [0], [0], [1], [0, 0, 1, 1], [], []>} : vector<256x8xbf16>, vector<8x16xbf16>, vector<256x16xf32> -> vector<256x16xf32>
    %120 = arith.addf %113, %119 : vector<256x16xf32>
    %c2_131 = arith.constant 2 : index
    %c0_132 = arith.constant 0 : index
    %c16_133 = arith.constant 16 : index
    %121 = vector.load %arg14[%c2_131, %c0_132, %c16_133] : memref<18x18x24xf32, #tpu.memory_space<vmem>>, vector<16x16x8xf32>
    %122 = vector.shape_cast %121 : vector<16x16x8xf32> to vector<256x8xf32>
    %123 = arith.truncf %122 : vector<256x8xf32> to vector<256x8xbf16>
    %c2_134 = arith.constant 2 : index
    %c0_135 = arith.constant 0 : index
    %c0_136 = arith.constant 0 : index
    %c0_137 = arith.constant 0 : index
    %124 = vector.load %arg5[%c2_134, %c0_135, %c0_136, %c0_137] : memref<3x3x8x16xbf16, #tpu.memory_space<vmem>>, vector<1x1x8x16xbf16>
    %125 = vector.shape_cast %124 : vector<1x1x8x16xbf16> to vector<8x16xbf16>
    %cst_138 = arith.constant dense<0.000000e+00> : vector<256x16xf32>
    %126 = tpu.matmul %123, %125, %cst_138 {dimension_numbers = #tpu.dot_dimension_numbers<[1], [0], [0], [1], [0, 0, 1, 1], [], []>} : vector<256x8xbf16>, vector<8x16xbf16>, vector<256x16xf32> -> vector<256x16xf32>
    %127 = arith.addf %120, %126 : vector<256x16xf32>
    %c2_139 = arith.constant 2 : index
    %c1_140 = arith.constant 1 : index
    %c16_141 = arith.constant 16 : index
    %128 = vector.load %arg14[%c2_139, %c1_140, %c16_141] : memref<18x18x24xf32, #tpu.memory_space<vmem>>, vector<16x16x8xf32>
    %129 = vector.shape_cast %128 : vector<16x16x8xf32> to vector<256x8xf32>
    %130 = arith.truncf %129 : vector<256x8xf32> to vector<256x8xbf16>
    %c2_142 = arith.constant 2 : index
    %c1_143 = arith.constant 1 : index
    %c0_144 = arith.constant 0 : index
    %c0_145 = arith.constant 0 : index
    %131 = vector.load %arg5[%c2_142, %c1_143, %c0_144, %c0_145] : memref<3x3x8x16xbf16, #tpu.memory_space<vmem>>, vector<1x1x8x16xbf16>
    %132 = vector.shape_cast %131 : vector<1x1x8x16xbf16> to vector<8x16xbf16>
    %cst_146 = arith.constant dense<0.000000e+00> : vector<256x16xf32>
    %133 = tpu.matmul %130, %132, %cst_146 {dimension_numbers = #tpu.dot_dimension_numbers<[1], [0], [0], [1], [0, 0, 1, 1], [], []>} : vector<256x8xbf16>, vector<8x16xbf16>, vector<256x16xf32> -> vector<256x16xf32>
    %134 = arith.addf %127, %133 : vector<256x16xf32>
    %c2_147 = arith.constant 2 : index
    %c2_148 = arith.constant 2 : index
    %c16_149 = arith.constant 16 : index
    %135 = vector.load %arg14[%c2_147, %c2_148, %c16_149] : memref<18x18x24xf32, #tpu.memory_space<vmem>>, vector<16x16x8xf32>
    %136 = vector.shape_cast %135 : vector<16x16x8xf32> to vector<256x8xf32>
    %137 = arith.truncf %136 : vector<256x8xf32> to vector<256x8xbf16>
    %c2_150 = arith.constant 2 : index
    %c2_151 = arith.constant 2 : index
    %c0_152 = arith.constant 0 : index
    %c0_153 = arith.constant 0 : index
    %138 = vector.load %arg5[%c2_150, %c2_151, %c0_152, %c0_153] : memref<3x3x8x16xbf16, #tpu.memory_space<vmem>>, vector<1x1x8x16xbf16>
    %139 = vector.shape_cast %138 : vector<1x1x8x16xbf16> to vector<8x16xbf16>
    %cst_154 = arith.constant dense<0.000000e+00> : vector<256x16xf32>
    %140 = tpu.matmul %137, %139, %cst_154 {dimension_numbers = #tpu.dot_dimension_numbers<[1], [0], [0], [1], [0, 0, 1, 1], [], []>} : vector<256x8xbf16>, vector<8x16xbf16>, vector<256x16xf32> -> vector<256x16xf32>
    %141 = arith.addf %134, %140 : vector<256x16xf32>
    %c0_155 = arith.constant 0 : index
    %c0_156 = arith.constant 0 : index
    %142 = vector.load %arg6[%c0_155, %c0_156] : memref<1x16xf32, #tpu.memory_space<vmem>>, vector<1x16xf32>
    %143 = vector.broadcast %142 : vector<1x16xf32> to vector<256x16xf32>
    %144 = arith.addf %141, %143 : vector<256x16xf32>
    %cst_157 = arith.constant 0.000000e+00 : f32
    %145 = vector.broadcast %cst_157 : f32 to vector<256x16xf32>
    %146 = arith.maximumf %144, %145 : vector<256x16xf32>
    %147 = vector.shape_cast %146 : vector<256x16xf32> to vector<16x16x16xf32>
    %c1_158 = arith.constant 1 : index
    %c1_159 = arith.constant 1 : index
    %c0_160 = arith.constant 0 : index
    %148 = vector.load %arg14[%c1_158, %c1_159, %c0_160] : memref<18x18x24xf32, #tpu.memory_space<vmem>>, vector<16x16x16xf32>
    tpu.vector_store %arg14[%c1_158, %c1_159, %c0_160], %147 {strides = array<i32>} : memref<18x18x24xf32, #tpu.memory_space<vmem>>, vector<16x16x16xf32>,
    %c0_161 = arith.constant 0 : index
    %c1_162 = arith.constant 1 : index
    %c0_163 = arith.constant 0 : index
    %149 = vector.load %arg14[%c0_161, %c1_162, %c0_163] : memref<18x18x24xf32, #tpu.memory_space<vmem>>, vector<16x16x16xf32>
    %c1_164 = arith.constant 1 : index
    %c0_165 = arith.constant 0 : index
    %c0_166 = arith.constant 0 : index
    %150 = vector.load %arg14[%c1_164, %c0_165, %c0_166] : memref<18x18x24xf32, #tpu.memory_space<vmem>>, vector<16x16x16xf32>
    %c0_167 = arith.constant 0 : index
    %c0_168 = arith.constant 0 : index
    %c0_169 = arith.constant 0 : index
    %151 = vector.load %arg14[%c0_167, %c0_168, %c0_169] : memref<18x18x24xf32, #tpu.memory_space<vmem>>, vector<16x16x16xf32>
    %152 = tpu.iota {dimensions = array<i32: 0>} : vector<16x16x16xi32>
    %c1_i32 = arith.constant 1 : i32
    %153 = vector.broadcast %c1_i32 : i32 to vector<16x16x16xi32>
    %154 = arith.andi %152, %153 : vector<16x16x16xi32>
    %c1_i32_170 = arith.constant 1 : i32
    %155 = vector.broadcast %c1_i32_170 : i32 to vector<16x16x16xi32>
    %156 = arith.cmpi eq, %154, %155 : vector<16x16x16xi32>
    %157 = tpu.iota {dimensions = array<i32: 1>} : vector<16x16x16xi32>
    %c1_i32_171 = arith.constant 1 : i32
    %158 = vector.broadcast %c1_i32_171 : i32 to vector<16x16x16xi32>
    %159 = arith.andi %157, %158 : vector<16x16x16xi32>
    %c1_i32_172 = arith.constant 1 : i32
    %160 = vector.broadcast %c1_i32_172 : i32 to vector<16x16x16xi32>
    %161 = arith.cmpi eq, %159, %160 : vector<16x16x16xi32>
    %162 = arith.select %156, %149, %147 : vector<16x16x16xi1>, vector<16x16x16xf32>
    %163 = arith.select %156, %151, %150 : vector<16x16x16xi1>, vector<16x16x16xf32>
    %164 = arith.select %161, %163, %162 : vector<16x16x16xi1>, vector<16x16x16xf32>
    %c1_173 = arith.constant 1 : index
    %c1_174 = arith.constant 1 : index
    %c0_175 = arith.constant 0 : index
    %165 = vector.load %arg14[%c1_173, %c1_174, %c0_175] : memref<18x18x24xf32, #tpu.memory_space<vmem>>, vector<16x16x16xf32>
    tpu.vector_store %arg14[%c1_173, %c1_174, %c0_175], %164 {strides = array<i32>} : memref<18x18x24xf32, #tpu.memory_space<vmem>>, vector<16x16x16xf32>,
    %cst_176 = arith.constant 0.000000e+00 : f32
    %166 = vector.broadcast %cst_176 : f32 to vector<256x8xf32>
    %c0_177 = arith.constant 0 : index
    %c0_178 = arith.constant 0 : index
    %c0_179 = arith.constant 0 : index
    %167 = vector.load %arg14[%c0_177, %c0_178, %c0_179] : memref<18x18x24xf32, #tpu.memory_space<vmem>>, vector<16x16x24xf32>
    %168 = vector.shape_cast %167 : vector<16x16x24xf32> to vector<256x24xf32>
    %169 = arith.truncf %168 : vector<256x24xf32> to vector<256x24xbf16>
    %c0_180 = arith.constant 0 : index
    %c0_181 = arith.constant 0 : index
    %c0_182 = arith.constant 0 : index
    %c0_183 = arith.constant 0 : index
    %170 = vector.load %arg7[%c0_180, %c0_181, %c0_182, %c0_183] : memref<3x3x24x8xbf16, #tpu.memory_space<vmem>>, vector<1x1x24x8xbf16>
    %171 = vector.shape_cast %170 : vector<1x1x24x8xbf16> to vector<24x8xbf16>
    %cst_184 = arith.constant dense<0.000000e+00> : vector<256x8xf32>
    %172 = tpu.matmul %169, %171, %cst_184 {dimension_numbers = #tpu.dot_dimension_numbers<[1], [0], [0], [1], [0, 0, 1, 1], [], []>} : vector<256x24xbf16>, vector<24x8xbf16>, vector<256x8xf32> -> vector<256x8xf32>
    %173 = arith.addf %166, %172 : vector<256x8xf32>
    %c0_185 = arith.constant 0 : index
    %c1_186 = arith.constant 1 : index
    %c0_187 = arith.constant 0 : index
    %174 = vector.load %arg14[%c0_185, %c1_186, %c0_187] : memref<18x18x24xf32, #tpu.memory_space<vmem>>, vector<16x16x24xf32>
    %175 = vector.shape_cast %174 : vector<16x16x24xf32> to vector<256x24xf32>
    %176 = arith.truncf %175 : vector<256x24xf32> to vector<256x24xbf16>
    %c0_188 = arith.constant 0 : index
    %c1_189 = arith.constant 1 : index
    %c0_190 = arith.constant 0 : index
    %c0_191 = arith.constant 0 : index
    %177 = vector.load %arg7[%c0_188, %c1_189, %c0_190, %c0_191] : memref<3x3x24x8xbf16, #tpu.memory_space<vmem>>, vector<1x1x24x8xbf16>
    %178 = vector.shape_cast %177 : vector<1x1x24x8xbf16> to vector<24x8xbf16>
    %cst_192 = arith.constant dense<0.000000e+00> : vector<256x8xf32>
    %179 = tpu.matmul %176, %178, %cst_192 {dimension_numbers = #tpu.dot_dimension_numbers<[1], [0], [0], [1], [0, 0, 1, 1], [], []>} : vector<256x24xbf16>, vector<24x8xbf16>, vector<256x8xf32> -> vector<256x8xf32>
    %180 = arith.addf %173, %179 : vector<256x8xf32>
    %c0_193 = arith.constant 0 : index
    %c2_194 = arith.constant 2 : index
    %c0_195 = arith.constant 0 : index
    %181 = vector.load %arg14[%c0_193, %c2_194, %c0_195] : memref<18x18x24xf32, #tpu.memory_space<vmem>>, vector<16x16x24xf32>
    %182 = vector.shape_cast %181 : vector<16x16x24xf32> to vector<256x24xf32>
    %183 = arith.truncf %182 : vector<256x24xf32> to vector<256x24xbf16>
    %c0_196 = arith.constant 0 : index
    %c2_197 = arith.constant 2 : index
    %c0_198 = arith.constant 0 : index
    %c0_199 = arith.constant 0 : index
    %184 = vector.load %arg7[%c0_196, %c2_197, %c0_198, %c0_199] : memref<3x3x24x8xbf16, #tpu.memory_space<vmem>>, vector<1x1x24x8xbf16>
    %185 = vector.shape_cast %184 : vector<1x1x24x8xbf16> to vector<24x8xbf16>
    %cst_200 = arith.constant dense<0.000000e+00> : vector<256x8xf32>
    %186 = tpu.matmul %183, %185, %cst_200 {dimension_numbers = #tpu.dot_dimension_numbers<[1], [0], [0], [1], [0, 0, 1, 1], [], []>} : vector<256x24xbf16>, vector<24x8xbf16>, vector<256x8xf32> -> vector<256x8xf32>
    %187 = arith.addf %180, %186 : vector<256x8xf32>
    %c1_201 = arith.constant 1 : index
    %c0_202 = arith.constant 0 : index
    %c0_203 = arith.constant 0 : index
    %188 = vector.load %arg14[%c1_201, %c0_202, %c0_203] : memref<18x18x24xf32, #tpu.memory_space<vmem>>, vector<16x16x24xf32>
    %189 = vector.shape_cast %188 : vector<16x16x24xf32> to vector<256x24xf32>
    %190 = arith.truncf %189 : vector<256x24xf32> to vector<256x24xbf16>
    %c1_204 = arith.constant 1 : index
    %c0_205 = arith.constant 0 : index
    %c0_206 = arith.constant 0 : index
    %c0_207 = arith.constant 0 : index
    %191 = vector.load %arg7[%c1_204, %c0_205, %c0_206, %c0_207] : memref<3x3x24x8xbf16, #tpu.memory_space<vmem>>, vector<1x1x24x8xbf16>
    %192 = vector.shape_cast %191 : vector<1x1x24x8xbf16> to vector<24x8xbf16>
    %cst_208 = arith.constant dense<0.000000e+00> : vector<256x8xf32>
    %193 = tpu.matmul %190, %192, %cst_208 {dimension_numbers = #tpu.dot_dimension_numbers<[1], [0], [0], [1], [0, 0, 1, 1], [], []>} : vector<256x24xbf16>, vector<24x8xbf16>, vector<256x8xf32> -> vector<256x8xf32>
    %194 = arith.addf %187, %193 : vector<256x8xf32>
    %c1_209 = arith.constant 1 : index
    %c1_210 = arith.constant 1 : index
    %c0_211 = arith.constant 0 : index
    %195 = vector.load %arg14[%c1_209, %c1_210, %c0_211] : memref<18x18x24xf32, #tpu.memory_space<vmem>>, vector<16x16x24xf32>
    %196 = vector.shape_cast %195 : vector<16x16x24xf32> to vector<256x24xf32>
    %197 = arith.truncf %196 : vector<256x24xf32> to vector<256x24xbf16>
    %c1_212 = arith.constant 1 : index
    %c1_213 = arith.constant 1 : index
    %c0_214 = arith.constant 0 : index
    %c0_215 = arith.constant 0 : index
    %198 = vector.load %arg7[%c1_212, %c1_213, %c0_214, %c0_215] : memref<3x3x24x8xbf16, #tpu.memory_space<vmem>>, vector<1x1x24x8xbf16>
    %199 = vector.shape_cast %198 : vector<1x1x24x8xbf16> to vector<24x8xbf16>
    %cst_216 = arith.constant dense<0.000000e+00> : vector<256x8xf32>
    %200 = tpu.matmul %197, %199, %cst_216 {dimension_numbers = #tpu.dot_dimension_numbers<[1], [0], [0], [1], [0, 0, 1, 1], [], []>} : vector<256x24xbf16>, vector<24x8xbf16>, vector<256x8xf32> -> vector<256x8xf32>
    %201 = arith.addf %194, %200 : vector<256x8xf32>
    %c1_217 = arith.constant 1 : index
    %c2_218 = arith.constant 2 : index
    %c0_219 = arith.constant 0 : index
    %202 = vector.load %arg14[%c1_217, %c2_218, %c0_219] : memref<18x18x24xf32, #tpu.memory_space<vmem>>, vector<16x16x24xf32>
    %203 = vector.shape_cast %202 : vector<16x16x24xf32> to vector<256x24xf32>
    %204 = arith.truncf %203 : vector<256x24xf32> to vector<256x24xbf16>
    %c1_220 = arith.constant 1 : index
    %c2_221 = arith.constant 2 : index
    %c0_222 = arith.constant 0 : index
    %c0_223 = arith.constant 0 : index
    %205 = vector.load %arg7[%c1_220, %c2_221, %c0_222, %c0_223] : memref<3x3x24x8xbf16, #tpu.memory_space<vmem>>, vector<1x1x24x8xbf16>
    %206 = vector.shape_cast %205 : vector<1x1x24x8xbf16> to vector<24x8xbf16>
    %cst_224 = arith.constant dense<0.000000e+00> : vector<256x8xf32>
    %207 = tpu.matmul %204, %206, %cst_224 {dimension_numbers = #tpu.dot_dimension_numbers<[1], [0], [0], [1], [0, 0, 1, 1], [], []>} : vector<256x24xbf16>, vector<24x8xbf16>, vector<256x8xf32> -> vector<256x8xf32>
    %208 = arith.addf %201, %207 : vector<256x8xf32>
    %c2_225 = arith.constant 2 : index
    %c0_226 = arith.constant 0 : index
    %c0_227 = arith.constant 0 : index
    %209 = vector.load %arg14[%c2_225, %c0_226, %c0_227] : memref<18x18x24xf32, #tpu.memory_space<vmem>>, vector<16x16x24xf32>
    %210 = vector.shape_cast %209 : vector<16x16x24xf32> to vector<256x24xf32>
    %211 = arith.truncf %210 : vector<256x24xf32> to vector<256x24xbf16>
    %c2_228 = arith.constant 2 : index
    %c0_229 = arith.constant 0 : index
    %c0_230 = arith.constant 0 : index
    %c0_231 = arith.constant 0 : index
    %212 = vector.load %arg7[%c2_228, %c0_229, %c0_230, %c0_231] : memref<3x3x24x8xbf16, #tpu.memory_space<vmem>>, vector<1x1x24x8xbf16>
    %213 = vector.shape_cast %212 : vector<1x1x24x8xbf16> to vector<24x8xbf16>
    %cst_232 = arith.constant dense<0.000000e+00> : vector<256x8xf32>
    %214 = tpu.matmul %211, %213, %cst_232 {dimension_numbers = #tpu.dot_dimension_numbers<[1], [0], [0], [1], [0, 0, 1, 1], [], []>} : vector<256x24xbf16>, vector<24x8xbf16>, vector<256x8xf32> -> vector<256x8xf32>
    %215 = arith.addf %208, %214 : vector<256x8xf32>
    %c2_233 = arith.constant 2 : index
    %c1_234 = arith.constant 1 : index
    %c0_235 = arith.constant 0 : index
    %216 = vector.load %arg14[%c2_233, %c1_234, %c0_235] : memref<18x18x24xf32, #tpu.memory_space<vmem>>, vector<16x16x24xf32>
    %217 = vector.shape_cast %216 : vector<16x16x24xf32> to vector<256x24xf32>
    %218 = arith.truncf %217 : vector<256x24xf32> to vector<256x24xbf16>
    %c2_236 = arith.constant 2 : index
    %c1_237 = arith.constant 1 : index
    %c0_238 = arith.constant 0 : index
    %c0_239 = arith.constant 0 : index
    %219 = vector.load %arg7[%c2_236, %c1_237, %c0_238, %c0_239] : memref<3x3x24x8xbf16, #tpu.memory_space<vmem>>, vector<1x1x24x8xbf16>
    %220 = vector.shape_cast %219 : vector<1x1x24x8xbf16> to vector<24x8xbf16>
    %cst_240 = arith.constant dense<0.000000e+00> : vector<256x8xf32>
    %221 = tpu.matmul %218, %220, %cst_240 {dimension_numbers = #tpu.dot_dimension_numbers<[1], [0], [0], [1], [0, 0, 1, 1], [], []>} : vector<256x24xbf16>, vector<24x8xbf16>, vector<256x8xf32> -> vector<256x8xf32>
    %222 = arith.addf %215, %221 : vector<256x8xf32>
    %c2_241 = arith.constant 2 : index
    %c2_242 = arith.constant 2 : index
    %c0_243 = arith.constant 0 : index
    %223 = vector.load %arg14[%c2_241, %c2_242, %c0_243] : memref<18x18x24xf32, #tpu.memory_space<vmem>>, vector<16x16x24xf32>
    %224 = vector.shape_cast %223 : vector<16x16x24xf32> to vector<256x24xf32>
    %225 = arith.truncf %224 : vector<256x24xf32> to vector<256x24xbf16>
    %c2_244 = arith.constant 2 : index
    %c2_245 = arith.constant 2 : index
    %c0_246 = arith.constant 0 : index
    %c0_247 = arith.constant 0 : index
    %226 = vector.load %arg7[%c2_244, %c2_245, %c0_246, %c0_247] : memref<3x3x24x8xbf16, #tpu.memory_space<vmem>>, vector<1x1x24x8xbf16>
    %227 = vector.shape_cast %226 : vector<1x1x24x8xbf16> to vector<24x8xbf16>
    %cst_248 = arith.constant dense<0.000000e+00> : vector<256x8xf32>
    %228 = tpu.matmul %225, %227, %cst_248 {dimension_numbers = #tpu.dot_dimension_numbers<[1], [0], [0], [1], [0, 0, 1, 1], [], []>} : vector<256x24xbf16>, vector<24x8xbf16>, vector<256x8xf32> -> vector<256x8xf32>
    %229 = arith.addf %222, %228 : vector<256x8xf32>
    %c0_249 = arith.constant 0 : index
    %c0_250 = arith.constant 0 : index
    %230 = vector.load %arg8[%c0_249, %c0_250] : memref<1x8xf32, #tpu.memory_space<vmem>>, vector<1x8xf32>
    %231 = vector.broadcast %230 : vector<1x8xf32> to vector<256x8xf32>
    %232 = arith.addf %229, %231 : vector<256x8xf32>
    %cst_251 = arith.constant 0.000000e+00 : f32
    %233 = vector.broadcast %cst_251 : f32 to vector<256x8xf32>
    %234 = arith.maximumf %232, %233 : vector<256x8xf32>
    %c0_252 = arith.constant 0 : index
    %c0_253 = arith.constant 0 : index
    %235 = vector.load %arg9[%c0_252, %c0_253] : memref<1x8xf32, #tpu.memory_space<vmem>>, vector<1x8xf32>
    %236 = vector.broadcast %235 : vector<1x8xf32> to vector<256x8xf32>
    %237 = arith.mulf %234, %236 : vector<256x8xf32>
    %238 = tpu.transpose %237, [1, 0] : vector<256x8xf32> -> vector<8x256xf32>
    %cst_254 = arith.constant dense<0.000000e+00> : vector<256xf32>
    %239 = vector.multi_reduction <add>, %238, %cst_254 [0] : vector<8x256xf32> to vector<256xf32>
    %240 = vector.shape_cast %239 : vector<256xf32> to vector<1x256xf32>
    %c0_255 = arith.constant 0 : index
    %c0_256 = arith.constant 0 : index
    %241 = vector.load %arg10[%c0_255, %c0_256] : memref<1x1xf32, #tpu.memory_space<vmem>>, vector<1x1xf32>
    %242 = vector.broadcast %241 : vector<1x1xf32> to vector<1x256xf32>
    %243 = arith.addf %240, %242 : vector<1x256xf32>
    %c0_257 = arith.constant 0 : index
    %c0_258 = arith.constant 0 : index
    %c0_259 = arith.constant 0 : index
    %244 = vector.load %arg11[%c0_257, %c0_258, %c0_259] : memref<1x1x256xf32, #tpu.memory_space<vmem>>, vector<1x1x256xf32>
    %245 = vector.shape_cast %244 : vector<1x1x256xf32> to vector<1x256xf32>
    %246 = vector.shape_cast %243 : vector<1x256xf32> to vector<1x1x256xf32>
    tpu.vector_store %arg11[%c0_257, %c0_258, %c0_259], %246 {strides = array<i32>} : memref<1x1x256xf32, #tpu.memory_space<vmem>>, vector<1x1x256xf32>,
    %c0_260 = arith.constant 0 : index
    %c0_261 = arith.constant 0 : index
    %c0_262 = arith.constant 0 : index
    %247 = vector.load %arg2[%c0_260, %c0_261, %c0_262] : memref<1x1x256xf32, #tpu.memory_space<vmem>>, vector<1x1x256xf32>
    %248 = vector.shape_cast %247 : vector<1x1x256xf32> to vector<1x256xf32>
    %249 = arith.negf %243 : vector<1x256xf32>
    %250 = math.exp %249 : vector<1x256xf32>
    %cst_263 = arith.constant 1.000000e+00 : f32
    %251 = vector.broadcast %cst_263 : f32 to vector<1x256xf32>
    %252 = arith.addf %251, %250 : vector<1x256xf32>
    %253 = arith.divf %251, %252 : vector<1x256xf32>
    %cst_264 = arith.constant 0.000000e+00 : f32
    %254 = vector.broadcast %cst_264 : f32 to vector<1x256xf32>
    %255 = arith.maximumf %243, %254 : vector<1x256xf32>
    %256 = arith.mulf %243, %248 : vector<1x256xf32>
    %257 = arith.subf %255, %256 : vector<1x256xf32>
    %258 = math.absf %243 : vector<1x256xf32>
    %cst_265 = arith.constant 0.000000e+00 : f32
    %259 = vector.broadcast %cst_265 : f32 to vector<1x256xf32>
    %260 = arith.subf %259, %258 : vector<1x256xf32>
    %261 = math.exp %260 : vector<1x256xf32>
    %262 = math.log1p %261 : vector<1x256xf32>
    %263 = arith.addf %257, %262 : vector<1x256xf32>
    %c0_266 = arith.constant 0 : index
    %264 = memref.load %arg15[%c0_266] : memref<4xf32, #tpu.memory_space<smem>>
    %265 = arith.mulf %253, %248 : vector<1x256xf32>
    %266 = vector.shape_cast %265 : vector<1x256xf32> to vector<1x1x256xf32>
    %cst_267 = arith.constant dense<0.000000e+00> : vector<1xf32>
    %267 = vector.multi_reduction <add>, %266, %cst_267 [1, 2] : vector<1x1x256xf32> to vector<1xf32>
    %268 = vector.shape_cast %267 : vector<1xf32> to vector<1x1x1xf32>
    %269 = vector.extract %268[0, 0, 0] : f32 from vector<1x1x1xf32>
    %270 = arith.addf %264, %269 : f32
    %c0_268 = arith.constant 0 : index
    %271 = memref.load %arg15[%c0_268] : memref<4xf32, #tpu.memory_space<smem>>
    memref.store %270, %arg15[%c0_268] : memref<4xf32, #tpu.memory_space<smem>>
    %c1_269 = arith.constant 1 : index
    %272 = memref.load %arg15[%c1_269] : memref<4xf32, #tpu.memory_space<smem>>
    %273 = vector.shape_cast %253 : vector<1x256xf32> to vector<1x1x256xf32>
    %cst_270 = arith.constant dense<0.000000e+00> : vector<1xf32>
    %274 = vector.multi_reduction <add>, %273, %cst_270 [1, 2] : vector<1x1x256xf32> to vector<1xf32>
    %275 = vector.shape_cast %274 : vector<1xf32> to vector<1x1x1xf32>
    %276 = vector.extract %275[0, 0, 0] : f32 from vector<1x1x1xf32>
    %277 = arith.addf %272, %276 : f32
    %c1_271 = arith.constant 1 : index
    %278 = memref.load %arg15[%c1_271] : memref<4xf32, #tpu.memory_space<smem>>
    memref.store %277, %arg15[%c1_271] : memref<4xf32, #tpu.memory_space<smem>>
    %c2_272 = arith.constant 2 : index
    %279 = memref.load %arg15[%c2_272] : memref<4xf32, #tpu.memory_space<smem>>
    %280 = vector.shape_cast %248 : vector<1x256xf32> to vector<1x1x256xf32>
    %cst_273 = arith.constant dense<0.000000e+00> : vector<1xf32>
    %281 = vector.multi_reduction <add>, %280, %cst_273 [1, 2] : vector<1x1x256xf32> to vector<1xf32>
    %282 = vector.shape_cast %281 : vector<1xf32> to vector<1x1x1xf32>
    %283 = vector.extract %282[0, 0, 0] : f32 from vector<1x1x1xf32>
    %284 = arith.addf %279, %283 : f32
    %c2_274 = arith.constant 2 : index
    %285 = memref.load %arg15[%c2_274] : memref<4xf32, #tpu.memory_space<smem>>
    memref.store %284, %arg15[%c2_274] : memref<4xf32, #tpu.memory_space<smem>>
    %c3 = arith.constant 3 : index
    %286 = memref.load %arg15[%c3] : memref<4xf32, #tpu.memory_space<smem>>
    %287 = vector.shape_cast %263 : vector<1x256xf32> to vector<1x1x256xf32>
    %cst_275 = arith.constant dense<0.000000e+00> : vector<1xf32>
    %288 = vector.multi_reduction <add>, %287, %cst_275 [1, 2] : vector<1x1x256xf32> to vector<1xf32>
    %289 = vector.shape_cast %288 : vector<1xf32> to vector<1x1x1xf32>
    %290 = vector.extract %289[0, 0, 0] : f32 from vector<1x1x1xf32>
    %291 = arith.addf %286, %290 : f32
    %c3_276 = arith.constant 3 : index
    %292 = memref.load %arg15[%c3_276] : memref<4xf32, #tpu.memory_space<smem>>
    memref.store %291, %arg15[%c3_276] : memref<4xf32, #tpu.memory_space<smem>>
    %c1_i32_277 = arith.constant 1 : i32
    %293 = arith.cmpi eq, %arg0, %c1_i32_277 : i32
    %294 = arith.extui %293 : i1 to i32
    %c0_i32_278 = arith.constant 0 : i32
    %295 = arith.cmpi ne, %294, %c0_i32_278 : i32
    scf.if %295 {
      %c0_279 = arith.constant 0 : index
      %296 = memref.load %arg15[%c0_279] : memref<4xf32, #tpu.memory_space<smem>>
      %c0_280 = arith.constant 0 : index
      %297 = memref.load %arg12[%c0_280] : memref<4xf32, #tpu.memory_space<smem>>
      memref.store %296, %arg12[%c0_280] : memref<4xf32, #tpu.memory_space<smem>>
      %c1_281 = arith.constant 1 : index
      %298 = memref.load %arg15[%c1_281] : memref<4xf32, #tpu.memory_space<smem>>
      %c1_282 = arith.constant 1 : index
      %299 = memref.load %arg12[%c1_282] : memref<4xf32, #tpu.memory_space<smem>>
      memref.store %298, %arg12[%c1_282] : memref<4xf32, #tpu.memory_space<smem>>
      %c2_283 = arith.constant 2 : index
      %300 = memref.load %arg15[%c2_283] : memref<4xf32, #tpu.memory_space<smem>>
      %c2_284 = arith.constant 2 : index
      %301 = memref.load %arg12[%c2_284] : memref<4xf32, #tpu.memory_space<smem>>
      memref.store %300, %arg12[%c2_284] : memref<4xf32, #tpu.memory_space<smem>>
      %c3_285 = arith.constant 3 : index
      %302 = memref.load %arg15[%c3_285] : memref<4xf32, #tpu.memory_space<smem>>
      %c3_286 = arith.constant 3 : index
      %303 = memref.load %arg12[%c3_286] : memref<4xf32, #tpu.memory_space<smem>>
      memref.store %302, %arg12[%c3_286] : memref<4xf32, #tpu.memory_space<smem>>
    } else {
    }
    return
  }
  func.func @transform_0(%arg0: i32) -> (i32, i32, i32, i32) {
    %c0_i32 = arith.constant 0 : i32
    %c0_i32_0 = arith.constant 0 : i32
    %c0_i32_1 = arith.constant 0 : i32
    %c0_i32_2 = arith.constant 0 : i32
    return %arg0, %c0_i32, %c0_i32_0, %c0_i32_1 : i32, i32, i32, i32
  }
  func.func @transform_1(%arg0: i32) -> (i32, i32, i32) {
    %c0_i32 = arith.constant 0 : i32
    %c0_i32_0 = arith.constant 0 : i32
    %c0_i32_1 = arith.constant 0 : i32
    return %arg0, %c0_i32, %c0_i32_0 : i32, i32, i32
  }
  func.func @transform_2(%arg0: i32) -> (i32, i32, i32, i32) {
    %c0_i32 = arith.constant 0 : i32
    %c0_i32_0 = arith.constant 0 : i32
    %c0_i32_1 = arith.constant 0 : i32
    %c0_i32_2 = arith.constant 0 : i32
    %c0_i32_3 = arith.constant 0 : i32
    return %c0_i32, %c0_i32_0, %c0_i32_1, %c0_i32_2 : i32, i32, i32, i32
  }
  func.func @transform_3(%arg0: i32) -> (i32, i32) {
    %c0_i32 = arith.constant 0 : i32
    %c0_i32_0 = arith.constant 0 : i32
    %c0_i32_1 = arith.constant 0 : i32
    return %c0_i32, %c0_i32_0 : i32, i32
  }
  func.func @transform_4(%arg0: i32) -> (i32, i32, i32, i32) {
    %c0_i32 = arith.constant 0 : i32
    %c0_i32_0 = arith.constant 0 : i32
    %c0_i32_1 = arith.constant 0 : i32
    %c0_i32_2 = arith.constant 0 : i32
    %c0_i32_3 = arith.constant 0 : i32
    return %c0_i32, %c0_i32_0, %c0_i32_1, %c0_i32_2 : i32, i32, i32, i32
  }
  func.func @transform_5(%arg0: i32) -> (i32, i32) {
    %c0_i32 = arith.constant 0 : i32
    %c0_i32_0 = arith.constant 0 : i32
    %c0_i32_1 = arith.constant 0 : i32
    return %c0_i32, %c0_i32_0 : i32, i32
  }
  func.func @transform_6(%arg0: i32) -> (i32, i32, i32, i32) {
    %c0_i32 = arith.constant 0 : i32
    %c0_i32_0 = arith.constant 0 : i32
    %c0_i32_1 = arith.constant 0 : i32
    %c0_i32_2 = arith.constant 0 : i32
    %c0_i32_3 = arith.constant 0 : i32
    return %c0_i32, %c0_i32_0, %c0_i32_1, %c0_i32_2 : i32, i32, i32, i32
  }
  func.func @transform_7(%arg0: i32) -> (i32, i32) {
    %c0_i32 = arith.constant 0 : i32
    %c0_i32_0 = arith.constant 0 : i32
    %c0_i32_1 = arith.constant 0 : i32
    return %c0_i32, %c0_i32_0 : i32, i32
  }
  func.func @transform_8(%arg0: i32) -> (i32, i32) {
    %c0_i32 = arith.constant 0 : i32
    %c0_i32_0 = arith.constant 0 : i32
    %c0_i32_1 = arith.constant 0 : i32
    return %c0_i32, %c0_i32_0 : i32, i32
  }
  func.func @transform_9(%arg0: i32) -> (i32, i32) {
    %c0_i32 = arith.constant 0 : i32
    %c0_i32_0 = arith.constant 0 : i32
    %c0_i32_1 = arith.constant 0 : i32
    return %c0_i32, %c0_i32_0 : i32, i32
  }
  func.func @transform_10(%arg0: i32) -> (i32, i32, i32) {
    %c0_i32 = arith.constant 0 : i32
    %c0_i32_0 = arith.constant 0 : i32
    %c0_i32_1 = arith.constant 0 : i32
    return %arg0, %c0_i32, %c0_i32_0 : i32, i32, i32
  }
  func.func @transform_11(%arg0: i32) -> i32 {
    %c0_i32 = arith.constant 0 : i32
    %c0_i32_0 = arith.constant 0 : i32
    return %c0_i32 : i32
  }
}

</mosaic_0001>

<bundles_post_ra>
// kernel: tpu_custom_call.1
= control target key start
LH: loop header
LB: loop body
LE: loop exit
PB: predicated region body
PF: predicated region fallthrough
CT: control target
= control target key end

     0   :  { %s15252_s0 = inlined_call_operand.vmem [shape: bf16[2,16,16,3], index: 0, kind: input, shape index: {}]   ;;  %s15253_s1 = inlined_call_operand.vmem [shape: f32[2,1,256], index: 1, kind: input, shape index: {}]   ;;  %s15254_s2 = inlined_call_operand.vmem [shape: bf16[3,3,3,8], index: 2, kind: input, shape index: {}]   ;;  %s15255_s3 = inlined_call_operand.vmem [shape: f32[1,8], index: 3, kind: input, shape index: {}]   ;;  %s15256_s4 = inlined_call_operand.vmem [shape: bf16[3,3,8,16], index: 4, kind: input, shape index: {}]   ;;  %s15257_s5 = inlined_call_operand.vmem [shape: f32[1,16], index: 5, kind: input, shape index: {}]   ;;  %s15258_s6 = inlined_call_operand.vmem [shape: bf16[3,3,24,8], index: 6, kind: input, shape index: {}]   ;;  %s15259_s7 = inlined_call_operand.vmem [shape: f32[1,8], index: 7, kind: input, shape index: {}]   ;;  %s15260_s8 = inlined_call_operand.vmem [shape: f32[1,8], index: 8, kind: input, shape index: {}]   ;;  %s15261_s9 = inlined_call_operand.<no memory space> [shape: f32[1,1], index: 9, kind: input, shape index: {}]   ;;  %s15262_s10 = inlined_call_operand.hbm [shape: f32[2,1,256], index: 10, kind: output, shape index: {0}]   ;;  %s15263_s11 = inlined_call_operand.hbm [shape: f32[4], index: 11, kind: output, shape index: {1}]  }
   0x1   :  { %15264 = sst [smem:[#allocation13_spill]] %s15252_s0  ;;  %v17_v0 = vstv %s15261_s9 }
   0x2   :  { %18 = vst [vmem:[#allocation5] sm:$0x1] %v17_v0 }
   0x3   :  { %19 = vsyncpa [#allocation7], 0 }
   0x4   :  { %21 = vsyncpa [#allocation7 + $0x1], 0 }
   0x5   :  { %22 = vsyncpa [#allocation8], 0  ;;  %s12993_s19 = smov 0   ;;  %s12995_s20 = smov 0  }
   0x6   :  { %s12997_s21 = smov 0   ;;  %s12999_s22 = smov 0  }
   0x7 LB: > { %s13014_s9 = sadd.s32 4294967295, %s12919_s22   ;;  %s9947_s23 = sadd.s32 4294967294, %s12919_s22   ;;  %s12919_s22 = sphi %s12999_s22, %s15279_s22   ;;  %s12915_s21 = sphi %s12997_s21, %s15278_s21   ;;  %s12911_s20 = sphi %s12995_s20, %s15277_s20   ;;  %s12907_s19 = sphi %s12993_s19, %s15276_s19  }
   0x8   : > { %s13018_s24 = sadd.s32 1, %s12919_s22   ;;  %s255_s25 = sadd.s32 1, %s12915_s21 }
   0x9   : > { %s252_s26 = ssub.s32 %s12919_s22, %s13018_s24  ;;  %p265_p0 = scmp.ne.s32.totalorder %s12915_s21, %s12911_s20 }
   0xa   : > { %p253_p1 = scmp.eq.s32.totalorder %s252_s26, 0  ;;  %p266_p2 = scmp.eq.s32.totalorder %s13014_s9, 1 }
   0xb   : > { %p271_p3 = scmp.ne.s32.totalorder %s12911_s20, %s12907_s19  ;;  %p272_p4 = scmp.eq.s32.totalorder %s9947_s23, 1 }
   0xc   : > { %s13029_s27 = scalar_select %p253_p1, %s12915_s21, %s255_s25  }
   0xd   : > { %p13033_p5 = por %p266_p2, %p265_p0  ;;  %p13037_p6 = por %p272_p4, %p271_p3 }
   0xe   : > { %15265 = sst [smem:[#allocation12_spill]] %s13029_s27  ;;  %p9950_p7 = scmp.ge.s32.totalorder %s12919_s22, 1 }
   0xf   : > { %p350_p8 = scmp.lt.s32.totalorder %s12919_s22, 3 }
  0x11   : > { %p351_p9 = pnand %p9950_p7, %p350_p8 }
  0x12   : > { %s389_s30 = sand.u32 (!%p351_p9), 1, %s12911_s20   ;;  %p394_p10 = scmp.lt.s32.totalorder (!%p351_p9), %s13014_s9, 1 }
  0x13   : > { %354 = sbr.rel (%p351_p9) target bundleno = 2695 (0xa87), region = 60  ;;  %s13047_s12 = sshll.u32 (!%p351_p9), %s389_s30, 1 }
  0x14   : > { %s15268_s0 = sld [smem:[#allocation13_spill]] (!%p351_p9)  ;;  %s391_s27 = scalar_lea.vmem (!%p351_p9), [#allocation6], %s13047_s12 }
  0x15   : > { %p9955_p11 = scmp.ne.s32.totalorder (!%p351_p9), %s13014_s9, 0 }
  0x1a   : > { %s395_s13 = scalar_select %p394_p10, %s13014_s9, 1 }
  0x1b   : > { %407 = sbr.rel (%p9955_p11) target bundleno = 82 (0x52), region = 64  ;;  %vm408_vm0 = vcmask (!%p9955_p11), 23552   ;;  %vm411_vm1 = vcmask (!%p9955_p11), 17408   ;;  %vm464_vm2 = vcmask (!%p9955_p11), 195584   ;;  %v12921_v1 = vmov (!%p9955_p11), 0.0  }
  0x1c   : > { %s10466_s14 = sshll.u32 %s395_s13, 7  ;;  %s9954_s15 = sshll.u32 %s395_s13, 1  ;;  %409 = vst.msk [vmem:[#allocation2] sm:$0xff] (!%p9955_p11), %vm408_vm0, %v12921_v1  ;;  %410 = vst.msk [vmem:[#allocation2 + $0x8] sm:$0xff] (!%p9955_p11), %vm408_vm0, %v12921_v1  ;;  %vm467_vm3 = vcmask (!%p9955_p11), 189440  }
  0x1d   : > { %s13053_s18 = scalar_lea.vmem %s15268_s0, %s10466_s14  ;;  %s13058_s26 = scalar_lea.vmem %s15253_s1, %s9954_s15  ;;  %413 = vst.msk [vmem:[#allocation2 + $0x18] sm:$0xff] (!%p9955_p11), %vm408_vm0, %v12921_v1  ;;  %414 = vst.msk [vmem:[#allocation2 + $0x20] sm:$0xff] (!%p9955_p11), %vm408_vm0, %v12921_v1 }
  0x1e   : > { %416 = vst.msk [vmem:[#allocation2 + $0x30] sm:$0xff] (!%p9955_p11), %vm408_vm0, %v12921_v1  ;;  %417 = vst.msk [vmem:[#allocation2 + $0x38] sm:$0xff] (!%p9955_p11), %vm408_vm0, %v12921_v1  ;;  %s12922_s13 = smov (!%p9955_p11), 0.0  }
  0x1f   : > { %419 = vst.msk [vmem:[#allocation2 + $0x48] sm:$0xff] (!%p9955_p11), %vm408_vm0, %v12921_v1  ;;  %420 = vst.msk [vmem:[#allocation2 + $0x50] sm:$0xff] (!%p9955_p11), %vm408_vm0, %v12921_v1  ;;  %521 = sst [smem:[#allocation4]] (!%p9955_p11), %s12922_s13 }
  0x20   : > { %422 = vst.msk [vmem:[#allocation2 + $0x60] sm:$0xff] (!%p9955_p11), %vm408_vm0, %v12921_v1  ;;  %423 = vst.msk [vmem:[#allocation2 + $0x68] sm:$0xff] (!%p9955_p11), %vm408_vm0, %v12921_v1  ;;  %523 = sst [smem:[#allocation4 + $0x1]] (!%p9955_p11), %s12922_s13 }
  0x21   : > { %425 = vst.msk [vmem:[#allocation2 + $0x78] sm:$0xff] (!%p9955_p11), %vm408_vm0, %v12921_v1  ;;  %426 = vst.msk [vmem:[#allocation2 + $0x80] sm:$0xff] (!%p9955_p11), %vm408_vm0, %v12921_v1  ;;  %525 = sst [smem:[#allocation4 + $0x2]] (!%p9955_p11), %s12922_s13 }
  0x22   : > { %428 = vst.msk [vmem:[#allocation2 + $0x90] sm:$0xff] %vm408_vm0, %v12921_v1  ;;  %429 = vst.msk [vmem:[#allocation2 + $0x98] sm:$0xff] %vm408_vm0, %v12921_v1  ;;  %527 = sst [smem:[#allocation4 + $0x3]] %s12922_s13 }
  0x23   : > { %431 = vst.msk [vmem:[#allocation2 + $0xa8] sm:$0xff] %vm408_vm0, %v12921_v1  ;;  %432 = vst.msk [vmem:[#allocation2 + $0xb0] sm:$0xff] %vm408_vm0, %v12921_v1 }
  0x24   : > { %434 = vst.msk [vmem:[#allocation2 + $0xc0] sm:$0xff] %vm408_vm0, %v12921_v1  ;;  %435 = vst.msk [vmem:[#allocation2 + $0xc8] sm:$0xff] %vm408_vm0, %v12921_v1 }
  0x25   : > { %437 = vst.msk [vmem:[#allocation2 + $0xd8] sm:$0xff] %vm408_vm0, %v12921_v1  ;;  %438 = vst.msk [vmem:[#allocation2 + $0xe0] sm:$0xff] %vm408_vm0, %v12921_v1 }
  0x26   : > { %440 = vst.msk [vmem:[#allocation2 + $0xf0] sm:$0xff] %vm408_vm0, %v12921_v1  ;;  %441 = vst.msk [vmem:[#allocation2 + $0xf8] sm:$0xff] %vm408_vm0, %v12921_v1 }
  0x27   : > { %443 = vst.msk [vmem:[#allocation2 + $0x108] sm:$0xff] %vm408_vm0, %v12921_v1  ;;  %444 = vst.msk [vmem:[#allocation2 + $0x110] sm:$0xff] %vm408_vm0, %v12921_v1 }
  0x28   : > { %446 = vst.msk [vmem:[#allocation2 + $0x120] sm:$0xff] %vm408_vm0, %v12921_v1  ;;  %447 = vst.msk [vmem:[#allocation2 + $0x128] sm:$0xff] %vm408_vm0, %v12921_v1 }
  0x29   : > { %449 = vst.msk [vmem:[#allocation2 + $0x138] sm:$0xff] %vm408_vm0, %v12921_v1  ;;  %450 = vst.msk [vmem:[#allocation2 + $0x140] sm:$0xff] %vm408_vm0, %v12921_v1 }
  0x2a   : > { %452 = vst.msk [vmem:[#allocation2 + $0x150] sm:$0xff] %vm408_vm0, %v12921_v1  ;;  %453 = vst.msk [vmem:[#allocation2 + $0x158] sm:$0xff] %vm408_vm0, %v12921_v1 }
  0x2b   : > { %455 = vst.msk [vmem:[#allocation2 + $0x168] sm:$0xff] %vm408_vm0, %v12921_v1  ;;  %456 = vst.msk [vmem:[#allocation2 + $0x170] sm:$0xff] %vm408_vm0, %v12921_v1 }
  0x2c   : > { %458 = vst.msk [vmem:[#allocation2 + $0x180] sm:$0xff] %vm408_vm0, %v12921_v1  ;;  %459 = vst.msk [vmem:[#allocation2 + $0x188] sm:$0xff] %vm408_vm0, %v12921_v1 }
  0x2d   : > { %461 = vst.msk [vmem:[#allocation2 + $0x198] sm:$0xff] %vm408_vm0, %v12921_v1  ;;  %462 = vst.msk [vmem:[#allocation2 + $0x1a0] sm:$0xff] %vm408_vm0, %v12921_v1 }
  0x2e   : > { %412 = vst.msk [vmem:[#allocation2 + $0x10] sm:$0x3] %vm411_vm1, %v12921_v1  ;;  %415 = vst.msk [vmem:[#allocation2 + $0x28] sm:$0x3] %vm411_vm1, %v12921_v1 }
  0x2f   : > { %418 = vst.msk [vmem:[#allocation2 + $0x40] sm:$0x3] %vm411_vm1, %v12921_v1  ;;  %421 = vst.msk [vmem:[#allocation2 + $0x58] sm:$0x3] %vm411_vm1, %v12921_v1 }
  0x30   : > { %424 = vst.msk [vmem:[#allocation2 + $0x70] sm:$0x3] %vm411_vm1, %v12921_v1  ;;  %427 = vst.msk [vmem:[#allocation2 + $0x88] sm:$0x3] %vm411_vm1, %v12921_v1 }
  0x31   : > { %430 = vst.msk [vmem:[#allocation2 + $0xa0] sm:$0x3] %vm411_vm1, %v12921_v1  ;;  %433 = vst.msk [vmem:[#allocation2 + $0xb8] sm:$0x3] %vm411_vm1, %v12921_v1 }
  0x32   : > { %436 = vst.msk [vmem:[#allocation2 + $0xd0] sm:$0x3] %vm411_vm1, %v12921_v1  ;;  %439 = vst.msk [vmem:[#allocation2 + $0xe8] sm:$0x3] %vm411_vm1, %v12921_v1 }
  0x33   : > { %442 = vst.msk [vmem:[#allocation2 + $0x100] sm:$0x3] %vm411_vm1, %v12921_v1  ;;  %445 = vst.msk [vmem:[#allocation2 + $0x118] sm:$0x3] %vm411_vm1, %v12921_v1 }
  0x34   : > { %448 = vst.msk [vmem:[#allocation2 + $0x130] sm:$0x3] %vm411_vm1, %v12921_v1  ;;  %451 = vst.msk [vmem:[#allocation2 + $0x148] sm:$0x3] %vm411_vm1, %v12921_v1 }
  0x35   : > { %454 = vst.msk [vmem:[#allocation2 + $0x160] sm:$0x3] %vm411_vm1, %v12921_v1  ;;  %457 = vst.msk [vmem:[#allocation2 + $0x178] sm:$0x3] %vm411_vm1, %v12921_v1 }
  0x36   : > { %460 = vst.msk [vmem:[#allocation2 + $0x190] sm:$0x3] %vm411_vm1, %v12921_v1  ;;  %463 = vst.msk [vmem:[#allocation2 + $0x1a8] sm:$0x3] %vm411_vm1, %v12921_v1 }
  0x37   : > { %465 = vst.msk [vmem:[#allocation3] sm:$0xff] %vm464_vm2, %v12921_v1  ;;  %466 = vst.msk [vmem:[#allocation3 + $0x8] sm:$0xff] %vm464_vm2, %v12921_v1 }
  0x38   : > { %469 = vst.msk [vmem:[#allocation3 + $0x18] sm:$0xff] %vm464_vm2, %v12921_v1  ;;  %470 = vst.msk [vmem:[#allocation3 + $0x20] sm:$0xff] %vm464_vm2, %v12921_v1 }
  0x39   : > { %472 = vst.msk [vmem:[#allocation3 + $0x30] sm:$0xff] %vm464_vm2, %v12921_v1  ;;  %473 = vst.msk [vmem:[#allocation3 + $0x38] sm:$0xff] %vm464_vm2, %v12921_v1 }
  0x3a   : > { %475 = vst.msk [vmem:[#allocation3 + $0x48] sm:$0xff] %vm464_vm2, %v12921_v1  ;;  %476 = vst.msk [vmem:[#allocation3 + $0x50] sm:$0xff] %vm464_vm2, %v12921_v1 }
  0x3b   : > { %478 = vst.msk [vmem:[#allocation3 + $0x60] sm:$0xff] %vm464_vm2, %v12921_v1  ;;  %479 = vst.msk [vmem:[#allocation3 + $0x68] sm:$0xff] %vm464_vm2, %v12921_v1 }
  0x3c   : > { %481 = vst.msk [vmem:[#allocation3 + $0x78] sm:$0xff] %vm464_vm2, %v12921_v1  ;;  %482 = vst.msk [vmem:[#allocation3 + $0x80] sm:$0xff] %vm464_vm2, %v12921_v1 }
  0x3d   : > { %484 = vst.msk [vmem:[#allocation3 + $0x90] sm:$0xff] %vm464_vm2, %v12921_v1  ;;  %485 = vst.msk [vmem:[#allocation3 + $0x98] sm:$0xff] %vm464_vm2, %v12921_v1 }
  0x3e   : > { %487 = vst.msk [vmem:[#allocation3 + $0xa8] sm:$0xff] %vm464_vm2, %v12921_v1  ;;  %488 = vst.msk [vmem:[#allocation3 + $0xb0] sm:$0xff] %vm464_vm2, %v12921_v1 }
  0x3f   : > { %490 = vst.msk [vmem:[#allocation3 + $0xc0] sm:$0xff] %vm464_vm2, %v12921_v1  ;;  %491 = vst.msk [vmem:[#allocation3 + $0xc8] sm:$0xff] %vm464_vm2, %v12921_v1 }
  0x40   : > { %493 = vst.msk [vmem:[#allocation3 + $0xd8] sm:$0xff] %vm464_vm2, %v12921_v1  ;;  %494 = vst.msk [vmem:[#allocation3 + $0xe0] sm:$0xff] %vm464_vm2, %v12921_v1 }
  0x41   : > { %496 = vst.msk [vmem:[#allocation3 + $0xf0] sm:$0xff] %vm464_vm2, %v12921_v1  ;;  %497 = vst.msk [vmem:[#allocation3 + $0xf8] sm:$0xff] %vm464_vm2, %v12921_v1 }
  0x42   : > { %499 = vst.msk [vmem:[#allocation3 + $0x108] sm:$0xff] %vm464_vm2, %v12921_v1  ;;  %500 = vst.msk [vmem:[#allocation3 + $0x110] sm:$0xff] %vm464_vm2, %v12921_v1 }
  0x43   : > { %502 = vst.msk [vmem:[#allocation3 + $0x120] sm:$0xff] %vm464_vm2, %v12921_v1  ;;  %503 = vst.msk [vmem:[#allocation3 + $0x128] sm:$0xff] %vm464_vm2, %v12921_v1 }
  0x44   : > { %505 = vst.msk [vmem:[#allocation3 + $0x138] sm:$0xff] %vm464_vm2, %v12921_v1  ;;  %506 = vst.msk [vmem:[#allocation3 + $0x140] sm:$0xff] %vm464_vm2, %v12921_v1 }
  0x45   : > { %508 = vst.msk [vmem:[#allocation3 + $0x150] sm:$0xff] %vm464_vm2, %v12921_v1  ;;  %509 = vst.msk [vmem:[#allocation3 + $0x158] sm:$0xff] %vm464_vm2, %v12921_v1 }
  0x46   : > { %511 = vst.msk [vmem:[#allocation3 + $0x168] sm:$0xff] %vm464_vm2, %v12921_v1  ;;  %512 = vst.msk [vmem:[#allocation3 + $0x170] sm:$0xff] %vm464_vm2, %v12921_v1 }
  0x47   : > { %514 = vst.msk [vmem:[#allocation3 + $0x180] sm:$0xff] %vm464_vm2, %v12921_v1  ;;  %515 = vst.msk [vmem:[#allocation3 + $0x188] sm:$0xff] %vm464_vm2, %v12921_v1 }
  0x48   : > { %517 = vst.msk [vmem:[#allocation3 + $0x198] sm:$0xff] %vm464_vm2, %v12921_v1  ;;  %518 = vst.msk [vmem:[#allocation3 + $0x1a0] sm:$0xff] %vm464_vm2, %v12921_v1 }
  0x49   : > { %468 = vst.msk [vmem:[#allocation3 + $0x10] sm:$0x3] %vm467_vm3, %v12921_v1  ;;  %471 = vst.msk [vmem:[#allocation3 + $0x28] sm:$0x3] %vm467_vm3, %v12921_v1 }
  0x4a   : > { %474 = vst.msk [vmem:[#allocation3 + $0x40] sm:$0x3] %vm467_vm3, %v12921_v1  ;;  %477 = vst.msk [vmem:[#allocation3 + $0x58] sm:$0x3] %vm467_vm3, %v12921_v1 }
  0x4b   : > { %480 = vst.msk [vmem:[#allocation3 + $0x70] sm:$0x3] %vm467_vm3, %v12921_v1  ;;  %483 = vst.msk [vmem:[#allocation3 + $0x88] sm:$0x3] %vm467_vm3, %v12921_v1 }
  0x4c   : > { %486 = vst.msk [vmem:[#allocation3 + $0xa0] sm:$0x3] %vm467_vm3, %v12921_v1  ;;  %489 = vst.msk [vmem:[#allocation3 + $0xb8] sm:$0x3] %vm467_vm3, %v12921_v1 }
  0x4d   : > { %492 = vst.msk [vmem:[#allocation3 + $0xd0] sm:$0x3] %vm467_vm3, %v12921_v1  ;;  %495 = vst.msk [vmem:[#allocation3 + $0xe8] sm:$0x3] %vm467_vm3, %v12921_v1 }
  0x4e   : > { %498 = vst.msk [vmem:[#allocation3 + $0x100] sm:$0x3] %vm467_vm3, %v12921_v1  ;;  %501 = vst.msk [vmem:[#allocation3 + $0x118] sm:$0x3] %vm467_vm3, %v12921_v1 }
  0x4f   : > { %504 = vst.msk [vmem:[#allocation3 + $0x130] sm:$0x3] %vm467_vm3, %v12921_v1  ;;  %507 = vst.msk [vmem:[#allocation3 + $0x148] sm:$0x3] %vm467_vm3, %v12921_v1 }
  0x50   : > { %510 = vst.msk [vmem:[#allocation3 + $0x160] sm:$0x3] %vm467_vm3, %v12921_v1  ;;  %513 = vst.msk [vmem:[#allocation3 + $0x178] sm:$0x3] %vm467_vm3, %v12921_v1 }
  0x51   : > { %516 = vst.msk [vmem:[#allocation3 + $0x190] sm:$0x3] %vm467_vm3, %v12921_v1  ;;  %519 = vst.msk [vmem:[#allocation3 + $0x1a8] sm:$0x3] %vm467_vm3, %v12921_v1 }
  0x52 PF: > { %v9956_v2 = vld [vmem:[%s15254_s2 + $0x2] sm:$0x3]  ;;  %vm773_vm4 = vcmask 1040384   ;;  %vm774_vm5 = vcmask 1041408   ;;  %v12923_v3 = vmov 65535   ;;  %vm593_vm6 = vcmask 23552  }
  0x53   : > { %v775_v4 = vsel %vm773_vm4, 4294967295, %v12923_v3  ;;  %v10023_v5 = vld [vmem:[%s15254_s2 + $0x8] sm:$0x3]  ;;  %v10469_v10 = vld [vmem:[%s13053_s18] sm:$0xff]   ;;  %v10040_v11 = vld [vmem:[%s15254_s2 + $0xa] sm:$0x3] }
  0x54   : > { %v675_v6 = vld [vmem:[#allocation2 + $0x1] sm:$0xff]  ;;  %v676_v7 = vld [vmem:[#allocation2 + $0x9] sm:$0xff]  ;;  %v13289_v8 = vsel %vm774_vm5, %v775_v4, 0  ;;  %v10470_v15 = vunpack.c.l.bf16 %v10469_v10  ;;  %v10471_v16 = vunpack.c.h.bf16 %v10469_v10  ;;  %v10534_v19 = vld [vmem:[%s13053_s18 + $0x18] sm:$0xff]   ;;  %s12924_s23 = smov 16   ;;  %s12925_s25 = smov 112  }
  0x55   : > { %v707_v9 = vpack.c.bf16 %v676_v7, %v675_v6  ;;  %v10532_v12 = vld [vmem:[%s13053_s18 + $0x8] sm:$0xff]   ;;  %v778_v13 = vand.u32 %v9956_v2, %v13289_v8  ;;  %v13298_v14 = vand.u32 %v10023_v5, %v13289_v8  ;;  %v674_v17 = vld [vmem:[%s15254_s2] sm:$0x3]  ;;  %v10533_v18 = vld [vmem:[%s13053_s18 + $0x10] sm:$0xff]   ;;  %v13307_v20 = vand.u32 %v10040_v11, %v13289_v8  ;;  %s9853_s14 = sshll.u32 %s391_s27, 4  ;;  %s12928_s16 = smov [#allocation6]   ;;  %s9854_s14 = int_to_ptr.vmem [resolvable:$true] %s9853_s14 }
  0x56   : > { %v10474_v21 = vunpack.c.l.bf16 %v10532_v12  ;;  %v10475_v22 = vunpack.c.h.bf16 %v10532_v12  ;;  %v13310_v23 = vand.u32 %v13289_v8, %v674_v17  ;;  %v10535_v24 = vld [vmem:[%s13053_s18 + $0x20] sm:$0xff]   ;;  %v10536_v25 = vld [vmem:[%s13053_s18 + $0x28] sm:$0xff]   ;;  %v10537_v26 = vld [vmem:[%s13053_s18 + $0x30] sm:$0xff]   ;;  %594 = vst.msk [vmem:[#allocation2 + $0x19] sm:$0xff] %vm593_vm6, %v10470_v15  ;;  %v10478_v27 = vunpack.c.l.bf16 %v10533_v18  ;;  %s12841_s15 = scalar_lea.vmem %s9854_s14, 32 }
  0x57   : > { %11017 = vmatprep.mubr.msk.bf16.mxu1 %vm593_vm6, %v707_v9  ;;  %11015 = vmatprep.subr.bf16.mxu1 %v778_v13  ;;  %595 = vst.msk [vmem:[#allocation2 + $0x21] sm:$0xff] %vm593_vm6, %v10471_v16  ;;  %v10479_v28 = vunpack.c.h.bf16 %v10533_v18  ;;  %v10482_v29 = vunpack.c.l.bf16 %v10534_v19  ;;  %v10483_v30 = vunpack.c.h.bf16 %v10534_v19  ;;  %v10538_v31 = vld [vmem:[%s13053_s18 + $0x38] sm:$0xff]   ;;  %v10539_v32 = vld [vmem:[%s13053_s18 + $0x40] sm:$0xff]   ;;  %v10486_v33 = vunpack.c.l.bf16 %v10535_v24  ;;  %v10540_v37 = vld [vmem:[%s13053_s18 + $0x48] sm:$0xff]   ;;  %p12842_p12 = scmp.ne.s32.totalorder %s9854_s14, %s12841_s15 }
  0x58   : > { %11151 = vmatprep.subr.bf16.mxu0 %v13298_v14  ;;  %11016 = vmatpush3.bf16.msra.mxu1 %v778_v13  ;;  %596 = vst.msk [vmem:[#allocation2 + $0x31] sm:$0xff] %vm593_vm6, %v10474_v21  ;;  %597 = vst.msk [vmem:[#allocation2 + $0x39] sm:$0xff] %vm593_vm6, %v10475_v22  ;;  %v10487_v34 = vunpack.c.h.bf16 %v10535_v24  ;;  %v10490_v35 = vunpack.c.l.bf16 %v10536_v25  ;;  %v10491_v36 = vunpack.c.h.bf16 %v10536_v25  ;;  %v10541_v38 = vld [vmem:[%s13053_s18 + $0x50] sm:$0xff]   ;;  %v10542_v39 = vld [vmem:[%s13053_s18 + $0x58] sm:$0xff]   ;;  %v10494_v40 = vunpack.c.l.bf16 %v10537_v26 }
  0x59   : > { %11152 = vmatpush3.bf16.msra.mxu0 %v13298_v14  ;;  %11049 = vmatprep.subr.bf16.mxu1 %v13310_v23  ;;  %598 = vst.msk [vmem:[#allocation2 + $0x49] sm:$0xff] %vm593_vm6, %v10478_v27  ;;  %599 = vst.msk [vmem:[#allocation2 + $0x51] sm:$0xff] %vm593_vm6, %v10479_v28  ;;  %v10495_v41 = vunpack.c.h.bf16 %v10537_v26  ;;  %v10498_v42 = vunpack.c.l.bf16 %v10538_v31  ;;  %v10499_v43 = vunpack.c.h.bf16 %v10538_v31  ;;  %v10543_v44 = vld [vmem:[%s13053_s18 + $0x60] sm:$0xff]   ;;  %v10544_v45 = vld [vmem:[%s13053_s18 + $0x68] sm:$0xff]   ;;  %v10502_v46 = vunpack.c.l.bf16 %v10539_v32  ;;  %p12843_p13 = pnand %p12842_p12, %p13033_p5 }
  0x5a   : > { %11185 = vmatprep.subr.bf16.mxu0 %v13307_v20  ;;  %600 = vst.msk [vmem:[#allocation2 + $0x61] sm:$0xff] %vm593_vm6, %v10482_v29  ;;  %601 = vst.msk [vmem:[#allocation2 + $0x69] sm:$0xff] %vm593_vm6, %v10483_v30  ;;  %v10503_v47 = vunpack.c.h.bf16 %v10539_v32  ;;  %v10506_v48 = vunpack.c.l.bf16 %v10540_v37  ;;  %v10545_v49 = vld [vmem:[%s13053_s18 + $0x70] sm:$0xff]   ;;  %v10507_v50 = vunpack.c.h.bf16 %v10540_v37  ;;  %v10510_v51 = vunpack.c.l.bf16 %v10541_v38  ;;  %v10546_v54 = vld [vmem:[%s13053_s18 + $0x78] sm:$0xff]   ;;  %s12845_s18 = sshll.u32 %s12928_s16, 4  ;;  %s12846_s18 = int_to_ptr.vmem [resolvable:$false] %s12845_s18 }
  0x5b   : > { %602 = vst.msk [vmem:[#allocation2 + $0x79] sm:$0xff] %vm593_vm6, %v10486_v33  ;;  %603 = vst.msk [vmem:[#allocation2 + $0x81] sm:$0xff] %vm593_vm6, %v10487_v34  ;;  %v10511_v52 = vunpack.c.h.bf16 %v10541_v38  ;;  %v10514_v53 = vunpack.c.l.bf16 %v10542_v39  ;;  %v10057_v55 = vld [vmem:[%s15254_s2 + $0xc] sm:$0x3]  ;;  %v10515_v56 = vunpack.c.h.bf16 %v10542_v39  ;;  %v10518_v57 = vunpack.c.l.bf16 %v10543_v44  ;;  %v9989_v1 = vld [vmem:[%s15254_s2 + $0x4] sm:$0x3]  ;;  %p12844_p0 = pneg %p12843_p13  ;;  %p12848_p1 = scmp.lt.s32.totalorder %s9854_s14, %s12846_s18 }
  0x5c   : > { %604 = vst.msk [vmem:[#allocation2 + $0x91] sm:$0xff] %vm593_vm6, %v10490_v35  ;;  %605 = vst.msk [vmem:[#allocation2 + $0x99] sm:$0xff] %vm593_vm6, %v10491_v36  ;;  %v10519_v58 = vunpack.c.h.bf16 %v10543_v44  ;;  %v10522_v59 = vunpack.c.l.bf16 %v10544_v45  ;;  %v10523_v60 = vunpack.c.h.bf16 %v10544_v45  ;;  %v10526_v61 = vunpack.c.l.bf16 %v10545_v49  ;;  %s12847_s0 = scalar_lea.vmem %s12846_s18, 64 }
  0x5d   : > { %606 = vst.msk [vmem:[#allocation2 + $0xa9] sm:$0xff] %vm593_vm6, %v10494_v40  ;;  %607 = vst.msk [vmem:[#allocation2 + $0xb1] sm:$0xff] %vm593_vm6, %v10495_v41  ;;  %v10527_v62 = vunpack.c.h.bf16 %v10545_v49  ;;  %v677_v63 = vld [vmem:[#allocation2 + $0x19] sm:$0xff]  ;;  %v10530_v2 = vunpack.c.l.bf16 %v10546_v54  ;;  %v10531_v3 = vunpack.c.h.bf16 %v10546_v54  ;;  %v13367_v11 = vand.u32 %v10057_v55, %v13289_v8  ;;  %p12849_p3 = scmp.lt.s32.totalorder %s12847_s0, %s12841_s15 }
  0x5e   : > { %608 = vst.msk [vmem:[#allocation2 + $0xc1] sm:$0xff] %vm593_vm6, %v10498_v42  ;;  %609 = vst.msk [vmem:[#allocation2 + $0xc9] sm:$0xff] %vm593_vm6, %v10499_v43  ;;  %v678_v0 = vld [vmem:[#allocation2 + $0x21] sm:$0xff]  ;;  %v13376_v13 = vand.u32 %v9989_v1, %v13289_v8  ;;  %v10074_v42 = vld [vmem:[%s15254_s2 + $0xe] sm:$0x3]  ;;  %vm3641_vm7 = vcmask 1043456  }
  0x5f   : > { %610 = vst.msk [vmem:[#allocation2 + $0xd9] sm:$0xff] %vm593_vm6, %v10502_v46  ;;  %611 = vst.msk [vmem:[#allocation2 + $0xe1] sm:$0xff] %vm593_vm6, %v10503_v47  ;;  %v708_v4 = vpack.c.bf16 %v678_v0, %v677_v63  ;;  %v1743_v5 = vld [vmem:[#allocation2 + $0x31] sm:$0xff]  ;;  %v1744_v6 = vld [vmem:[#allocation2 + $0x39] sm:$0xff]  ;;  %vm3412_vm8 = vcmask 195712   ;;  %vm3592_vm9 = vcmask 64512   ;;  %p12850_p4 = por %p12849_p3, %p12848_p1 }
  0x60   : > { %612 = vst.msk [vmem:[#allocation2 + $0xf1] sm:$0xff] %vm593_vm6, %v10506_v48  ;;  %613 = vst.msk [vmem:[#allocation2 + $0xf9] sm:$0xff] %vm593_vm6, %v10507_v50  ;;  %v13364_v7 = vpack.c.bf16 %v1744_v6, %v1743_v5  ;;  %v681_v9 = vld [vmem:[#allocation2 + $0x49] sm:$0xff]  ;;  %v682_v10 = vld [vmem:[#allocation2 + $0x51] sm:$0xff]  ;;  %v13436_v48 = vand.u32 %v10074_v42, %v13289_v8  ;;  %vm6908_vm10 = vcmask 195584   ;;  %vm6532_vm11 = vcmask 130048  }
  0x61   : > { %614 = vst.msk [vmem:[#allocation2 + $0x109] sm:$0xff] %vm593_vm6, %v10510_v51  ;;  %615 = vst.msk [vmem:[#allocation2 + $0x111] sm:$0xff] %vm593_vm6, %v10511_v52  ;;  %11018 = vmatmul.mubr.msk.bf16.vlgmr.msra.gmra.mrb[0].mxu1 %vm593_vm6, %v708_v4  ;;  %11153 = vmatprep.mubr.msk.bf16.mxu0 %vm593_vm6, %v708_v4  ;;  %v13373_v12 = vpack.c.bf16 %v682_v10, %v681_v9  ;;  %v1747_v15 = vld [vmem:[#allocation2 + $0x61] sm:$0xff]  ;;  %v1748_v16 = vld [vmem:[#allocation2 + $0x69] sm:$0xff]  ;;  %p12851_p7 = pnand %p12850_p4, %p12844_p0 }
  0x62   : > { %616 = vst.msk [vmem:[#allocation2 + $0x121] sm:$0xff] %vm593_vm6, %v10514_v53  ;;  %617 = vst.msk [vmem:[#allocation2 + $0x129] sm:$0xff] %vm593_vm6, %v10515_v56  ;;  %11154 = vmatmul.mubr.msk.bf16.vlgmr.msra.gmra.mrb[0].mxu0 %vm593_vm6, %v13364_v7  ;;  %11050 = vmatpush3.bf16.msra.mxu1 %v13310_v23  ;;  %v685_v17 = vld [vmem:[#allocation2 + $0x79] sm:$0xff]  ;;  %v686_v18 = vld [vmem:[#allocation2 + $0x81] sm:$0xff]  ;;  %v13388_v19 = vpack.c.bf16 %v1748_v16, %v1747_v15 }
  0x63   : > { %618 = vst.msk [vmem:[#allocation2 + $0x139] sm:$0xff] %vm593_vm6, %v10518_v57  ;;  %619 = vst.msk [vmem:[#allocation2 + $0x141] sm:$0xff] %vm593_vm6, %v10519_v58  ;;  %11186 = vmatpush3.bf16.msra.mxu0 %v13307_v20  ;;  %11021 = vmatprep.mubr.msk.bf16.mxu1 %vm593_vm6, %v13364_v7  ;;  %v13390_v21 = vpack.c.bf16 %v686_v18, %v685_v17  ;;  %v1751_v20 = vld [vmem:[#allocation2 + $0x91] sm:$0xff]  ;;  %v1752_v22 = vld [vmem:[#allocation2 + $0x99] sm:$0xff] }
  0x64   : > { %620 = vst.msk [vmem:[#allocation2 + $0x151] sm:$0xff] %vm593_vm6, %v10522_v59  ;;  %621 = vst.msk [vmem:[#allocation2 + $0x159] sm:$0xff] %vm593_vm6, %v10523_v60  ;;  %11157 = vmatprep.mubr.msk.bf16.mxu0 %vm593_vm6, %v13373_v12  ;;  %11219 = vmatprep.subr.bf16.mxu0 %v13367_v11  ;;  %v689_v23 = vld [vmem:[#allocation2 + $0xa9] sm:$0xff]  ;;  %v690_v24 = vld [vmem:[#allocation2 + $0xb1] sm:$0xff]  ;;  %v13400_v25 = vpack.c.bf16 %v1752_v22, %v1751_v20 }
  0x65   : > { %622 = vst.msk [vmem:[#allocation2 + $0x169] sm:$0xff] %vm593_vm6, %v10526_v61  ;;  %623 = vst.msk [vmem:[#allocation2 + $0x171] sm:$0xff] %vm593_vm6, %v10527_v62  ;;  %11083 = vmatprep.subr.bf16.mxu1 %v13376_v13  ;;  %v13402_v26 = vpack.c.bf16 %v690_v24, %v689_v23  ;;  %v1755_v27 = vld [vmem:[#allocation2 + $0xc1] sm:$0xff]  ;;  %v1756_v28 = vld [vmem:[#allocation2 + $0xc9] sm:$0xff] }
  0x66   : > { %624 = vst.msk [vmem:[#allocation2 + $0x181] sm:$0xff] %vm593_vm6, %v10530_v2  ;;  %625 = vst.msk [vmem:[#allocation2 + $0x189] sm:$0xff] %vm593_vm6, %v10531_v3  ;;  %v2035_v29 = vld [vmem:[#allocation2 + $0x1a] sm:$0xff]  ;;  %v2036_v30 = vld [vmem:[#allocation2 + $0x22] sm:$0xff]  ;;  %v13412_v31 = vpack.c.bf16 %v1756_v28, %v1755_v27 }
  0x67   : > { %v13414_v32 = vpack.c.bf16 %v2036_v30, %v2035_v29  ;;  %v693_v33 = vld [vmem:[#allocation2 + $0xd9] sm:$0xff]  ;;  %v694_v34 = vld [vmem:[#allocation2 + $0xe1] sm:$0xff]  ;;  %v695_v37 = vld [vmem:[#allocation2 + $0xf1] sm:$0xff] }
  0x68   : > { %v2037_v35 = vld [vmem:[#allocation2 + $0x32] sm:$0xff]  ;;  %v2038_v36 = vld [vmem:[#allocation2 + $0x3a] sm:$0xff]  ;;  %v2039_v39 = vld [vmem:[#allocation2 + $0x4a] sm:$0xff]  ;;  %v13424_v41 = vpack.c.bf16 %v694_v34, %v693_v33 }
  0x69   : > { %11022 = vmatmul.mubr.msk.bf16.gmra.mrb[4].mxu1 %vm593_vm6, %v13373_v12  ;;  %v696_v38 = vld [vmem:[#allocation2 + $0xf9] sm:$0xff]  ;;  %v13429_v43 = vpack.c.bf16 %v2038_v36, %v2037_v35  ;;  %v697_v46 = vld [vmem:[#allocation2 + $0x109] sm:$0xff]  ;;  %v698_v47 = vld [vmem:[#allocation2 + $0x111] sm:$0xff] }
  0x6a   : > { %11158 = vmatmul.mubr.msk.bf16.gmra.mrb[4].mxu0 %vm593_vm6, %v13388_v19  ;;  %11025 = vmatprep.mubr.msk.bf16.mxu1 %vm593_vm6, %v13388_v19  ;;  %v2040_v40 = vld [vmem:[#allocation2 + $0x52] sm:$0xff]  ;;  %v13431_v44 = vpack.c.bf16 %v696_v38, %v695_v37  ;;  %v2041_v49 = vld [vmem:[#allocation2 + $0x62] sm:$0xff]  ;;  %v2042_v50 = vld [vmem:[#allocation2 + $0x6a] sm:$0xff]  ;;  %v13448_v55 = vpack.c.bf16 %v698_v47, %v697_v46 }
  0x6b   : > { %11161 = vmatprep.mubr.msk.bf16.mxu0 %vm593_vm6, %v13390_v21  ;;  %v13433_v45 = vpack.c.bf16 %v2040_v40, %v2039_v39  ;;  %v699_v51 = vld [vmem:[#allocation2 + $0x121] sm:$0xff]  ;;  %v700_v52 = vld [vmem:[#allocation2 + $0x129] sm:$0xff]  ;;  %v13450_v56 = vpack.c.bf16 %v2042_v50, %v2041_v49  ;;  %v701_v59 = vld [vmem:[#allocation2 + $0x139] sm:$0xff] }
  0x6c   : > { %v2043_v53 = vld [vmem:[#allocation2 + $0x7a] sm:$0xff]  ;;  %v2044_v54 = vld [vmem:[#allocation2 + $0x82] sm:$0xff]  ;;  %v13452_v57 = vpack.c.bf16 %v700_v52, %v699_v51  ;;  %v2045_v61 = vld [vmem:[#allocation2 + $0x92] sm:$0xff] }
  0x6d   : > { %v13454_v58 = vpack.c.bf16 %v2044_v54, %v2043_v53  ;;  %v702_v60 = vld [vmem:[#allocation2 + $0x141] sm:$0xff]  ;;  %v703_v63 = vld [vmem:[#allocation2 + $0x151] sm:$0xff]  ;;  %v704_v0 = vld [vmem:[#allocation2 + $0x159] sm:$0xff] }
  0x6e   : > { %v2046_v62 = vld [vmem:[#allocation2 + $0x9a] sm:$0xff]  ;;  %v2047_v1 = vld [vmem:[#allocation2 + $0xaa] sm:$0xff]  ;;  %v2048_v2 = vld [vmem:[#allocation2 + $0xb2] sm:$0xff]  ;;  %v13464_v3 = vpack.c.bf16 %v702_v60, %v701_v59  ;;  %v13468_v5 = vpack.c.bf16 %v704_v0, %v703_v63 }
  0x6f   : > { %v13466_v4 = vpack.c.bf16 %v2046_v62, %v2045_v61  ;;  %v13470_v6 = vpack.c.bf16 %v2048_v2, %v2047_v1  ;;  %v705_v9 = vld [vmem:[#allocation2 + $0x169] sm:$0xff]  ;;  %v706_v10 = vld [vmem:[#allocation2 + $0x171] sm:$0xff]  ;;  %v2051_v18 = vld [vmem:[#allocation2 + $0xda] sm:$0xff] }
  0x70   : > { %v2049_v15 = vld [vmem:[#allocation2 + $0xc2] sm:$0xff]  ;;  %v2050_v16 = vld [vmem:[#allocation2 + $0xca] sm:$0xff]  ;;  %v13480_v22 = vpack.c.bf16 %v706_v10, %v705_v9  ;;  %v628_v28 = vld [vmem:[#allocation2 + $0x18] sm:$0xff] }
  0x71   : > { %11026 = vmatmul.mubr.msk.bf16.gmra.mrb[8].mxu1 %vm593_vm6, %v13390_v21  ;;  %v627_v17 = vld [vmem:[#allocation2 + $0x8] sm:$0xff]  ;;  %v13482_v23 = vpack.c.bf16 %v2050_v16, %v2049_v15  ;;  %v629_v29 = vld [vmem:[#allocation2 + $0x20] sm:$0xff]  ;;  %v2053_v30 = vld [vmem:[#allocation2 + $0xf2] sm:$0xff] }
  0x72   : > { %11162 = vmatmul.mubr.msk.bf16.gmra.mrb[8].mxu0 %vm593_vm6, %v13400_v25  ;;  %11029 = vmatprep.mubr.msk.bf16.mxu1 %vm593_vm6, %v13400_v25  ;;  %v2052_v20 = vld [vmem:[#allocation2 + $0xe2] sm:$0xff]  ;;  %v2054_v33 = vld [vmem:[#allocation2 + $0xfa] sm:$0xff]  ;;  %v630_v34 = vld [vmem:[#allocation2 + $0x30] sm:$0xff]  ;;  %v13493_v38 = vpack.c.bf16 %v629_v29, %v628_v28 }
  0x73   : > { %11165 = vmatprep.mubr.msk.bf16.mxu0 %vm593_vm6, %v13402_v26  ;;  %v13484_v27 = vpack.c.bf16 %v2052_v20, %v2051_v18  ;;  %v631_v35 = vld [vmem:[#allocation2 + $0x38] sm:$0xff]  ;;  %v2055_v36 = vld [vmem:[#allocation2 + $0x10a] sm:$0xff]  ;;  %v10006_v39 = vld [vmem:[%s15254_s2 + $0x6] sm:$0x3]  ;;  %v13498_v40 = vpack.c.bf16 %v2054_v33, %v2053_v30 }
  0x74   : > { %v2056_v37 = vld [vmem:[#allocation2 + $0x112] sm:$0xff]  ;;  %v13500_v42 = vpack.c.bf16 %v631_v35, %v630_v34  ;;  %v13505_v47 = vand.u32 %v10006_v39, %v13289_v8  ;;  %v632_v49 = vld [vmem:[#allocation2 + $0x48] sm:$0xff]  ;;  %v634_v53 = vld [vmem:[#allocation2 + $0x60] sm:$0xff] }
  0x75   : > { %v13502_v46 = vpack.c.bf16 %v2056_v37, %v2055_v36  ;;  %v633_v50 = vld [vmem:[#allocation2 + $0x50] sm:$0xff]  ;;  %v2057_v51 = vld [vmem:[#allocation2 + $0x122] sm:$0xff]  ;;  %v2059_v59 = vld [vmem:[#allocation2 + $0x13a] sm:$0xff] }
  0x76   : > { %v2058_v52 = vld [vmem:[#allocation2 + $0x12a] sm:$0xff]  ;;  %v2060_v60 = vld [vmem:[#allocation2 + $0x142] sm:$0xff]  ;;  %v13517_v61 = vpack.c.bf16 %v633_v50, %v632_v49  ;;  %v636_v0 = vld [vmem:[#allocation2 + $0x78] sm:$0xff] }
  0x77   : > { %v635_v54 = vld [vmem:[#allocation2 + $0x68] sm:$0xff]  ;;  %v13519_v62 = vpack.c.bf16 %v2058_v52, %v2057_v51  ;;  %v13523_v63 = vpack.c.bf16 %v2060_v60, %v2059_v59  ;;  %v637_v1 = vld [vmem:[#allocation2 + $0x80] sm:$0xff]  ;;  %v2061_v2 = vld [vmem:[#allocation2 + $0x152] sm:$0xff] }
  0x78   : > { %v2062_v9 = vld [vmem:[#allocation2 + $0x15a] sm:$0xff]  ;;  %v638_v10 = vld [vmem:[#allocation2 + $0x90] sm:$0xff]  ;;  %v640_v28 = vld [vmem:[#allocation2 + $0xa8] sm:$0xff] }
  0x79   : > { %11030 = vmatmul.mubr.msk.bf16.gmra.mrb[12].mxu1 %vm593_vm6, %v13402_v26  ;;  %v2063_v15 = vld [vmem:[#allocation2 + $0x16a] sm:$0xff]  ;;  %v2064_v16 = vld [vmem:[#allocation2 + $0x172] sm:$0xff]  ;;  %v13535_v18 = vpack.c.bf16 %v2062_v9, %v2061_v2  ;;  %v2065_v30 = vld [vmem:[#allocation2 + $0x182] sm:$0xff] }
  0x7a   : > { %11166 = vmatmul.mubr.msk.bf16.gmra.mrb[12].mxu0 %vm593_vm6, %v13412_v31  ;;  %11033 = vmatprep.mubr.msk.bf16.mxu1 %vm593_vm6, %v13412_v31  ;;  %v641_v29 = vld [vmem:[#allocation2 + $0xb0] sm:$0xff]  ;;  %v642_v34 = vld [vmem:[#allocation2 + $0xc0] sm:$0xff]  ;;  %v643_v35 = vld [vmem:[#allocation2 + $0xc8] sm:$0xff] }
  0x7b   : > { %11187 = vmatprep.mubr.msk.bf16.mxu0 %vm593_vm6, %v13414_v32  ;;  %v2066_v33 = vld [vmem:[#allocation2 + $0x18a] sm:$0xff]  ;;  %v13549_v36 = vpack.c.bf16 %v641_v29, %v640_v28  ;;  %v13553_v39 = vpack.c.bf16 %v643_v35, %v642_v34  ;;  %v644_v49 = vld [vmem:[#allocation2 + $0xd8] sm:$0xff]  ;;  %v645_v50 = vld [vmem:[#allocation2 + $0xe0] sm:$0xff] }
  0x7c   : > { %v13551_v37 = vpack.c.bf16 %v2066_v33, %v2065_v30  ;;  %v646_v51 = vld [vmem:[#allocation2 + $0xf0] sm:$0xff]  ;;  %v647_v52 = vld [vmem:[#allocation2 + $0xf8] sm:$0xff]  ;;  %v650_v2 = vld [vmem:[#allocation2 + $0x120] sm:$0xff] }
  0x7d   : > { %v13568_v59 = vpack.c.bf16 %v647_v52, %v646_v51  ;;  %v651_v9 = vld [vmem:[#allocation2 + $0x128] sm:$0xff]  ;;  %v657_v33 = vld [vmem:[#allocation2 + $0x170] sm:$0xff]  ;;  %v2360_v52 = vld [vmem:[#allocation2 + $0x198] sm:$0xff] }
  0x7e   : > { %v656_v30 = vld [vmem:[#allocation2 + $0x168] sm:$0xff] }
  0x7f   : > { %v1153_v34 = vld [vmem:[#allocation2 + $0x2] sm:$0xff]  ;;  %v1154_v35 = vld [vmem:[#allocation2 + $0xa] sm:$0xff] }
  0x81   : > { %11034 = vmatmul.mubr.msk.bf16.gmra.mrb[16].mxu1 %vm593_vm6, %v13424_v41 }
  0x82   : > { %11188 = vmatmul.mubr.msk.bf16.vlgmr.msra.gmra.mrb[0].mxu0 %vm593_vm6, %v13429_v43  ;;  %11037 = vmatprep.mubr.msk.bf16.mxu1 %vm593_vm6, %v13431_v44 }
  0x83   : > { %11220 = vmatpush3.bf16.msra.mxu0 %v13367_v11  ;;  %11191 = vmatprep.mubr.msk.bf16.mxu0 %vm593_vm6, %v13433_v45  ;;  %v626_v11 = vld [vmem:[#allocation2] sm:$0xff] }
  0x84   : > { %11253 = vmatprep.subr.bf16.mxu0 %v13436_v48  ;;  %v658_v24 = vpack.c.bf16 %v627_v17, %v626_v11  ;;  %v639_v11 = vld [vmem:[#allocation2 + $0x98] sm:$0xff]  ;;  %v13533_v17 = vpack.c.bf16 %v637_v1, %v636_v0  ;;  %v648_v0 = vld [vmem:[#allocation2 + $0x108] sm:$0xff]  ;;  %v649_v1 = vld [vmem:[#allocation2 + $0x110] sm:$0xff] }
  0x85   : > { %v13537_v20 = vpack.c.bf16 %v639_v11, %v638_v10  ;;  %v13585_v10 = vpack.c.bf16 %v651_v9, %v650_v2  ;;  %v653_v11 = vld [vmem:[#allocation2 + $0x140] sm:$0xff] }
  0x89   : > { %11038 = vmatmul.mubr.msk.bf16.gmra.mrb[20].mxu1 %vm593_vm6, %v13448_v55 }
  0x8a   : > { %11192 = vmatmul.mubr.msk.bf16.gmra.mrb[4].mxu0 %vm593_vm6, %v13450_v56  ;;  %11041 = vmatprep.mubr.msk.bf16.mxu1 %vm593_vm6, %v13452_v57 }
  0x8b   : > { %11195 = vmatprep.mubr.msk.bf16.mxu0 %vm593_vm6, %v13454_v58 }
  0x91   : > { %11042 = vmatmul.mubr.msk.bf16.gmra.mrb[24].mxu1 %vm593_vm6, %v13464_v3 }
  0x92   : > { %11196 = vmatmul.mubr.msk.bf16.gmra.mrb[8].mxu0 %vm593_vm6, %v13466_v4  ;;  %11045 = vmatprep.mubr.msk.bf16.mxu1 %vm593_vm6, %v13468_v5 }
  0x93   : > { %11199 = vmatprep.mubr.msk.bf16.mxu0 %vm593_vm6, %v13470_v6 }
  0x99   : > { %11046 = vmatmul.mubr.msk.bf16.gmra.mrb[28].mxu1 %vm593_vm6, %v13480_v22 }
  0x9a   : > { %11200 = vmatmul.mubr.msk.bf16.gmra.mrb[12].mxu0 %vm593_vm6, %v13482_v23  ;;  %11051 = vmatprep.mubr.msk.bf16.mxu1 %vm593_vm6, %v658_v24  ;;  %v13539_v24 = vpack.c.bf16 %v2064_v16, %v2063_v15  ;;  %v654_v15 = vld [vmem:[#allocation2 + $0x150] sm:$0xff]  ;;  %v655_v16 = vld [vmem:[#allocation2 + $0x158] sm:$0xff] }
  0x9b   : > { %11203 = vmatprep.mubr.msk.bf16.mxu0 %vm593_vm6, %v13484_v27  ;;  %v13597_v29 = vpack.c.bf16 %v655_v16, %v654_v15 }
  0xa1   : > { %11052 = vmatmul.mubr.msk.bf16.vlgmr.msra.gmra.mrb[0].mxu1 %vm593_vm6, %v13493_v38 }
  0xa2   : > { %11204 = vmatmul.mubr.msk.bf16.gmra.mrb[16].mxu0 %vm593_vm6, %v13498_v40  ;;  %11084 = vmatpush3.bf16.msra.mxu1 %v13376_v13  ;;  %v13521_v13 = vpack.c.bf16 %v635_v54, %v634_v53  ;;  %v13563_v53 = vpack.c.bf16 %v645_v50, %v644_v49  ;;  %v10091_v54 = vld [vmem:[%s15254_s2 + $0x10] sm:$0x3]  ;;  %v13607_v49 = vpack.c.bf16 %v657_v33, %v656_v30 }
  0xa3   : > { %11055 = vmatprep.mubr.msk.bf16.mxu1 %vm593_vm6, %v13500_v42  ;;  %11207 = vmatprep.mubr.msk.bf16.mxu0 %vm593_vm6, %v13502_v46  ;;  %v13571_v60 = vand.u32 %v10091_v54, %v13289_v8  ;;  %v13583_v8 = vpack.c.bf16 %v649_v1, %v648_v0  ;;  %v1185_v50 = vpack.c.bf16 %v1154_v35, %v1153_v34  ;;  %v2361_v54 = vld [vmem:[#allocation2 + $0x1a0] sm:$0xff] }
  0xa4   : > { %11117 = vmatprep.subr.bf16.mxu1 %v13505_v47  ;;  %v2377_v0 = vpack.c.bf16 %v2361_v54, %v2360_v52 }
  0xa9   : > { %11056 = vmatmul.mubr.msk.bf16.gmra.mrb[4].mxu1 %vm593_vm6, %v13517_v61 }
  0xaa   : > { %11208 = vmatmul.mubr.msk.bf16.gmra.mrb[20].mxu0 %vm593_vm6, %v13519_v62  ;;  %11059 = vmatprep.mubr.msk.bf16.mxu1 %vm593_vm6, %v13521_v13 }
  0xab   : > { %11211 = vmatprep.mubr.msk.bf16.mxu0 %vm593_vm6, %v13523_v63 }
  0xb1   : > { %11060 = vmatmul.mubr.msk.bf16.gmra.mrb[8].mxu1 %vm593_vm6, %v13533_v17 }
  0xb2   : > { %11212 = vmatmul.mubr.msk.bf16.gmra.mrb[24].mxu0 %vm593_vm6, %v13535_v18  ;;  %11063 = vmatprep.mubr.msk.bf16.mxu1 %vm593_vm6, %v13537_v20 }
  0xb3   : > { %11215 = vmatprep.mubr.msk.bf16.mxu0 %vm593_vm6, %v13539_v24 }
  0xb9   : > { %11064 = vmatmul.mubr.msk.bf16.gmra.mrb[12].mxu1 %vm593_vm6, %v13549_v36 }
  0xba   : > { %11216 = vmatmul.mubr.msk.bf16.gmra.mrb[28].mxu0 %vm593_vm6, %v13551_v37  ;;  %11067 = vmatprep.mubr.msk.bf16.mxu1 %vm593_vm6, %v13553_v39 }
  0xbb   : > { %11221 = vmatprep.mubr.msk.bf16.mxu0 %vm593_vm6, %v13500_v42 }
  0xc1   : > { %11068 = vmatmul.mubr.msk.bf16.gmra.mrb[16].mxu1 %vm593_vm6, %v13563_v53 }
  0xc2   : > { %11222 = vmatmul.mubr.msk.bf16.vlgmr.msra.gmra.mrb[0].mxu0 %vm593_vm6, %v13517_v61  ;;  %11071 = vmatprep.mubr.msk.bf16.mxu1 %vm593_vm6, %v13568_v59 }
  0xc3   : > { %11254 = vmatpush3.bf16.msra.mxu0 %v13436_v48  ;;  %11225 = vmatprep.mubr.msk.bf16.mxu0 %vm593_vm6, %v13521_v13  ;;  %v652_v48 = vld [vmem:[#allocation2 + $0x138] sm:$0xff] }
  0xc4   : > { %11287 = vmatprep.subr.bf16.mxu0 %v13571_v60  ;;  %v13595_v28 = vpack.c.bf16 %v653_v11, %v652_v48 }
  0xc9   : > { %11072 = vmatmul.mubr.msk.bf16.gmra.mrb[20].mxu1 %vm593_vm6, %v13583_v8 }
  0xca   : > { %11226 = vmatmul.mubr.msk.bf16.gmra.mrb[4].mxu0 %vm593_vm6, %v13533_v17  ;;  %11075 = vmatprep.mubr.msk.bf16.mxu1 %vm593_vm6, %v13585_v10 }
  0xcb   : > { %11229 = vmatprep.mubr.msk.bf16.mxu0 %vm593_vm6, %v13537_v20 }
  0xd1   : > { %11076 = vmatmul.mubr.msk.bf16.gmra.mrb[24].mxu1 %vm593_vm6, %v13595_v28 }
  0xd2   : > { %11230 = vmatmul.mubr.msk.bf16.gmra.mrb[8].mxu0 %vm593_vm6, %v13549_v36  ;;  %11079 = vmatprep.mubr.msk.bf16.mxu1 %vm593_vm6, %v13597_v29 }
  0xd3   : > { %11233 = vmatprep.mubr.msk.bf16.mxu0 %vm593_vm6, %v13553_v39 }
  0xd9   : > { %11080 = vmatmul.mubr.msk.bf16.gmra.mrb[28].mxu1 %vm593_vm6, %v13607_v49 }
  0xda   : > { %11234 = vmatmul.mubr.msk.bf16.gmra.mrb[12].mxu0 %vm593_vm6, %v13563_v53  ;;  %11085 = vmatprep.mubr.msk.bf16.mxu1 %vm593_vm6, %v1185_v50 }
  0xdb   : > { %11237 = vmatprep.mubr.msk.bf16.mxu0 %vm593_vm6, %v13568_v59 }
  0xe1   : > { %11086 = vmatmul.mubr.msk.bf16.vlgmr.msra.gmra.mrb[0].mxu1 %vm593_vm6, %v13414_v32  ;;  %v2358_v32 = vld [vmem:[#allocation2 + $0x180] sm:$0xff] }
  0xe2   : > { %11238 = vmatmul.mubr.msk.bf16.gmra.mrb[16].mxu0 %vm593_vm6, %v13583_v8  ;;  %11118 = vmatpush3.bf16.msra.mxu1 %v13505_v47  ;;  %v2359_v47 = vld [vmem:[#allocation2 + $0x188] sm:$0xff] }
  0xe3   : > { %11089 = vmatprep.mubr.msk.bf16.mxu1 %vm593_vm6, %v13429_v43  ;;  %11241 = vmatprep.mubr.msk.bf16.mxu0 %vm593_vm6, %v13585_v10  ;;  %v13634_v51 = vpack.c.bf16 %v2359_v47, %v2358_v32 }
  0xe4   : > { %11951 = vmatprep.subr.bf16.mxu1 %v13298_v14 }
  0xe9   : > { %11090 = vmatmul.mubr.msk.bf16.gmra.mrb[4].mxu1 %vm593_vm6, %v13433_v45 }
  0xea   : > { %11242 = vmatmul.mubr.msk.bf16.gmra.mrb[20].mxu0 %vm593_vm6, %v13595_v28  ;;  %11093 = vmatprep.mubr.msk.bf16.mxu1 %vm593_vm6, %v13450_v56 }
  0xeb   : > { %11245 = vmatprep.mubr.msk.bf16.mxu0 %vm593_vm6, %v13597_v29 }
  0xf1   : > { %11094 = vmatmul.mubr.msk.bf16.gmra.mrb[8].mxu1 %vm593_vm6, %v13454_v58 }
  0xf2   : > { %11246 = vmatmul.mubr.msk.bf16.gmra.mrb[24].mxu0 %vm593_vm6, %v13607_v49  ;;  %11097 = vmatprep.mubr.msk.bf16.mxu1 %vm593_vm6, %v13466_v4 }
  0xf3   : > { %11249 = vmatprep.mubr.msk.bf16.mxu0 %vm593_vm6, %v13634_v51 }
  0xf9   : > { %11098 = vmatmul.mubr.msk.bf16.gmra.mrb[12].mxu1 %vm593_vm6, %v13470_v6 }
  0xfa   : > { %11250 = vmatmul.mubr.msk.bf16.gmra.mrb[28].mxu0 %vm593_vm6, %v2377_v0  ;;  %11101 = vmatprep.mubr.msk.bf16.mxu1 %vm593_vm6, %v13482_v23 }
  0xfb   : > { %11255 = vmatprep.mubr.msk.bf16.mxu0 %vm593_vm6, %v13364_v7  ;;  %v2652_v7 = vld [vmem:[#allocation2 + $0x181] sm:$0xff] }
 0x101   : > { %11102 = vmatmul.mubr.msk.bf16.gmra.mrb[16].mxu1 %vm593_vm6, %v13484_v27 }
 0x102   : > { %11256 = vmatmul.mubr.msk.bf16.vlgmr.msra.gmra.mrb[0].mxu0 %vm593_vm6, %v13373_v12  ;;  %11105 = vmatprep.mubr.msk.bf16.mxu1 %vm593_vm6, %v13498_v40 }
 0x103   : > { %11288 = vmatpush3.bf16.msra.mxu0 %v13571_v60  ;;  %11259 = vmatprep.mubr.msk.bf16.mxu0 %vm593_vm6, %v13388_v19  ;;  %v2654_v19 = vld [vmem:[#allocation2 + $0x199] sm:$0xff] }
 0x109   : > { %11106 = vmatmul.mubr.msk.bf16.gmra.mrb[20].mxu1 %vm593_vm6, %v13502_v46 }
 0x10a   : > { %11260 = vmatmul.mubr.msk.bf16.gmra.mrb[4].mxu0 %vm593_vm6, %v13390_v21  ;;  %11109 = vmatprep.mubr.msk.bf16.mxu1 %vm593_vm6, %v13519_v62  ;;  %v2655_v21 = vld [vmem:[#allocation2 + $0x1a1] sm:$0xff] }
 0x10b   : > { %11263 = vmatprep.mubr.msk.bf16.mxu0 %vm593_vm6, %v13400_v25  ;;  %v2671_v25 = vpack.c.bf16 %v2655_v21, %v2654_v19 }
 0x111   : > { %11110 = vmatmul.mubr.msk.bf16.gmra.mrb[24].mxu1 %vm593_vm6, %v13523_v63 }
 0x112   : > { %11264 = vmatmul.mubr.msk.bf16.gmra.mrb[8].mxu0 %vm593_vm6, %v13402_v26  ;;  %11113 = vmatprep.mubr.msk.bf16.mxu1 %vm593_vm6, %v13535_v18  ;;  %v2948_v26 = vld [vmem:[#allocation2 + $0x19a] sm:$0xff] }
 0x113   : > { %11267 = vmatprep.mubr.msk.bf16.mxu0 %vm593_vm6, %v13412_v31  ;;  %v2949_v31 = vld [vmem:[#allocation2 + $0x1a2] sm:$0xff] }
 0x119   : > { %11114 = vmatmul.mubr.msk.bf16.gmra.mrb[28].mxu1 %vm593_vm6, %v13539_v24 }
 0x11a   : > { %11268 = vmatmul.mubr.msk.bf16.gmra.mrb[12].mxu0 %vm593_vm6, %v13424_v41  ;;  %11119 = vmatprep.mubr.msk.bf16.mxu1 %vm593_vm6, %v13493_v38 }
 0x11b   : > { %11271 = vmatprep.mubr.msk.bf16.mxu0 %vm593_vm6, %v13431_v44 }
 0x121   : > { %11120 = vmatmul.mubr.msk.bf16.vlgmr.msra.gmra.mrb[0].mxu1 %vm593_vm6, %v13500_v42 }
 0x122   : > { %11272 = vmatmul.mubr.msk.bf16.gmra.mrb[16].mxu0 %vm593_vm6, %v13448_v55  ;;  %11952 = vmatpush3.bf16.msra.mxu1 %v13298_v14  ;;  %v2653_v14 = vld [vmem:[#allocation2 + $0x189] sm:$0xff] }
 0x123   : > { %11123 = vmatprep.mubr.msk.bf16.mxu1 %vm593_vm6, %v13517_v61  ;;  %11275 = vmatprep.mubr.msk.bf16.mxu0 %vm593_vm6, %v13452_v57  ;;  %v2670_v12 = vpack.c.bf16 %v2653_v14, %v2652_v7 }
 0x129   : > { %11124 = vmatmul.mubr.msk.bf16.gmra.mrb[4].mxu1 %vm593_vm6, %v13521_v13 }
 0x12a   : > { %11276 = vmatmul.mubr.msk.bf16.gmra.mrb[20].mxu0 %vm593_vm6, %v13464_v3  ;;  %11127 = vmatprep.mubr.msk.bf16.mxu1 %vm593_vm6, %v13533_v17 }
 0x12b   : > { %11279 = vmatprep.mubr.msk.bf16.mxu0 %vm593_vm6, %v13468_v5 }
 0x131   : > { %11128 = vmatmul.mubr.msk.bf16.gmra.mrb[8].mxu1 %vm593_vm6, %v13537_v20 }
 0x132   : > { %11280 = vmatmul.mubr.msk.bf16.gmra.mrb[24].mxu0 %vm593_vm6, %v13480_v22  ;;  %11131 = vmatprep.mubr.msk.bf16.mxu1 %vm593_vm6, %v13549_v36 }
 0x133   : > { %11283 = vmatprep.mubr.msk.bf16.mxu0 %vm593_vm6, %v2670_v12 }
 0x139   : > { %11132 = vmatmul.mubr.msk.bf16.gmra.mrb[12].mxu1 %vm593_vm6, %v13553_v39 }
 0x13a   : > { %11284 = vmatmul.mubr.msk.bf16.gmra.mrb[28].mxu0 %vm593_vm6, %v2671_v25  ;;  %11135 = vmatprep.mubr.msk.bf16.mxu1 %vm593_vm6, %v13563_v53 }
 0x13b   : > { %11289 = vmatprep.mubr.msk.bf16.mxu0 %vm593_vm6, %v13429_v43 }
 0x141   : > { %11136 = vmatmul.mubr.msk.bf16.gmra.mrb[16].mxu1 %vm593_vm6, %v13568_v59 }
 0x142   : > { %11290 = vmatmul.mubr.msk.bf16.vlgmr.msra.gmra.mrb[0].mxu0 %vm593_vm6, %v13433_v45  ;;  %11139 = vmatprep.mubr.msk.bf16.mxu1 %vm593_vm6, %v13583_v8 }
 0x143   : > { %11293 = vmatprep.mubr.msk.bf16.mxu0 %vm593_vm6, %v13450_v56 }
 0x149   : > { %11140 = vmatmul.mubr.msk.bf16.gmra.mrb[20].mxu1 %vm593_vm6, %v13585_v10 }
 0x14a   : > { %11294 = vmatmul.mubr.msk.bf16.gmra.mrb[4].mxu0 %vm593_vm6, %v13454_v58  ;;  %11143 = vmatprep.mubr.msk.bf16.mxu1 %vm593_vm6, %v13595_v28 }
 0x14b   : > { %11297 = vmatprep.mubr.msk.bf16.mxu0 %vm593_vm6, %v13466_v4 }
 0x151   : > { %11144 = vmatmul.mubr.msk.bf16.gmra.mrb[24].mxu1 %vm593_vm6, %v13597_v29 }
 0x152   : > { %11298 = vmatmul.mubr.msk.bf16.gmra.mrb[8].mxu0 %vm593_vm6, %v13470_v6  ;;  %11147 = vmatprep.mubr.msk.bf16.mxu1 %vm593_vm6, %v13607_v49 }
 0x153   : > { %11301 = vmatprep.mubr.msk.bf16.mxu0 %vm593_vm6, %v13482_v23 }
 0x159   : > { %11148 = vmatmul.mubr.msk.bf16.gmra.mrb[28].mxu1 %vm593_vm6, %v13634_v51 }
 0x15a   : > { %11302 = vmatmul.mubr.msk.bf16.gmra.mrb[12].mxu0 %vm593_vm6, %v13484_v27  ;;  %11169 = vmatprep.mubr.msk.bf16.mxu1 %vm593_vm6, %v13424_v41  ;;  %v2965_v41 = vpack.c.bf16 %v2949_v31, %v2948_v26 }
 0x15b   : > { %11305 = vmatprep.mubr.msk.bf16.mxu0 %vm593_vm6, %v13498_v40 }
 0x161   : > { %11170 = vmatmul.mubr.msk.bf16.vlgmr.msra.gmra.mrb[16].mxu1 %vm593_vm6, %v13431_v44 }
 0x162   : > { %11306 = vmatmul.mubr.msk.bf16.gmra.mrb[16].mxu0 %vm593_vm6, %v13502_v46  ;;  %11173 = vmatprep.mubr.msk.bf16.mxu1 %vm593_vm6, %v13448_v55  ;;  %v13782_v46 = vld [vmem:[%s15255_s3] ss:$0 sm:$0xff] }
 0x163   : > { %11309 = vmatprep.mubr.msk.bf16.mxu0 %vm593_vm6, %v13519_v62 }
 0x169   : > { %11174 = vmatmul.mubr.msk.bf16.gmra.mrb[20].mxu1 %vm593_vm6, %v13452_v57 }
 0x16a   : > { %11310 = vmatmul.mubr.msk.bf16.gmra.mrb[20].mxu0 %vm593_vm6, %v13523_v63  ;;  %11177 = vmatprep.mubr.msk.bf16.mxu1 %vm593_vm6, %v13464_v3 }
 0x16b   : > { %11313 = vmatprep.mubr.msk.bf16.mxu0 %vm593_vm6, %v13535_v18 }
 0x171   : > { %11178 = vmatmul.mubr.msk.bf16.gmra.mrb[24].mxu1 %vm593_vm6, %v13468_v5 }
 0x172   : > { %11314 = vmatmul.mubr.msk.bf16.gmra.mrb[24].mxu0 %vm593_vm6, %v13539_v24  ;;  %11181 = vmatprep.mubr.msk.bf16.mxu1 %vm593_vm6, %v13480_v22 }
 0x173   : > { %11317 = vmatprep.mubr.msk.bf16.mxu0 %vm593_vm6, %v13551_v37 }
 0x179   : > { %11182 = vmatmul.mubr.msk.bf16.gmra.mrb[28].mxu1 %vm593_vm6, %v2670_v12 }
 0x17a   : > { %11318 = vmatmul.mubr.msk.bf16.gmra.mrb[28].mxu0 %vm593_vm6, %v2965_v41 }
 0x1f4   : > { %v11121_v43 = vpop.f32.mrb[0].mxu1 }
 0x1f5   : > { %v1582_v44 = vpop.f32.mrb[1].mxu1 }
 0x1f6   : > { %v11122_v45 = vpop.f32.mrb[2].mxu1 }
 0x1f7   : > { %v1585_v55 = vpop.f32.mrb[3].mxu1 }
 0x1fc   : > { %v11125_v56 = vpop.f32.mrb[4].mxu1 }
 0x1fd   : > { %v1598_v57 = vpop.f32.mrb[5].mxu1 }
 0x1fe   : > { %v11126_v58 = vpop.f32.mrb[6].mxu1 }
 0x1ff   : > { %v1601_v3 = vpop.f32.mrb[7].mxu1 }
 0x204   : > { %v11129_v4 = vpop.f32.mrb[8].mxu1 }
 0x205   : > { %v1614_v5 = vpop.f32.mrb[9].mxu1 }
 0x206   : > { %v11130_v6 = vpop.f32.mrb[10].mxu1 }
 0x207   : > { %v1617_v22 = vpop.f32.mrb[11].mxu1 }
 0x20c   : > { %v11133_v23 = vpop.f32.mrb[12].mxu1 }
 0x20d   : > { %v13773_v27 = vpop.f32.mrb[13].mxu1 }
 0x20e   : > { %v13775_v38 = vpop.f32.mrb[14].mxu1 }
 0x20f   : > { %v13777_v40 = vpop.f32.mrb[15].mxu1 }
 0x215   : > { %v11291_v42 = vpop.f32.mrb[0].mxu0 }
 0x216   : > { %v11953_v61 = vadd.f32 %v11291_v42, %v11121_v43  ;;  %v3053_v62 = vpop.f32.mrb[1].mxu0 }
 0x217   : > { %v11954_v13 = vadd.f32 %v3053_v62, %v1582_v44  ;;  %v11292_v63 = vpop.f32.mrb[2].mxu0 }
 0x218   : > { %v11955_v17 = vadd.f32 %v11292_v63, %v11122_v45  ;;  %v3056_v18 = vpop.f32.mrb[3].mxu0  ;;  %v3221_v20 = vadd.f32 %v11953_v61, %v13782_v46 }
 0x219   : > { %v11956_v24 = vadd.f32 %v3056_v18, %v1585_v55  ;;  %v3219_v36 = vadd.f32 %v11954_v13, %v13782_v46 }
 0x21a   : > { %v3222_v37 = vadd.f32 %v11955_v17, %v13782_v46  ;;  %v3253_v39 = vmax.f32 %v3221_v20, 0.0 }
 0x21b   : > { %v3220_v53 = vadd.f32 %v11956_v24, %v13782_v46  ;;  %v3251_v59 = vmax.f32 %v3219_v36, 0.0 }
 0x21c   : > { %3319 = vrot.lane.b32.xlu1 %v3253_v39, %s12924_s23  ;;  %v3254_v1 = vmax.f32 %v3222_v37, 0.0 }
 0x21d   : > { %v11295_v60 = vpop.f32.mrb[4].mxu0  ;;  %3315 = vrot.lane.b32.xlu0 %v3251_v59, %s12924_s23  ;;  %v3252_v8 = vmax.f32 %v3220_v53, 0.0 }
 0x21e   : > { %v11957_v2 = vadd.f32 %v11295_v60, %v11125_v56  ;;  %v3069_v9 = vpop.f32.mrb[5].mxu0 }
 0x21f   : > { %v11958_v10 = vadd.f32 %v3069_v9, %v1598_v57  ;;  %v11296_v48 = vpop.f32.mrb[6].mxu0 }
 0x220   : > { %v11959_v11 = vadd.f32 %v11296_v48, %v11126_v58  ;;  %v3072_v15 = vpop.f32.mrb[7].mxu0  ;;  %3321 = vrot.lane.b32.xlu1 %v3254_v1, %s12924_s23  ;;  %v3225_v29 = vadd.f32 %v11957_v2, %v13782_v46 }
 0x221   : > { %v3223_v16 = vadd.f32 %v11958_v10, %v13782_v46  ;;  %v11960_v28 = vadd.f32 %v3072_v15, %v1601_v3  ;;  %3317 = vrot.lane.b32.xlu0 %v3252_v8, %s12924_s23 }
 0x222   : > { %v3226_v34 = vadd.f32 %v11959_v11, %v13782_v46  ;;  %v3257_v47 = vmax.f32 %v3225_v29, 0.0 }
 0x223   : > { %v3255_v30 = vmax.f32 %v3223_v16, 0.0  ;;  %v3224_v33 = vadd.f32 %v11960_v28, %v13782_v46 }
 0x224   : > { %v3258_v7 = vmax.f32 %v3226_v34, 0.0 }
 0x225   : > { %v3256_v35 = vmax.f32 %v3224_v33, 0.0  ;;  %v11299_v49 = vpop.f32.mrb[8].mxu0  ;;  %3323 = vrot.lane.b32.xlu0 %v3255_v30, %s12924_s23 }
 0x226   : > { %v11961_v50 = vadd.f32 %v11299_v49, %v11129_v4  ;;  %v3085_v32 = vpop.f32.mrb[9].mxu0 }
 0x227   : > { %v11962_v51 = vadd.f32 %v3085_v32, %v1614_v5  ;;  %v11300_v52 = vpop.f32.mrb[10].mxu0  ;;  %3325 = vrot.lane.b32.xlu1 %v3256_v35, %s12924_s23 }
 0x228   : > { %v11963_v54 = vadd.f32 %v11300_v52, %v11130_v6  ;;  %v3088_v0 = vpop.f32.mrb[11].mxu0  ;;  %v3229_v19 = vadd.f32 %v11961_v50, %v13782_v46 }
 0x229   : > { %v3227_v14 = vadd.f32 %v11962_v51, %v13782_v46  ;;  %v11964_v12 = vadd.f32 %v3088_v0, %v1617_v22  ;;  %3327 = vrot.lane.b32.xlu0 %v3257_v47, %s12924_s23 }
 0x22a   : > { %v3230_v26 = vadd.f32 %v11963_v54, %v13782_v46  ;;  %v3261_v45 = vmax.f32 %v3229_v19, 0.0 }
 0x22b   : > { %v3259_v21 = vmax.f32 %v3227_v14, 0.0  ;;  %v3228_v25 = vadd.f32 %v11964_v12, %v13782_v46  ;;  %3329 = vrot.lane.b32.xlu1 %v3258_v7, %s12924_s23 }
 0x22c   : > { %v3262_v3 = vmax.f32 %v3230_v26, 0.0 }
 0x22d   : > { %v3260_v31 = vmax.f32 %v3228_v25, 0.0  ;;  %v11303_v41 = vpop.f32.mrb[12].mxu0  ;;  %3331 = vrot.lane.b32.xlu0 %v3259_v21, %s12924_s23 }
 0x22e   : > { %v11965_v43 = vadd.f32 %v11303_v41, %v11133_v23  ;;  %v3101_v44 = vpop.f32.mrb[13].mxu0 }
 0x22f   : > { %v11966_v55 = vadd.f32 %v3101_v44, %v13773_v27  ;;  %v11304_v56 = vpop.f32.mrb[14].mxu0  ;;  %3333 = vrot.lane.b32.xlu1 %v3260_v31, %s12924_s23 }
 0x230   : > { %v11967_v57 = vadd.f32 %v11304_v56, %v13775_v38  ;;  %v3104_v58 = vpop.f32.mrb[15].mxu0  ;;  %v3233_v6 = vadd.f32 %v11965_v43, %v13782_v46 }
 0x231   : > { %v3231_v4 = vadd.f32 %v11966_v55, %v13782_v46  ;;  %v11968_v5 = vadd.f32 %v3104_v58, %v13777_v40  ;;  %3335 = vrot.lane.b32.xlu0 %v3261_v45, %s12924_s23 }
 0x232   : > { %v3234_v42 = vadd.f32 %v11967_v57, %v13782_v46  ;;  %v3265_v17 = vmax.f32 %v3233_v6, 0.0 }
 0x233   : > { %v3263_v22 = vmax.f32 %v3231_v4, 0.0  ;;  %v3232_v23 = vadd.f32 %v11968_v5, %v13782_v46  ;;  %3337 = vrot.lane.b32.xlu1 %v3262_v3, %s12924_s23 }
 0x234   : > { %v11171_v27 = vpop.f32.mrb[16].mxu1  ;;  %v3266_v39 = vmax.f32 %v3234_v42, 0.0 }
 0x235   : > { %v3264_v61 = vmax.f32 %v3232_v23, 0.0  ;;  %v11307_v38 = vpop.f32.mrb[16].mxu0  ;;  %3339 = vrot.lane.b32.xlu0 %v3263_v22, %s12924_s23  ;;  %v1940_v62 = vpop.f32.mrb[17].mxu1 }
 0x236   : > { %v11969_v13 = vadd.f32 %v11307_v38, %v11171_v27  ;;  %v11172_v63 = vpop.f32.mrb[18].mxu1  ;;  %v3117_v40 = vpop.f32.mrb[17].mxu0 }
 0x237   : > { %v11970_v18 = vadd.f32 %v3117_v40, %v1940_v62  ;;  %v11308_v20 = vpop.f32.mrb[18].mxu0  ;;  %3341 = vrot.lane.b32.xlu1 %v3264_v61, %s12924_s23  ;;  %v1943_v24 = vpop.f32.mrb[19].mxu1 }
 0x238   : > { %v11971_v36 = vadd.f32 %v11308_v20, %v11172_v63  ;;  %v3120_v37 = vpop.f32.mrb[19].mxu0  ;;  %v3237_v60 = vadd.f32 %v11969_v13, %v13782_v46 }
 0x239   : > { %v3235_v53 = vadd.f32 %v11970_v18, %v13782_v46  ;;  %v11972_v59 = vadd.f32 %v3120_v37, %v1943_v24  ;;  %3343 = vrot.lane.b32.xlu0 %v3265_v17, %s12924_s23 }
 0x23a   : > { %v3238_v8 = vadd.f32 %v11971_v36, %v13782_v46  ;;  %v3269_v29 = vmax.f32 %v3237_v60, 0.0  ;;  %v3495_v60 = vld [vmem:[#allocation3 + $0x9] sm:$0xff] }
 0x23b   : > { %v3267_v1 = vmax.f32 %v3235_v53, 0.0  ;;  %v3236_v2 = vadd.f32 %v11972_v59, %v13782_v46  ;;  %3345 = vrot.lane.b32.xlu1 %v3266_v39, %s12924_s23  ;;  %v3494_v59 = vld [vmem:[#allocation3 + $0x1] sm:$0xff] }
 0x23c   : > { %v11175_v9 = vpop.f32.mrb[20].mxu1  ;;  %v3270_v50 = vmax.f32 %v3238_v8, 0.0  ;;  %v3526_v8 = vpack.c.bf16 %v3495_v60, %v3494_v59 }
 0x23d   : > { %v3268_v10 = vmax.f32 %v3236_v2, 0.0  ;;  %v11311_v48 = vpop.f32.mrb[20].mxu0  ;;  %3347 = vrot.lane.b32.xlu0 %v3267_v1, %s12924_s23  ;;  %v1956_v11 = vpop.f32.mrb[21].mxu1 }
 0x23e   : > { %v11973_v15 = vadd.f32 %v11311_v48, %v11175_v9  ;;  %v11176_v16 = vpop.f32.mrb[22].mxu1  ;;  %v3133_v28 = vpop.f32.mrb[21].mxu0 }
 0x23f   : > { %v11974_v30 = vadd.f32 %v3133_v28, %v1956_v11  ;;  %v11312_v33 = vpop.f32.mrb[22].mxu0  ;;  %3349 = vrot.lane.b32.xlu1 %v3268_v10, %s12924_s23  ;;  %v1959_v34 = vpop.f32.mrb[23].mxu1  ;;  %v10109_v10 = vld [vmem:[%s15256_s4 + $0x4] sm:$0xf] }
 0x240   : > { %v11975_v35 = vadd.f32 %v11312_v33, %v11176_v16  ;;  %v3136_v49 = vpop.f32.mrb[23].mxu0  ;;  %v3241_v51 = vadd.f32 %v11973_v15, %v13782_v46  ;;  %12721 = vmatprep.subr.msk.bf16.mxu1 %vm3641_vm7, %v10109_v10  ;;  %v13863_v15 = vld [vmem:[%s15256_s4] sm:$0xf] }
 0x241   : > { %v3239_v32 = vadd.f32 %v11974_v30, %v13782_v46  ;;  %v11976_v47 = vadd.f32 %v3136_v49, %v1959_v34  ;;  %3351 = vrot.lane.b32.xlu0 %v3269_v29, %s12924_s23 }
 0x242   : > { %v3242_v7 = vadd.f32 %v11975_v35, %v13782_v46  ;;  %v3273_v31 = vmax.f32 %v3241_v51, 0.0 }
 0x243   : > { %v3271_v52 = vmax.f32 %v3239_v32, 0.0  ;;  %v3240_v54 = vadd.f32 %v11976_v47, %v13782_v46  ;;  %3353 = vrot.lane.b32.xlu1 %v3270_v50, %s12924_s23 }
 0x244   : > { %v11179_v0 = vpop.f32.mrb[24].mxu1  ;;  %v3274_v56 = vmax.f32 %v3242_v7, 0.0 }
 0x245   : > { %v3272_v14 = vmax.f32 %v3240_v54, 0.0  ;;  %v11315_v12 = vpop.f32.mrb[24].mxu0  ;;  %3355 = vrot.lane.b32.xlu0 %v3271_v52, %s12924_s23  ;;  %v1972_v19 = vpop.f32.mrb[25].mxu1 }
 0x246   : > { %v11977_v21 = vadd.f32 %v11315_v12, %v11179_v0  ;;  %v11180_v25 = vpop.f32.mrb[26].mxu1  ;;  %v3149_v26 = vpop.f32.mrb[25].mxu0 }
 0x247   : > { %v11978_v41 = vadd.f32 %v3149_v26, %v1972_v19  ;;  %v11316_v43 = vpop.f32.mrb[26].mxu0  ;;  %3357 = vrot.lane.b32.xlu1 %v3272_v14, %s12924_s23  ;;  %v1975_v44 = vpop.f32.mrb[27].mxu1 }
 0x248   : > { %v11979_v45 = vadd.f32 %v11316_v43, %v11180_v25  ;;  %v3152_v55 = vpop.f32.mrb[27].mxu0  ;;  %v3245_v3 = vadd.f32 %v11977_v21, %v13782_v46 }
 0x249   : > { %v3243_v57 = vadd.f32 %v11978_v41, %v13782_v46  ;;  %v11980_v58 = vadd.f32 %v3152_v55, %v1975_v44  ;;  %3359 = vrot.lane.b32.xlu0 %v3273_v31, %s12924_s23 }
 0x24a   : > { %v3246_v22 = vadd.f32 %v11979_v45, %v13782_v46  ;;  %v3277_v13 = vmax.f32 %v3245_v3, 0.0 }
 0x24b   : > { %v3275_v4 = vmax.f32 %v3243_v57, 0.0  ;;  %v3244_v5 = vadd.f32 %v11980_v58, %v13782_v46  ;;  %3361 = vrot.lane.b32.xlu1 %v3274_v56, %s12924_s23 }
 0x24c   : > { %v11183_v6 = vpop.f32.mrb[28].mxu1  ;;  %v3278_v36 = vmax.f32 %v3246_v22, 0.0 }
 0x24d   : > { %v3276_v23 = vmax.f32 %v3244_v5, 0.0  ;;  %v11319_v27 = vpop.f32.mrb[28].mxu0  ;;  %3363 = vrot.lane.b32.xlu0 %v3275_v4, %s12924_s23  ;;  %v1988_v42 = vpop.f32.mrb[29].mxu1 }
 0x24e   : > { %v11981_v61 = vadd.f32 %v11319_v27, %v11183_v6  ;;  %v11184_v38 = vpop.f32.mrb[30].mxu1  ;;  %v3165_v62 = vpop.f32.mrb[29].mxu0 }
 0x24f   : > { %v11982_v63 = vadd.f32 %v3165_v62, %v1988_v42  ;;  %v11320_v40 = vpop.f32.mrb[30].mxu0  ;;  %3365 = vrot.lane.b32.xlu1 %v3276_v23, %s12924_s23  ;;  %v1991_v17 = vpop.f32.mrb[31].mxu1 }
 0x250   : > { %v13842_v18 = vadd.f32 %v11981_v61, %v13782_v46  ;;  %v11983_v20 = vadd.f32 %v11320_v40, %v11184_v38  ;;  %v3168_v24 = vpop.f32.mrb[31].mxu0 }
 0x251   : > { %v3247_v37 = vadd.f32 %v11982_v63, %v13782_v46  ;;  %v11984_v39 = vadd.f32 %v3168_v24, %v1991_v17  ;;  %3367 = vrot.lane.b32.xlu0 %v3277_v13, %s12924_s23 }
 0x252   : > { %v13847_v53 = vadd.f32 %v11983_v20, %v13782_v46 }
 0x253   : > { %v3279_v1 = vmax.f32 %v3247_v37, 0.0  ;;  %v3248_v2 = vadd.f32 %v11984_v39, %v13782_v46  ;;  %3369 = vrot.lane.b32.xlu1 %v3278_v36, %s12924_s23  ;;  %v3643_v46 = vsel %vm3641_vm7, %v10109_v10, 0 }
 0x254   : > { %11322 = vmatpush3.bf16.msra.mxu1 %v3643_v46 }
 0x255   : > { %v3280_v9 = vmax.f32 %v3248_v2, 0.0  ;;  %3371 = vrot.lane.b32.xlu0 %v3279_v1, %s12924_s23  ;;  %12722 = vmatprep.subr.msk.bf16.mxu1 %vm3641_vm7, %v13863_v15 }
 0x257   : > { %3373 = vrot.lane.b32.xlu1 %v3280_v9, %s12924_s23 }
 0x259   : > { %3560 = vrot.lane.b32.xlu0 %v3526_v8, %s12925_s25 }
 0x28e   : > { %v3320_v48 = vpop.permute.xlu1 %3319 }
 0x28f   : > { %3415 = vst.msk [vmem:[#allocation3 + $0x31] sm:$0xff] %vm3412_vm8, %v3320_v48  ;;  %v3316_v11 = vpop.permute.xlu0 %3315 }
 0x290   : > { %3413 = vst.msk [vmem:[#allocation3 + $0x19] sm:$0xff] %vm3412_vm8, %v3316_v11 }
 0x292   : > { %v3322_v16 = vpop.permute.xlu1 %3321 }
 0x293   : > { %3416 = vst.msk [vmem:[#allocation3 + $0x39] sm:$0xff] %vm3412_vm8, %v3322_v16  ;;  %v3318_v28 = vpop.permute.xlu0 %3317 }
 0x294   : > { %3414 = vst.msk [vmem:[#allocation3 + $0x21] sm:$0xff] %vm3412_vm8, %v3318_v28 }
 0x296   : > { %v3498_v33 = vld [vmem:[#allocation3 + $0x31] sm:$0xff] }
 0x297   : > { %v3324_v29 = vpop.permute.xlu0 %3323  ;;  %v3496_v50 = vld [vmem:[#allocation3 + $0x19] sm:$0xff] }
 0x298   : > { %3417 = vst.msk [vmem:[#allocation3 + $0x49] sm:$0xff] %vm3412_vm8, %v3324_v29 }
 0x299   : > { %v3326_v30 = vpop.permute.xlu1 %3325 }
 0x29a   : > { %3418 = vst.msk [vmem:[#allocation3 + $0x51] sm:$0xff] %vm3412_vm8, %v3326_v30  ;;  %v3499_v34 = vld [vmem:[#allocation3 + $0x39] sm:$0xff] }
 0x29b   : > { %v3328_v35 = vpop.permute.xlu0 %3327  ;;  %v13872_v49 = vpack.c.bf16 %v3499_v34, %v3498_v33  ;;  %v3497_v32 = vld [vmem:[#allocation3 + $0x21] sm:$0xff] }
 0x29c   : > { %3419 = vst.msk [vmem:[#allocation3 + $0x61] sm:$0xff] %vm3412_vm8, %v3328_v35  ;;  %v13875_v47 = vpack.c.bf16 %v3497_v32, %v3496_v50  ;;  %v3445_v50 = vld [vmem:[#allocation3] sm:$0xff] }
 0x29d   : > { %v3330_v51 = vpop.permute.xlu1 %3329  ;;  %3564 = vrot.lane.b32.xlu0 %v13872_v49, %s12925_s25 }
 0x29e   : > { %3420 = vst.msk [vmem:[#allocation3 + $0x69] sm:$0xff] %vm3412_vm8, %v3330_v51  ;;  %3562 = vrot.lane.b32.xlu1 %v13875_v47, %s12925_s25 }
 0x29f   : > { %v3332_v52 = vpop.permute.xlu0 %3331  ;;  %v3500_v0 = vld [vmem:[#allocation3 + $0x49] sm:$0xff] }
 0x2a0   : > { %3421 = vst.msk [vmem:[#allocation3 + $0x79] sm:$0xff] %vm3412_vm8, %v3332_v52  ;;  %v3446_v52 = vld [vmem:[#allocation3 + $0x8] sm:$0xff] }
 0x2a1   : > { %v3334_v54 = vpop.permute.xlu1 %3333  ;;  %v3501_v7 = vld [vmem:[#allocation3 + $0x51] sm:$0xff] }
 0x2a2   : > { %3422 = vst.msk [vmem:[#allocation3 + $0x81] sm:$0xff] %vm3412_vm8, %v3334_v54  ;;  %v13884_v14 = vpack.c.bf16 %v3501_v7, %v3500_v0  ;;  %v3477_v0 = vpack.c.bf16 %v3446_v52, %v3445_v50 }
 0x2a3   : > { %v3336_v12 = vpop.permute.xlu0 %3335  ;;  %v3502_v21 = vld [vmem:[#allocation3 + $0x61] sm:$0xff] }
 0x2a4   : > { %3423 = vst.msk [vmem:[#allocation3 + $0x91] sm:$0xff] %vm3412_vm8, %v3336_v12  ;;  %3566 = vrot.lane.b32.xlu1 %v13884_v14, %s12925_s25 }
 0x2a5   : > { %v3338_v19 = vpop.permute.xlu1 %3337  ;;  %v3503_v25 = vld [vmem:[#allocation3 + $0x69] sm:$0xff] }
 0x2a6   : > { %3424 = vst.msk [vmem:[#allocation3 + $0x99] sm:$0xff] %vm3412_vm8, %v3338_v19  ;;  %v13890_v26 = vpack.c.bf16 %v3503_v25, %v3502_v21  ;;  %v3450_v21 = vld [vmem:[#allocation3 + $0x38] sm:$0xff]  ;;  %v3448_v25 = vld [vmem:[#allocation3 + $0x20] sm:$0xff] }
 0x2a7   : > { %v3340_v31 = vpop.permute.xlu0 %3339  ;;  %v3504_v43 = vld [vmem:[#allocation3 + $0x79] sm:$0xff] }
 0x2a8   : > { %3425 = vst.msk [vmem:[#allocation3 + $0xa9] sm:$0xff] %vm3412_vm8, %v3340_v31  ;;  %3568 = vrot.lane.b32.xlu0 %v13890_v26, %s12925_s25  ;;  %v3449_v31 = vld [vmem:[#allocation3 + $0x30] sm:$0xff] }
 0x2a9   : > { %v3342_v41 = vpop.permute.xlu1 %3341  ;;  %v3505_v44 = vld [vmem:[#allocation3 + $0x81] sm:$0xff] }
 0x2aa   : > { %3426 = vst.msk [vmem:[#allocation3 + $0xb1] sm:$0xff] %vm3412_vm8, %v3342_v41  ;;  %v13896_v45 = vpack.c.bf16 %v3505_v44, %v3504_v43  ;;  %v3447_v41 = vld [vmem:[#allocation3 + $0x18] sm:$0xff]  ;;  %v13958_v43 = vpack.c.bf16 %v3450_v21, %v3449_v31 }
 0x2ab   : > { %v3344_v55 = vpop.permute.xlu0 %3343  ;;  %v3506_v57 = vld [vmem:[#allocation3 + $0x91] sm:$0xff]  ;;  %v13960_v44 = vpack.c.bf16 %v3448_v25, %v3447_v41  ;;  %v4071_v41 = vld [vmem:[#allocation3 + $0x3a] sm:$0xff] }
 0x2ac   : > { %3427 = vst.msk [vmem:[#allocation3 + $0xc1] sm:$0xff] %vm3412_vm8, %v3344_v55  ;;  %3570 = vrot.lane.b32.xlu1 %v13896_v45, %s12925_s25  ;;  %v3454_v55 = vld [vmem:[#allocation3 + $0x68] sm:$0xff]  ;;  %v4070_v31 = vld [vmem:[#allocation3 + $0x32] sm:$0xff] }
 0x2ad   : > { %v3346_v56 = vpop.permute.xlu1 %3345  ;;  %v3507_v58 = vld [vmem:[#allocation3 + $0x99] sm:$0xff] }
 0x2ae   : > { %3428 = vst.msk [vmem:[#allocation3 + $0xc9] sm:$0xff] %vm3412_vm8, %v3346_v56  ;;  %v13902_v3 = vpack.c.bf16 %v3507_v58, %v3506_v57  ;;  %v3452_v56 = vld [vmem:[#allocation3 + $0x50] sm:$0xff]  ;;  %v3453_v57 = vld [vmem:[#allocation3 + $0x60] sm:$0xff]  ;;  %v3451_v58 = vld [vmem:[#allocation3 + $0x48] sm:$0xff] }
 0x2af   : > { %v3348_v4 = vpop.permute.xlu0 %3347  ;;  %v3508_v6 = vld [vmem:[#allocation3 + $0xa9] sm:$0xff] }
 0x2b0   : > { %3429 = vst.msk [vmem:[#allocation3 + $0xd9] sm:$0xff] %vm3412_vm8, %v3348_v4  ;;  %3572 = vrot.lane.b32.xlu0 %v13902_v3, %s12925_s25  ;;  %v13966_v4 = vpack.c.bf16 %v3454_v55, %v3453_v57  ;;  %v4068_v55 = vld [vmem:[#allocation3 + $0x1a] sm:$0xff]  ;;  %v14019_v57 = vpack.c.bf16 %v4071_v41, %v4070_v31 }
 0x2b1   : > { %v3350_v5 = vpop.permute.xlu1 %3349  ;;  %v3509_v22 = vld [vmem:[#allocation3 + $0xb1] sm:$0xff] }
 0x2b2   : > { %3430 = vst.msk [vmem:[#allocation3 + $0xe1] sm:$0xff] %vm3412_vm8, %v3350_v5  ;;  %v13908_v23 = vpack.c.bf16 %v3509_v22, %v3508_v6  ;;  %v13968_v5 = vpack.c.bf16 %v3452_v56, %v3451_v58  ;;  %v3458_v6 = vld [vmem:[#allocation3 + $0x98] sm:$0xff]  ;;  %v3456_v22 = vld [vmem:[#allocation3 + $0x80] sm:$0xff] }
 0x2b3   : > { %v3352_v27 = vpop.permute.xlu0 %3351  ;;  %v3510_v61 = vld [vmem:[#allocation3 + $0xc1] sm:$0xff] }
 0x2b4   : > { %3431 = vst.msk [vmem:[#allocation3 + $0xf1] sm:$0xff] %vm3412_vm8, %v3352_v27  ;;  %3574 = vrot.lane.b32.xlu1 %v13908_v23, %s12925_s25  ;;  %v3457_v27 = vld [vmem:[#allocation3 + $0x90] sm:$0xff]  ;;  %v4069_v56 = vld [vmem:[#allocation3 + $0x22] sm:$0xff] }
 0x2b5   : > { %v3354_v42 = vpop.permute.xlu1 %3353  ;;  %v3511_v38 = vld [vmem:[#allocation3 + $0xc9] sm:$0xff]  ;;  %v14021_v58 = vpack.c.bf16 %v4069_v56, %v4068_v55 }
 0x2b6   : > { %3432 = vst.msk [vmem:[#allocation3 + $0xf9] sm:$0xff] %vm3412_vm8, %v3354_v42  ;;  %v13914_v62 = vpack.c.bf16 %v3511_v38, %v3510_v61  ;;  %v3455_v42 = vld [vmem:[#allocation3 + $0x78] sm:$0xff]  ;;  %v13974_v61 = vpack.c.bf16 %v3458_v6, %v3457_v27  ;;  %v4072_v6 = vld [vmem:[#allocation3 + $0x4a] sm:$0xff] }
 0x2b7   : > { %v3356_v13 = vpop.permute.xlu0 %3355  ;;  %v3512_v40 = vld [vmem:[#allocation3 + $0xd9] sm:$0xff]  ;;  %v13976_v38 = vpack.c.bf16 %v3456_v22, %v3455_v42  ;;  %v4074_v22 = vld [vmem:[#allocation3 + $0x62] sm:$0xff]  ;;  %v4075_v27 = vld [vmem:[#allocation3 + $0x6a] sm:$0xff] }
 0x2b8   : > { %3433 = vst.msk [vmem:[#allocation3 + $0x109] sm:$0xff] %vm3412_vm8, %v3356_v13  ;;  %3576 = vrot.lane.b32.xlu0 %v13914_v62, %s12925_s25  ;;  %v3462_v13 = vld [vmem:[#allocation3 + $0xc8] sm:$0xff]  ;;  %v4073_v42 = vld [vmem:[#allocation3 + $0x52] sm:$0xff] }
 0x2b9   : > { %v3358_v63 = vpop.permute.xlu1 %3357  ;;  %v3513_v17 = vld [vmem:[#allocation3 + $0xe1] sm:$0xff] }
 0x2ba   : > { %3434 = vst.msk [vmem:[#allocation3 + $0x111] sm:$0xff] %vm3412_vm8, %v3358_v63  ;;  %v13920_v20 = vpack.c.bf16 %v3513_v17, %v3512_v40  ;;  %v3460_v63 = vld [vmem:[#allocation3 + $0xb0] sm:$0xff]  ;;  %v3461_v40 = vld [vmem:[#allocation3 + $0xc0] sm:$0xff]  ;;  %v3459_v17 = vld [vmem:[#allocation3 + $0xa8] sm:$0xff] }
 0x2bb   : > { %v3360_v24 = vpop.permute.xlu0 %3359  ;;  %v3514_v37 = vld [vmem:[#allocation3 + $0xf1] sm:$0xff] }
 0x2bc   : > { %3435 = vst.msk [vmem:[#allocation3 + $0x121] sm:$0xff] %vm3412_vm8, %v3360_v24  ;;  %3578 = vrot.lane.b32.xlu1 %v13920_v20, %s12925_s25  ;;  %v13982_v24 = vpack.c.bf16 %v3462_v13, %v3461_v40  ;;  %v14027_v13 = vpack.c.bf16 %v4075_v27, %v4074_v22  ;;  %v4076_v40 = vld [vmem:[#allocation3 + $0x7a] sm:$0xff] }
 0x2bd   : > { %v3362_v36 = vpop.permute.xlu1 %3361  ;;  %v3515_v39 = vld [vmem:[#allocation3 + $0xf9] sm:$0xff] }
 0x2be   : > { %3436 = vst.msk [vmem:[#allocation3 + $0x129] sm:$0xff] %vm3412_vm8, %v3362_v36  ;;  %v13926_v59 = vpack.c.bf16 %v3515_v39, %v3514_v37  ;;  %v13984_v36 = vpack.c.bf16 %v3460_v63, %v3459_v17  ;;  %v3466_v37 = vld [vmem:[#allocation3 + $0xf8] sm:$0xff]  ;;  %v3464_v39 = vld [vmem:[#allocation3 + $0xe0] sm:$0xff]  ;;  %v14029_v63 = vpack.c.bf16 %v4073_v42, %v4072_v6  ;;  %v3281_v42 = vmax.f32 %v13842_v18, 0.0 }
 0x2bf   : > { %v3364_v60 = vpop.permute.xlu0 %3363  ;;  %v3516_v2 = vld [vmem:[#allocation3 + $0x109] sm:$0xff]  ;;  %v4078_v17 = vld [vmem:[#allocation3 + $0x92] sm:$0xff]  ;;  %v3282_v18 = vmax.f32 %v13847_v53, 0.0 }
 0x2c0   : > { %3437 = vst.msk [vmem:[#allocation3 + $0x139] sm:$0xff] %vm3412_vm8, %v3364_v60  ;;  %3580 = vrot.lane.b32.xlu0 %v13926_v59, %s12925_s25  ;;  %v3465_v60 = vld [vmem:[#allocation3 + $0xf0] sm:$0xff] }
 0x2c1   : > { %v3366_v1 = vpop.permute.xlu1 %3365  ;;  %v3517_v9 = vld [vmem:[#allocation3 + $0x111] sm:$0xff] }
 0x2c2   : > { %3438 = vst.msk [vmem:[#allocation3 + $0x141] sm:$0xff] %vm3412_vm8, %v3366_v1  ;;  %v13932_v8 = vpack.c.bf16 %v3517_v9, %v3516_v2  ;;  %v3463_v1 = vld [vmem:[#allocation3 + $0xd8] sm:$0xff]  ;;  %v13990_v2 = vpack.c.bf16 %v3466_v37, %v3465_v60 }
 0x2c3   : > { %v3368_v10 = vpop.permute.xlu0 %3367  ;;  %v3518_v48 = vld [vmem:[#allocation3 + $0x121] sm:$0xff]  ;;  %v13992_v9 = vpack.c.bf16 %v3464_v39, %v3463_v1  ;;  %v4089_v55 = vld [vmem:[#allocation3 + $0x112] sm:$0xff] }
 0x2c4   : > { %3439 = vst.msk [vmem:[#allocation3 + $0x151] sm:$0xff] %vm3412_vm8, %v3368_v10  ;;  %3582 = vrot.lane.b32.xlu1 %v13932_v8, %s12925_s25  ;;  %v4079_v37 = vld [vmem:[#allocation3 + $0x9a] sm:$0xff]  ;;  %v4077_v39 = vld [vmem:[#allocation3 + $0x82] sm:$0xff] }
 0x2c5   : > { %v3370_v46 = vpop.permute.xlu1 %3369  ;;  %v3519_v11 = vld [vmem:[#allocation3 + $0x129] sm:$0xff]  ;;  %v14035_v60 = vpack.c.bf16 %v4079_v37, %v4078_v17  ;;  %v14037_v1 = vpack.c.bf16 %v4077_v39, %v4076_v40  ;;  %v3903_v17 = vsel %vm3641_vm7, %v13863_v15, 0 }
 0x2c6   : > { %3440 = vst.msk [vmem:[#allocation3 + $0x159] sm:$0xff] %vm3412_vm8, %v3370_v46  ;;  %v13938_v16 = vpack.c.bf16 %v3519_v11, %v3518_v48  ;;  %v3470_v10 = vld [vmem:[#allocation3 + $0x128] sm:$0xff]  ;;  %v3468_v46 = vld [vmem:[#allocation3 + $0x110] sm:$0xff]  ;;  %v3469_v48 = vld [vmem:[#allocation3 + $0x120] sm:$0xff] }
 0x2c7   : > { %v3372_v28 = vpop.permute.xlu0 %3371  ;;  %v3520_v30 = vld [vmem:[#allocation3 + $0x139] sm:$0xff]  ;;  %v3467_v11 = vld [vmem:[#allocation3 + $0x108] sm:$0xff] }
 0x2c8   : > { %3441 = vst.msk [vmem:[#allocation3 + $0x169] sm:$0xff] %vm3412_vm8, %v3372_v28  ;;  %3584 = vrot.lane.b32.xlu0 %v13938_v16, %s12925_s25  ;;  %v13998_v28 = vpack.c.bf16 %v3470_v10, %v3469_v48  ;;  %v4080_v10 = vld [vmem:[#allocation3 + $0xaa] sm:$0xff]  ;;  %v4090_v31 = vld [vmem:[#allocation3 + $0x122] sm:$0xff] }
 0x2c9   : > { %v3374_v29 = vpop.permute.xlu1 %3373  ;;  %v3521_v33 = vld [vmem:[#allocation3 + $0x141] sm:$0xff]  ;;  %v4083_v48 = vld [vmem:[#allocation3 + $0xca] sm:$0xff] }
 0x2ca   : > { %3442 = vst.msk [vmem:[#allocation3 + $0x171] sm:$0xff] %vm3412_vm8, %v3374_v29  ;;  %v13944_v34 = vpack.c.bf16 %v3521_v33, %v3520_v30  ;;  %v14000_v29 = vpack.c.bf16 %v3468_v46, %v3467_v11  ;;  %v3472_v33 = vld [vmem:[#allocation3 + $0x140] sm:$0xff]  ;;  %v4081_v11 = vld [vmem:[#allocation3 + $0xb2] sm:$0xff]  ;;  %v4091_v41 = vld [vmem:[#allocation3 + $0x12a] sm:$0xff] }
 0x2cb   : > { %v3561_v35 = vpop.permute.xlu0 %3560  ;;  %v3522_v32 = vld [vmem:[#allocation3 + $0x151] sm:$0xff]  ;;  %v4082_v46 = vld [vmem:[#allocation3 + $0xc2] sm:$0xff]  ;;  %v14059_v56 = vpack.c.bf16 %v4091_v41, %v4090_v31  ;;  %v4092_v22 = vld [vmem:[#allocation3 + $0x13a] sm:$0xff] }
 0x2cc   : > { %3586 = vrot.lane.b32.xlu1 %v13944_v34, %s12925_s25  ;;  %11323 = vmatprep.mubr.msk.bf16.mxu1 %vm3592_vm9, %v3561_v35  ;;  %v4066_v35 = vld [vmem:[#allocation3 + $0x2] sm:$0xff]  ;;  %v3473_v50 = vld [vmem:[#allocation3 + $0x150] sm:$0xff] }
 0x2cd   : > { %v3523_v51 = vld [vmem:[#allocation3 + $0x159] sm:$0xff]  ;;  %v4093_v27 = vld [vmem:[#allocation3 + $0x142] sm:$0xff] }
 0x2ce   : > { %v13949_v54 = vpack.c.bf16 %v3523_v51, %v3522_v32  ;;  %v3474_v30 = vld [vmem:[#allocation3 + $0x158] sm:$0xff]  ;;  %v4067_v51 = vld [vmem:[#allocation3 + $0xa] sm:$0xff]  ;;  %v14068_v40 = vpack.c.bf16 %v4093_v27, %v4092_v22 }
 0x2cf   : > { %v3524_v7 = vld [vmem:[#allocation3 + $0x169] sm:$0xff]  ;;  %v3471_v32 = vld [vmem:[#allocation3 + $0x138] sm:$0xff]  ;;  %v14006_v52 = vpack.c.bf16 %v3474_v30, %v3473_v50  ;;  %v14043_v30 = vpack.c.bf16 %v4083_v48, %v4082_v46 }
 0x2d0   : > { %3588 = vrot.lane.b32.xlu0 %v13949_v54, %s12925_s25  ;;  %v3475_v21 = vld [vmem:[#allocation3 + $0x168] sm:$0xff]  ;;  %v4086_v50 = vld [vmem:[#allocation3 + $0xf2] sm:$0xff]  ;;  %v4095_v39 = vld [vmem:[#allocation3 + $0x15a] sm:$0xff] }
 0x2d1   : > { %v3525_v12 = vld [vmem:[#allocation3 + $0x171] sm:$0xff] }
 0x2d2   : > { %v13953_v19 = vpack.c.bf16 %v3525_v12, %v3524_v7  ;;  %v3476_v7 = vld [vmem:[#allocation3 + $0x170] sm:$0xff]  ;;  %v4098_v12 = vpack.c.bf16 %v4067_v51, %v4066_v35  ;;  %v4084_v35 = vld [vmem:[#allocation3 + $0xda] sm:$0xff]  ;;  %v4085_v51 = vld [vmem:[#allocation3 + $0xe2] sm:$0xff] }
 0x2d3   : > { %v14014_v25 = vpack.c.bf16 %v3476_v7, %v3475_v21  ;;  %v4088_v21 = vld [vmem:[#allocation3 + $0x10a] sm:$0xff]  ;;  %v4094_v37 = vld [vmem:[#allocation3 + $0x152] sm:$0xff] }
 0x2d4   : > { %3822 = vrot.lane.b32.xlu0 %v3477_v0, %s12925_s25  ;;  %3590 = vrot.lane.b32.xlu1 %v13953_v19, %s12925_s25  ;;  %v14008_v0 = vpack.c.bf16 %v3472_v33, %v3471_v32  ;;  %v14045_v33 = vpack.c.bf16 %v4081_v11, %v4080_v10  ;;  %v4087_v32 = vld [vmem:[#allocation3 + $0xfa] sm:$0xff]  ;;  %v14061_v6 = vpack.c.bf16 %v4089_v55, %v4088_v21  ;;  %v4096_v11 = vld [vmem:[#allocation3 + $0x16a] sm:$0xff] }
 0x2d5   : > { %v14051_v7 = vpack.c.bf16 %v4087_v32, %v4086_v50  ;;  %v14078_v46 = vld [vmem:[%s15256_s4 + $0x8] sm:$0xf]  ;;  %v14083_v15 = vpack.c.bf16 %v4095_v39, %v4094_v37 }
 0x2d6   : > { %v4213_v22 = vsel %vm3641_vm7, %v14078_v46, 0 }
 0x2d8   : > { %3826 = vrot.lane.b32.xlu0 %v13958_v43, %s12925_s25  ;;  %3824 = vrot.lane.b32.xlu1 %v13960_v44, %s12925_s25 }
 0x2dc   : > { %3830 = vrot.lane.b32.xlu0 %v13966_v4, %s12925_s25  ;;  %3828 = vrot.lane.b32.xlu1 %v13968_v5, %s12925_s25 }
 0x2e0   : > { %3834 = vrot.lane.b32.xlu0 %v13974_v61, %s12925_s25  ;;  %3832 = vrot.lane.b32.xlu1 %v13976_v38, %s12925_s25 }
 0x2e4   : > { %3838 = vrot.lane.b32.xlu0 %v13982_v24, %s12925_s25  ;;  %3836 = vrot.lane.b32.xlu1 %v13984_v36, %s12925_s25 }
 0x2e8   : > { %3842 = vrot.lane.b32.xlu0 %v13990_v2, %s12925_s25  ;;  %3840 = vrot.lane.b32.xlu1 %v13992_v9, %s12925_s25 }
 0x2ec   : > { %3846 = vrot.lane.b32.xlu0 %v13998_v28, %s12925_s25  ;;  %3844 = vrot.lane.b32.xlu1 %v14000_v29, %s12925_s25 }
 0x2f0   : > { %3850 = vrot.lane.b32.xlu0 %v14006_v52, %s12925_s25  ;;  %3848 = vrot.lane.b32.xlu1 %v14008_v0, %s12925_s25 }
 0x2f4   : > { %4132 = vrot.lane.b32.xlu0 %v4098_v12, %s12925_s25  ;;  %3852 = vrot.lane.b32.xlu1 %v14014_v25, %s12925_s25  ;;  %v14053_v12 = vpack.c.bf16 %v4085_v51, %v4084_v35  ;;  %v4097_v35 = vld [vmem:[#allocation3 + $0x172] sm:$0xff] }
 0x2f5   : > { %v14090_v50 = vpack.c.bf16 %v4097_v35, %v4096_v11 }
 0x2f8   : > { %4136 = vrot.lane.b32.xlu0 %v14019_v57, %s12925_s25  ;;  %4134 = vrot.lane.b32.xlu1 %v14021_v58, %s12925_s25 }
 0x2fc   : > { %4140 = vrot.lane.b32.xlu0 %v14027_v13, %s12925_s25  ;;  %4138 = vrot.lane.b32.xlu1 %v14029_v63, %s12925_s25 }
 0x300   : > { %4144 = vrot.lane.b32.xlu0 %v14035_v60, %s12925_s25  ;;  %4142 = vrot.lane.b32.xlu1 %v14037_v1, %s12925_s25 }
 0x304   : > { %4148 = vrot.lane.b32.xlu0 %v14043_v30, %s12925_s25  ;;  %4146 = vrot.lane.b32.xlu1 %v14045_v33, %s12925_s25 }
 0x308   : > { %4152 = vrot.lane.b32.xlu0 %v14051_v7, %s12925_s25  ;;  %4150 = vrot.lane.b32.xlu1 %v14053_v12, %s12925_s25 }
 0x30c   : > { %4156 = vrot.lane.b32.xlu0 %v14059_v56, %s12925_s25  ;;  %4154 = vrot.lane.b32.xlu1 %v14061_v6, %s12925_s25 }
 0x30f   : > { %v3565_v48 = vpop.permute.xlu0 %3564 }
 0x310   : > { %3375 = vrot.lane.b32.xlu0 %v3281_v42, %s12924_s23  ;;  %4158 = vrot.lane.b32.xlu1 %v14068_v40, %s12925_s25  ;;  %v3563_v10 = vpop.permute.xlu1 %3562 }
 0x311   : > { %11324 = vmatmul.mubr.msk.bf16.vlgmr.msra.gmra.mrb[32].mxu1 %vm3592_vm9, %v3563_v10 }
 0x312   : > { %11356 = vmatpush3.bf16.msra.mxu1 %v3903_v17  ;;  %11327 = vmatprep.mubr.msk.bf16.mxu1 %vm3592_vm9, %v3565_v48 }
 0x313   : > { %12723 = vmatprep.subr.msk.bf16.mxu1 %vm3641_vm7, %v14078_v46 }
 0x314   : > { %4160 = vrot.lane.b32.xlu0 %v14083_v15, %s12925_s25  ;;  %3377 = vrot.lane.b32.xlu1 %v3282_v18, %s12924_s23 }
 0x316   : > { %v3567_v32 = vpop.permute.xlu1 %3566 }
 0x318   : > { %4474 = vrot.lane.b32.xlu0 %v13960_v44, %s12925_s25  ;;  %4162 = vrot.lane.b32.xlu1 %v14090_v50, %s12925_s25 }
 0x319   : > { %11328 = vmatmul.mubr.msk.bf16.gmra.mrb[36].mxu1 %vm3592_vm9, %v3567_v32 }
 0x31a   : > { %v3569_v53 = vpop.permute.xlu0 %3568 }
 0x31b   : > { %11331 = vmatprep.mubr.msk.bf16.mxu1 %vm3592_vm9, %v3569_v53 }
 0x31c   : > { %4478 = vrot.lane.b32.xlu0 %v13968_v5, %s12925_s25  ;;  %4476 = vrot.lane.b32.xlu1 %v13958_v43, %s12925_s25 }
 0x31e   : > { %v3571_v51 = vpop.permute.xlu1 %3570 }
 0x320   : > { %4482 = vrot.lane.b32.xlu0 %v13976_v38, %s12925_s25  ;;  %4480 = vrot.lane.b32.xlu1 %v13966_v4, %s12925_s25 }
 0x321   : > { %11332 = vmatmul.mubr.msk.bf16.gmra.mrb[40].mxu1 %vm3592_vm9, %v3571_v51 }
 0x322   : > { %v3573_v44 = vpop.permute.xlu0 %3572 }
 0x323   : > { %11335 = vmatprep.mubr.msk.bf16.mxu1 %vm3592_vm9, %v3573_v44 }
 0x324   : > { %4486 = vrot.lane.b32.xlu0 %v13984_v36, %s12925_s25  ;;  %4484 = vrot.lane.b32.xlu1 %v13974_v61, %s12925_s25 }
 0x326   : > { %v3575_v5 = vpop.permute.xlu1 %3574 }
 0x328   : > { %4490 = vrot.lane.b32.xlu0 %v13992_v9, %s12925_s25  ;;  %4488 = vrot.lane.b32.xlu1 %v13982_v24, %s12925_s25 }
 0x329   : > { %11336 = vmatmul.mubr.msk.bf16.gmra.mrb[44].mxu1 %vm3592_vm9, %v3575_v5 }
 0x32a   : > { %v3577_v38 = vpop.permute.xlu0 %3576 }
 0x32b   : > { %11339 = vmatprep.mubr.msk.bf16.mxu1 %vm3592_vm9, %v3577_v38  ;;  %v5441_v38 = vld [vmem:[#allocation3 + $0x78] sm:$0xff] }
 0x32c   : > { %4494 = vrot.lane.b32.xlu0 %v14000_v29, %s12925_s25  ;;  %4492 = vrot.lane.b32.xlu1 %v13990_v2, %s12925_s25 }
 0x32e   : > { %v3579_v36 = vpop.permute.xlu1 %3578 }
 0x330   : > { %4498 = vrot.lane.b32.xlu0 %v14008_v0, %s12925_s25  ;;  %4496 = vrot.lane.b32.xlu1 %v13998_v28, %s12925_s25 }
 0x331   : > { %11340 = vmatmul.mubr.msk.bf16.gmra.mrb[48].mxu1 %vm3592_vm9, %v3579_v36 }
 0x332   : > { %v3581_v9 = vpop.permute.xlu0 %3580 }
 0x333   : > { %11343 = vmatprep.mubr.msk.bf16.mxu1 %vm3592_vm9, %v3581_v9 }
 0x334   : > { %4502 = vrot.lane.b32.xlu0 %v14014_v25, %s12925_s25  ;;  %4500 = vrot.lane.b32.xlu1 %v14006_v52, %s12925_s25 }
 0x336   : > { %v3583_v29 = vpop.permute.xlu1 %3582 }
 0x338   : > { %4816 = vrot.lane.b32.xlu0 %v13875_v47, %s12925_s25 }
 0x339   : > { %11344 = vmatmul.mubr.msk.bf16.gmra.mrb[52].mxu1 %vm3592_vm9, %v3583_v29  ;;  %v5446_v29 = vld [vmem:[#allocation3 + $0xb0] sm:$0xff] }
 0x33a   : > { %v3585_v0 = vpop.permute.xlu0 %3584 }
 0x33b   : > { %11347 = vmatprep.mubr.msk.bf16.mxu1 %vm3592_vm9, %v3585_v0 }
 0x33c   : > { %4820 = vrot.lane.b32.xlu0 %v13884_v14, %s12925_s25 }
 0x33e   : > { %v3587_v21 = vpop.permute.xlu1 %3586 }
 0x340   : > { %4824 = vrot.lane.b32.xlu0 %v13896_v45, %s12925_s25 }
 0x341   : > { %11348 = vmatmul.mubr.msk.bf16.gmra.mrb[56].mxu1 %vm3592_vm9, %v3587_v21  ;;  %v5445_v21 = vld [vmem:[#allocation3 + $0xa8] sm:$0xff] }
 0x342   : > { %v3589_v25 = vpop.permute.xlu0 %3588 }
 0x343   : > { %11351 = vmatprep.mubr.msk.bf16.mxu1 %vm3592_vm9, %v3589_v25  ;;  %v5472_v25 = vpack.c.bf16 %v5446_v29, %v5445_v21  ;;  %v6129_v21 = vld [vmem:[#allocation3 + $0xaa] sm:$0xff] }
 0x344   : > { %4828 = vrot.lane.b32.xlu0 %v13908_v23, %s12925_s25  ;;  %v14157_v23 = vld [vmem:[%s15256_s4 + $0xc] sm:$0xf] }
 0x345   : > { %v4555_v44 = vsel %vm3641_vm7, %v14157_v23, 0 }
 0x346   : > { %v3823_v47 = vpop.permute.xlu0 %3822  ;;  %v3591_v31 = vpop.permute.xlu1 %3590 }
 0x348   : > { %4832 = vrot.lane.b32.xlu0 %v13920_v20, %s12925_s25 }
 0x349   : > { %11352 = vmatmul.mubr.msk.bf16.gmra.mrb[60].mxu1 %vm3592_vm9, %v3591_v31  ;;  %v5449_v31 = vld [vmem:[#allocation3 + $0xd8] sm:$0xff] }
 0x34a   : > { %v3827_v14 = vpop.permute.xlu0 %3826  ;;  %v3825_v41 = vpop.permute.xlu1 %3824  ;;  %11357 = vmatprep.mubr.msk.bf16.mxu1 %vm3592_vm9, %v3823_v47  ;;  %v5450_v47 = vld [vmem:[#allocation3 + $0xe0] sm:$0xff] }
 0x34c   : > { %4836 = vrot.lane.b32.xlu0 %v13932_v8, %s12925_s25 }
 0x34e   : > { %v3831_v45 = vpop.permute.xlu0 %3830  ;;  %v3829_v55 = vpop.permute.xlu1 %3828 }
 0x350   : > { %4840 = vrot.lane.b32.xlu0 %v13944_v34, %s12925_s25 }
 0x351   : > { %11358 = vmatmul.mubr.msk.bf16.vlgmr.msra.gmra.mrb[32].mxu1 %vm3592_vm9, %v3825_v41 }
 0x352   : > { %11390 = vmatpush3.bf16.msra.mxu1 %v4213_v22  ;;  %v3835_v20 = vpop.permute.xlu0 %3834  ;;  %11361 = vmatprep.mubr.msk.bf16.mxu1 %vm3592_vm9, %v3827_v14  ;;  %v3833_v8 = vpop.permute.xlu1 %3832  ;;  %v5474_v14 = vpack.c.bf16 %v5450_v47, %v5449_v31  ;;  %v5453_v22 = vld [vmem:[#allocation3 + $0x108] sm:$0xff] }
 0x353   : > { %12724 = vmatprep.subr.msk.bf16.mxu1 %vm3641_vm7, %v14157_v23 }
 0x354   : > { %4844 = vrot.lane.b32.xlu0 %v13953_v19, %s12925_s25 }
 0x356   : > { %v3839_v27 = vpop.permute.xlu0 %3838  ;;  %v3837_v34 = vpop.permute.xlu1 %3836 }
 0x358   : > { %5158 = vrot.lane.b32.xlu0 %v14021_v58, %s12925_s25 }
 0x359   : > { %11362 = vmatmul.mubr.msk.bf16.gmra.mrb[36].mxu1 %vm3592_vm9, %v3829_v55 }
 0x35a   : > { %v3843_v42 = vpop.permute.xlu0 %3842  ;;  %11365 = vmatprep.mubr.msk.bf16.mxu1 %vm3592_vm9, %v3831_v45  ;;  %v3841_v17 = vpop.permute.xlu1 %3840  ;;  %v5454_v45 = vld [vmem:[#allocation3 + $0x110] sm:$0xff] }
 0x35b   : > { %v5476_v23 = vpack.c.bf16 %v5454_v45, %v5453_v22  ;;  %v6137_v22 = vld [vmem:[#allocation3 + $0x10a] sm:$0xff] }
 0x35c   : > { %5162 = vrot.lane.b32.xlu0 %v14029_v63, %s12925_s25 }
 0x35e   : > { %v3847_v37 = vpop.permute.xlu0 %3846  ;;  %v3845_v39 = vpop.permute.xlu1 %3844 }
 0x360   : > { %5166 = vrot.lane.b32.xlu0 %v14037_v1, %s12925_s25 }
 0x361   : > { %11366 = vmatmul.mubr.msk.bf16.gmra.mrb[40].mxu1 %vm3592_vm9, %v3833_v8  ;;  %v5457_v8 = vld [vmem:[#allocation3 + $0x138] sm:$0xff] }
 0x362   : > { %v3851_v19 = vpop.permute.xlu0 %3850  ;;  %11369 = vmatprep.mubr.msk.bf16.mxu1 %vm3592_vm9, %v3835_v20  ;;  %v3849_v58 = vpop.permute.xlu1 %3848  ;;  %v5458_v20 = vld [vmem:[#allocation3 + $0x140] sm:$0xff] }
 0x364   : > { %5170 = vrot.lane.b32.xlu0 %v14045_v33, %s12925_s25 }
 0x366   : > { %v4133_v10 = vpop.permute.xlu0 %4132  ;;  %v3853_v46 = vpop.permute.xlu1 %3852 }
 0x368   : > { %5174 = vrot.lane.b32.xlu0 %v14053_v12, %s12925_s25 }
 0x369   : > { %11370 = vmatmul.mubr.msk.bf16.gmra.mrb[44].mxu1 %vm3592_vm9, %v3837_v34 }
 0x36a   : > { %v4137_v63 = vpop.permute.xlu0 %4136  ;;  %11373 = vmatprep.mubr.msk.bf16.mxu1 %vm3592_vm9, %v3839_v27  ;;  %v4135_v1 = vpop.permute.xlu1 %4134  ;;  %v5478_v27 = vpack.c.bf16 %v5458_v20, %v5457_v8 }
 0x36c   : > { %5178 = vrot.lane.b32.xlu0 %v14061_v6, %s12925_s25 }
 0x36e   : > { %v4141_v48 = vpop.permute.xlu0 %4140  ;;  %v4139_v18 = vpop.permute.xlu1 %4138 }
 0x370   : > { %5182 = vrot.lane.b32.xlu0 %v14068_v40, %s12925_s25 }
 0x371   : > { %11374 = vmatmul.mubr.msk.bf16.gmra.mrb[48].mxu1 %vm3592_vm9, %v3841_v17 }
 0x372   : > { %v4145_v33 = vpop.permute.xlu0 %4144  ;;  %11377 = vmatprep.mubr.msk.bf16.mxu1 %vm3592_vm9, %v3843_v42  ;;  %v4143_v12 = vpop.permute.xlu1 %4142  ;;  %v5462_v42 = vld [vmem:[#allocation3 + $0x170] sm:$0xff] }
 0x374   : > { %5186 = vrot.lane.b32.xlu0 %v14090_v50, %s12925_s25 }
 0x376   : > { %v4149_v11 = vpop.permute.xlu0 %4148  ;;  %v4147_v35 = vpop.permute.xlu1 %4146 }
 0x378   : > { %5501 = vrot.lane.b32.xlu0 %v13958_v43, %s12925_s25 }
 0x379   : > { %11378 = vmatmul.mubr.msk.bf16.gmra.mrb[52].mxu1 %vm3592_vm9, %v3845_v39  ;;  %v5465_v39 = vld [vmem:[#allocation3 + $0x198] sm:$0xff] }
 0x37a   : > { %v4153_v6 = vpop.permute.xlu0 %4152  ;;  %11381 = vmatprep.mubr.msk.bf16.mxu1 %vm3592_vm9, %v3847_v37  ;;  %v4151_v40 = vpop.permute.xlu1 %4150  ;;  %v5461_v37 = vld [vmem:[#allocation3 + $0x168] sm:$0xff] }
 0x37c   : > { %5505 = vrot.lane.b32.xlu0 %v13966_v4, %s12925_s25 }
 0x37e   : > { %v4157_v32 = vpop.permute.xlu0 %4156  ;;  %v4155_v53 = vpop.permute.xlu1 %4154 }
 0x380   : > { %5509 = vrot.lane.b32.xlu0 %v13974_v61, %s12925_s25 }
 0x381   : > { %11382 = vmatmul.mubr.msk.bf16.gmra.mrb[56].mxu1 %vm3592_vm9, %v3849_v58  ;;  %v5480_v58 = vpack.c.bf16 %v5462_v42, %v5461_v37  ;;  %v6145_v37 = vld [vmem:[#allocation3 + $0x16a] sm:$0xff] }
 0x382   : > { %v3376_v50 = vpop.permute.xlu0 %3375  ;;  %11385 = vmatprep.mubr.msk.bf16.mxu1 %vm3592_vm9, %v3851_v19  ;;  %v4159_v43 = vpop.permute.xlu1 %4158  ;;  %v5466_v19 = vld [vmem:[#allocation3 + $0x1a0] sm:$0xff] }
 0x383   : > { %3443 = vst.msk [vmem:[#allocation3 + $0x181] sm:$0xff] %vm3412_vm8, %v3376_v50  ;;  %v5792_v50 = vld [vmem:[#allocation3 + $0xe1] sm:$0xff] }
 0x384   : > { %5513 = vrot.lane.b32.xlu0 %v13982_v24, %s12925_s25  ;;  %v10176_v24 = vld [vmem:[%s15256_s4 + $0x10] sm:$0xf] }
 0x386   : > { %v3378_v51 = vpop.permute.xlu1 %3377 }
 0x387   : > { %3444 = vst.msk [vmem:[#allocation3 + $0x189] sm:$0xff] %vm3412_vm8, %v3378_v51 }
 0x388   : > { %5517 = vrot.lane.b32.xlu0 %v13990_v2, %s12925_s25 }
 0x389   : > { %11386 = vmatmul.mubr.msk.bf16.gmra.mrb[60].mxu1 %vm3592_vm9, %v3853_v46 }
 0x38a   : > { %11391 = vmatprep.mubr.msk.bf16.mxu1 %vm3592_vm9, %v4133_v10  ;;  %v4438_v4 = vld [vmem:[#allocation3 + $0x180] sm:$0xff]  ;;  %v5482_v10 = vpack.c.bf16 %v5466_v19, %v5465_v39  ;;  %v6146_v39 = vld [vmem:[#allocation3 + $0x172] sm:$0xff] }
 0x38c   : > { %5521 = vrot.lane.b32.xlu0 %v13998_v28, %s12925_s25 }
 0x38e   : > { %v4439_v61 = vld [vmem:[#allocation3 + $0x188] sm:$0xff] }
 0x38f   : > { %v4455_v5 = vpack.c.bf16 %v4439_v61, %v4438_v4  ;;  %v5123_v2 = vld [vmem:[#allocation3 + $0x18a] sm:$0xff] }
 0x390   : > { %5525 = vrot.lane.b32.xlu0 %v14006_v52, %s12925_s25  ;;  %v4897_v52 = vsel %vm3641_vm7, %v10176_v24, 0  ;;  %v5796_v61 = vld [vmem:[#allocation3 + $0x111] sm:$0xff] }
 0x391   : > { %11392 = vmatmul.mubr.msk.bf16.vlgmr.msra.gmra.mrb[32].mxu1 %vm3592_vm9, %v4135_v1  ;;  %4504 = vrot.lane.b32.xlu1 %v4455_v5, %s12925_s25 }
 0x392   : > { %11424 = vmatpush3.bf16.msra.mxu1 %v4555_v44  ;;  %11395 = vmatprep.mubr.msk.bf16.mxu1 %vm3592_vm9, %v4137_v63  ;;  %v5780_v63 = vld [vmem:[#allocation3 + $0x51] sm:$0xff] }
 0x393   : > { %12725 = vmatprep.subr.msk.bf16.mxu1 %vm3641_vm7, %v10176_v24 }
 0x394   : > { %5529 = vrot.lane.b32.xlu0 %v4455_v5, %s12925_s25  ;;  %v5795_v5 = vld [vmem:[#allocation3 + $0x109] sm:$0xff] }
 0x395   : > { %4818 = vrot.lane.b32.xlu1 %v13872_v49, %s12925_s25  ;;  %v5818_v24 = vpack.c.bf16 %v5796_v61, %v5795_v5 }
 0x398   : > { %5843 = vrot.lane.b32.xlu0 %v13872_v49, %s12925_s25  ;;  %v4781_v49 = vld [vmem:[#allocation3 + $0x189] sm:$0xff] }
 0x399   : > { %11396 = vmatmul.mubr.msk.bf16.gmra.mrb[36].mxu1 %vm3592_vm9, %v4139_v18  ;;  %4822 = vrot.lane.b32.xlu1 %v13890_v26, %s12925_s25 }
 0x39a   : > { %11399 = vmatprep.mubr.msk.bf16.mxu1 %vm3592_vm9, %v4141_v48  ;;  %v5779_v48 = vld [vmem:[#allocation3 + $0x49] sm:$0xff] }
 0x39b   : > { %v5810_v18 = vpack.c.bf16 %v5780_v63, %v5779_v48 }
 0x39c   : > { %5847 = vrot.lane.b32.xlu0 %v13890_v26, %s12925_s25  ;;  %v4780_v26 = vld [vmem:[#allocation3 + $0x181] sm:$0xff] }
 0x39d   : > { %4826 = vrot.lane.b32.xlu1 %v13902_v3, %s12925_s25 }
 0x3a0   : > { %5851 = vrot.lane.b32.xlu0 %v13902_v3, %s12925_s25  ;;  %v4797_v3 = vpack.c.bf16 %v4781_v49, %v4780_v26  ;;  %v5800_v49 = vld [vmem:[#allocation3 + $0x141] sm:$0xff]  ;;  %v5799_v26 = vld [vmem:[#allocation3 + $0x139] sm:$0xff] }
 0x3a1   : > { %11400 = vmatmul.mubr.msk.bf16.gmra.mrb[40].mxu1 %vm3592_vm9, %v4143_v12  ;;  %4830 = vrot.lane.b32.xlu1 %v13914_v62, %s12925_s25  ;;  %v5783_v12 = vld [vmem:[#allocation3 + $0x79] sm:$0xff] }
 0x3a2   : > { %11403 = vmatprep.mubr.msk.bf16.mxu1 %vm3592_vm9, %v4145_v33  ;;  %v5784_v33 = vld [vmem:[#allocation3 + $0x81] sm:$0xff] }
 0x3a4   : > { %5855 = vrot.lane.b32.xlu0 %v13914_v62, %s12925_s25  ;;  %v4161_v62 = vpop.permute.xlu0 %4160 }
 0x3a5   : > { %4834 = vrot.lane.b32.xlu1 %v13926_v59, %s12925_s25 }
 0x3a8   : > { %5859 = vrot.lane.b32.xlu0 %v13926_v59, %s12925_s25  ;;  %v4163_v59 = vpop.permute.xlu1 %4162 }
 0x3a9   : > { %11404 = vmatmul.mubr.msk.bf16.gmra.mrb[44].mxu1 %vm3592_vm9, %v4147_v35  ;;  %4838 = vrot.lane.b32.xlu1 %v13938_v16, %s12925_s25 }
 0x3aa   : > { %11407 = vmatprep.mubr.msk.bf16.mxu1 %vm3592_vm9, %v4149_v11  ;;  %v5812_v11 = vpack.c.bf16 %v5784_v33, %v5783_v12 }
 0x3ac   : > { %5863 = vrot.lane.b32.xlu0 %v13938_v16, %s12925_s25  ;;  %v4475_v16 = vpop.permute.xlu0 %4474 }
 0x3ad   : > { %4842 = vrot.lane.b32.xlu1 %v13949_v54, %s12925_s25 }
 0x3b0   : > { %5867 = vrot.lane.b32.xlu0 %v13949_v54, %s12925_s25  ;;  %v5122_v54 = vld [vmem:[#allocation3 + $0x182] sm:$0xff] }
 0x3b1   : > { %11408 = vmatmul.mubr.msk.bf16.gmra.mrb[48].mxu1 %vm3592_vm9, %v4151_v40  ;;  %4846 = vrot.lane.b32.xlu1 %v4797_v3, %s12925_s25  ;;  %v5139_v28 = vpack.c.bf16 %v5123_v2, %v5122_v54  ;;  %v5803_v54 = vld [vmem:[#allocation3 + $0x169] sm:$0xff]  ;;  %v5807_v2 = vld [vmem:[#allocation3 + $0x199] sm:$0xff] }
 0x3b2   : > { %11411 = vmatprep.mubr.msk.bf16.mxu1 %vm3592_vm9, %v4153_v6  ;;  %v5788_v6 = vld [vmem:[#allocation3 + $0xb1] sm:$0xff] }
 0x3b4   : > { %5871 = vrot.lane.b32.xlu0 %v4797_v3, %s12925_s25  ;;  %v5820_v3 = vpack.c.bf16 %v5800_v49, %v5799_v26 }
 0x3b5   : > { %5160 = vrot.lane.b32.xlu1 %v14019_v57, %s12925_s25 }
 0x3b8   : > { %6185 = vrot.lane.b32.xlu0 %v14019_v57, %s12925_s25  ;;  %v4477_v57 = vpop.permute.xlu1 %4476 }
 0x3b9   : > { %11412 = vmatmul.mubr.msk.bf16.gmra.mrb[52].mxu1 %vm3592_vm9, %v4155_v53  ;;  %5164 = vrot.lane.b32.xlu1 %v14027_v13, %s12925_s25 }
 0x3ba   : > { %11415 = vmatprep.mubr.msk.bf16.mxu1 %vm3592_vm9, %v4157_v32  ;;  %v5787_v32 = vld [vmem:[#allocation3 + $0xa9] sm:$0xff] }
 0x3bb   : > { %v5814_v53 = vpack.c.bf16 %v5788_v6, %v5787_v32  ;;  %v10227_v6 = vld [vmem:[%s15256_s4 + $0x1c] sm:$0xf]  ;;  %v6149_v32 = vld [vmem:[#allocation3 + $0x19a] sm:$0xff] }
 0x3bc   : > { %6189 = vrot.lane.b32.xlu0 %v14027_v13, %s12925_s25  ;;  %v5438_v13 = vld [vmem:[#allocation3 + $0x50] sm:$0xff]  ;;  %v4481_v9 = vpop.permute.xlu1 %4480 }
 0x3bd   : > { %5168 = vrot.lane.b32.xlu1 %v14035_v60, %s12925_s25 }
 0x3c0   : > { %6193 = vrot.lane.b32.xlu0 %v14035_v60, %s12925_s25  ;;  %v14297_v60 = vld [vmem:[%s15256_s4 + $0x14] sm:$0xf]  ;;  %v4485_v41 = vpop.permute.xlu1 %4484 }
 0x3c1   : > { %11416 = vmatmul.mubr.msk.bf16.gmra.mrb[56].mxu1 %vm3592_vm9, %v4159_v43  ;;  %5172 = vrot.lane.b32.xlu1 %v14043_v30, %s12925_s25  ;;  %v5791_v43 = vld [vmem:[#allocation3 + $0xd9] sm:$0xff] }
 0x3c2   : > { %11419 = vmatprep.mubr.msk.bf16.mxu1 %vm3592_vm9, %v4161_v62  ;;  %v5816_v51 = vpack.c.bf16 %v5792_v50, %v5791_v43 }
 0x3c4   : > { %6197 = vrot.lane.b32.xlu0 %v14043_v30, %s12925_s25  ;;  %v4479_v30 = vpop.permute.xlu0 %4478  ;;  %v4489_v34 = vpop.permute.xlu1 %4488 }
 0x3c5   : > { %5176 = vrot.lane.b32.xlu1 %v14051_v7, %s12925_s25 }
 0x3c8   : > { %6201 = vrot.lane.b32.xlu0 %v14051_v7, %s12925_s25  ;;  %v5437_v7 = vld [vmem:[#allocation3 + $0x48] sm:$0xff]  ;;  %v4483_v0 = vpop.permute.xlu0 %4482  ;;  %v4493_v46 = vpop.permute.xlu1 %4492 }
 0x3c9   : > { %5180 = vrot.lane.b32.xlu1 %v14059_v56, %s12925_s25  ;;  %11420 = vmatmul.mubr.msk.bf16.gmra.mrb[60].mxu1 %vm3592_vm9, %v4163_v59  ;;  %v5804_v59 = vld [vmem:[#allocation3 + $0x171] sm:$0xff] }
 0x3ca   : > { %11425 = vmatprep.mubr.msk.bf16.mxu1 %vm3592_vm9, %v4475_v16 }
 0x3cc   : > { %6205 = vrot.lane.b32.xlu0 %v14059_v56, %s12925_s25  ;;  %v5468_v56 = vpack.c.bf16 %v5438_v13, %v5437_v7  ;;  %v4487_v55 = vpop.permute.xlu0 %4486  ;;  %v4497_v35 = vpop.permute.xlu1 %4496  ;;  %v5239_v13 = vsel %vm3641_vm7, %v14297_v60, 0  ;;  %v6121_v7 = vld [vmem:[#allocation3 + $0x4a] sm:$0xff] }
 0x3cd   : > { %5184 = vrot.lane.b32.xlu1 %v14083_v15, %s12925_s25 }
 0x3d0   : > { %6209 = vrot.lane.b32.xlu0 %v14083_v15, %s12925_s25  ;;  %v5442_v15 = vld [vmem:[#allocation3 + $0x80] sm:$0xff]  ;;  %v4491_v17 = vpop.permute.xlu0 %4490  ;;  %v4501_v4 = vpop.permute.xlu1 %4500 }
 0x3d1   : > { %5188 = vrot.lane.b32.xlu1 %v5139_v28, %s12925_s25  ;;  %11426 = vmatmul.mubr.msk.bf16.vlgmr.msra.gmra.mrb[32].mxu1 %vm3592_vm9, %v4477_v57  ;;  %v5470_v36 = vpack.c.bf16 %v5442_v15, %v5441_v38  ;;  %v10210_v15 = vld [vmem:[%s15256_s4 + $0x18] sm:$0xf] }
 0x3d2   : > { %11458 = vmatpush3.bf16.msra.mxu1 %v4897_v52  ;;  %11429 = vmatprep.mubr.msk.bf16.mxu1 %vm3592_vm9, %v4479_v30  ;;  %v5822_v52 = vpack.c.bf16 %v5804_v59, %v5803_v54 }
 0x3d3   : > { %12726 = vmatprep.subr.msk.bf16.mxu1 %vm3641_vm7, %v14297_v60  ;;  %v6126_v60 = vld [vmem:[#allocation3 + $0x82] sm:$0xff] }
 0x3d4   : > { %6213 = vrot.lane.b32.xlu0 %v5139_v28, %s12925_s25  ;;  %v4495_v1 = vpop.permute.xlu0 %4494  ;;  %v5808_v28 = vld [vmem:[#allocation3 + $0x1a1] sm:$0xff] }
 0x3d5   : > { %5503 = vrot.lane.b32.xlu1 %v5468_v56, %s12925_s25  ;;  %v5824_v57 = vpack.c.bf16 %v5808_v28, %v5807_v2  ;;  %v6122_v56 = vld [vmem:[#allocation3 + $0x52] sm:$0xff]  ;;  %v5924_v2 = vsel %vm3641_vm7, %v10227_v6, 0 }
 0x3d8   : > { %v4499_v40 = vpop.permute.xlu0 %4498 }
 0x3d9   : > { %5507 = vrot.lane.b32.xlu1 %v5470_v36, %s12925_s25  ;;  %11430 = vmatmul.mubr.msk.bf16.gmra.mrb[36].mxu1 %vm3592_vm9, %v4481_v9  ;;  %v6152_v36 = vpack.c.bf16 %v6122_v56, %v6121_v7  ;;  %v6125_v9 = vld [vmem:[#allocation3 + $0x7a] sm:$0xff] }
 0x3da   : > { %11433 = vmatprep.mubr.msk.bf16.mxu1 %vm3592_vm9, %v4483_v0  ;;  %v6154_v29 = vpack.c.bf16 %v6126_v60, %v6125_v9 }
 0x3dc   : > { %v4503_v44 = vpop.permute.xlu0 %4502 }
 0x3dd   : > { %5511 = vrot.lane.b32.xlu1 %v5472_v25, %s12925_s25  ;;  %v6130_v25 = vld [vmem:[#allocation3 + $0xb2] sm:$0xff] }
 0x3de   : > { %v6156_v31 = vpack.c.bf16 %v6130_v25, %v6129_v21 }
 0x3e0   : > { %v4817_v16 = vpop.permute.xlu0 %4816 }
 0x3e1   : > { %5515 = vrot.lane.b32.xlu1 %v5474_v14, %s12925_s25  ;;  %11434 = vmatmul.mubr.msk.bf16.gmra.mrb[40].mxu1 %vm3592_vm9, %v4485_v41  ;;  %v6133_v14 = vld [vmem:[#allocation3 + $0xda] sm:$0xff]  ;;  %v6134_v41 = vld [vmem:[#allocation3 + $0xe2] sm:$0xff] }
 0x3e2   : > { %11437 = vmatprep.mubr.msk.bf16.mxu1 %vm3592_vm9, %v4487_v55  ;;  %v6158_v45 = vpack.c.bf16 %v6134_v41, %v6133_v14  ;;  %v12808_v14 = vld [vmem:[%s15258_s6 + $0x14] ss:$0 sps:$4 sm:$0xff]  }
 0x3e3   : > { %v6958_v41 = vsel %vm3641_vm7, %v12808_v14, 0 }
 0x3e4   : > { %v4821_v38 = vpop.permute.xlu0 %4820 }
 0x3e5   : > { %5519 = vrot.lane.b32.xlu1 %v5476_v23, %s12925_s25  ;;  %v6138_v23 = vld [vmem:[#allocation3 + $0x112] sm:$0xff] }
 0x3e6   : > { %v6160_v8 = vpack.c.bf16 %v6138_v23, %v6137_v22 }
 0x3e8   : > { %v4825_v47 = vpop.permute.xlu0 %4824 }
 0x3e9   : > { %5523 = vrot.lane.b32.xlu1 %v5478_v27, %s12925_s25  ;;  %11438 = vmatmul.mubr.msk.bf16.gmra.mrb[44].mxu1 %vm3592_vm9, %v4489_v34  ;;  %v6141_v27 = vld [vmem:[#allocation3 + $0x13a] sm:$0xff]  ;;  %v6142_v34 = vld [vmem:[#allocation3 + $0x142] sm:$0xff] }
 0x3ea   : > { %11441 = vmatprep.mubr.msk.bf16.mxu1 %vm3592_vm9, %v4491_v17  ;;  %v6162_v42 = vpack.c.bf16 %v6142_v34, %v6141_v27 }
 0x3ec   : > { %v4829_v20 = vpop.permute.xlu0 %4828 }
 0x3ed   : > { %5527 = vrot.lane.b32.xlu1 %v5480_v58, %s12925_s25  ;;  %v6164_v58 = vpack.c.bf16 %v6146_v39, %v6145_v37 }
 0x3f0   : > { %v4833_v19 = vpop.permute.xlu0 %4832 }
 0x3f1   : > { %5531 = vrot.lane.b32.xlu1 %v5482_v10, %s12925_s25  ;;  %11442 = vmatmul.mubr.msk.bf16.gmra.mrb[48].mxu1 %vm3592_vm9, %v4493_v46 }
 0x3f2   : > { %11445 = vmatprep.mubr.msk.bf16.mxu1 %vm3592_vm9, %v4495_v1 }
 0x3f4   : > { %v4837_v46 = vpop.permute.xlu0 %4836 }
 0x3f5   : > { %5845 = vrot.lane.b32.xlu1 %v5810_v18, %s12925_s25 }
 0x3f8   : > { %v4841_v1 = vpop.permute.xlu0 %4840 }
 0x3f9   : > { %5849 = vrot.lane.b32.xlu1 %v5812_v11, %s12925_s25  ;;  %11446 = vmatmul.mubr.msk.bf16.gmra.mrb[52].mxu1 %vm3592_vm9, %v4497_v35  ;;  %v5582_v11 = vsel %vm3641_vm7, %v10210_v15, 0 }
 0x3fa   : > { %11449 = vmatprep.mubr.msk.bf16.mxu1 %vm3592_vm9, %v4499_v40 }
 0x3fc   : > { %v4845_v18 = vpop.permute.xlu0 %4844 }
 0x3fd   : > { %5853 = vrot.lane.b32.xlu1 %v5814_v53, %s12925_s25  ;;  %v6150_v53 = vld [vmem:[#allocation3 + $0x1a2] sm:$0xff] }
 0x3fe   : > { %v6166_v50 = vpack.c.bf16 %v6150_v53, %v6149_v32 }
 0x400   : > { %v5159_v12 = vpop.permute.xlu0 %5158 }
 0x401   : > { %5857 = vrot.lane.b32.xlu1 %v5816_v51, %s12925_s25  ;;  %11450 = vmatmul.mubr.msk.bf16.gmra.mrb[56].mxu1 %vm3592_vm9, %v4501_v4 }
 0x402   : > { %11453 = vmatprep.mubr.msk.bf16.mxu1 %vm3592_vm9, %v4503_v44 }
 0x403   : > { %v4505_v62 = vpop.permute.xlu1 %4504 }
 0x404   : > { %v5163_v40 = vpop.permute.xlu0 %5162 }
 0x405   : > { %5861 = vrot.lane.b32.xlu1 %v5818_v24, %s12925_s25 }
 0x407   : > { %v4819_v30 = vpop.permute.xlu1 %4818 }
 0x408   : > { %v5167_v51 = vpop.permute.xlu0 %5166 }
 0x409   : > { %5865 = vrot.lane.b32.xlu1 %v5820_v3, %s12925_s25  ;;  %11454 = vmatmul.mubr.msk.bf16.gmra.mrb[60].mxu1 %vm3592_vm9, %v4505_v62 }
 0x40a   : > { %11459 = vmatprep.mubr.msk.bf16.mxu1 %vm3592_vm9, %v4817_v16 }
 0x40b   : > { %v4823_v0 = vpop.permute.xlu1 %4822 }
 0x40c   : > { %v5171_v61 = vpop.permute.xlu0 %5170 }
 0x40d   : > { %5869 = vrot.lane.b32.xlu1 %v5822_v52, %s12925_s25  ;;  %v10244_v52 = vld [vmem:[%s15256_s4 + $0x20] sm:$0xf] }
 0x40f   : > { %v4827_v55 = vpop.permute.xlu1 %4826 }
 0x410   : > { %v5175_v5 = vpop.permute.xlu0 %5174 }
 0x411   : > { %5873 = vrot.lane.b32.xlu1 %v5824_v57, %s12925_s25  ;;  %11460 = vmatmul.mubr.msk.bf16.vlgmr.msra.gmra.mrb[32].mxu1 %vm3592_vm9, %v4819_v30 }
 0x412   : > { %11492 = vmatpush3.bf16.msra.mxu1 %v5239_v13  ;;  %11463 = vmatprep.mubr.msk.bf16.mxu1 %vm3592_vm9, %v4821_v38 }
 0x413   : > { %12727 = vmatprep.subr.msk.bf16.mxu1 %vm3641_vm7, %v10210_v15  ;;  %v4831_v17 = vpop.permute.xlu1 %4830 }
 0x414   : > { %v5179_v49 = vpop.permute.xlu0 %5178 }
 0x415   : > { %6187 = vrot.lane.b32.xlu1 %v6152_v36, %s12925_s25 }
 0x417   : > { %v4835_v10 = vpop.permute.xlu1 %4834 }
 0x418   : > { %v5183_v3 = vpop.permute.xlu0 %5182 }
 0x419   : > { %6191 = vrot.lane.b32.xlu1 %v6154_v29, %s12925_s25  ;;  %11464 = vmatmul.mubr.msk.bf16.gmra.mrb[36].mxu1 %vm3592_vm9, %v4823_v0 }
 0x41a   : > { %11467 = vmatprep.mubr.msk.bf16.mxu1 %vm3592_vm9, %v4825_v47 }
 0x41b   : > { %v4839_v63 = vpop.permute.xlu1 %4838 }
 0x41c   : > { %v5187_v59 = vpop.permute.xlu0 %5186 }
 0x41d   : > { %6195 = vrot.lane.b32.xlu1 %v6156_v31, %s12925_s25  ;;  %v12807_v31 = vld [vmem:[%s15258_s6 + $0xc] sm:$0xff]  }
 0x41e   : > { %11627 = vmatprep.subr.bf16.mxu0 %v12807_v31 }
 0x41f   : > { %v4843_v48 = vpop.permute.xlu1 %4842  ;;  %11628 = vmatpush3.bf16.msra.mxu0 %v12807_v31 }
 0x420   : > { %v5502_v54 = vpop.permute.xlu0 %5501  ;;  %12730 = vmatprep.subr.msk.bf16.mxu0 %vm3641_vm7, %v12808_v14 }
 0x421   : > { %6199 = vrot.lane.b32.xlu1 %v6158_v45, %s12925_s25  ;;  %11468 = vmatmul.mubr.msk.bf16.gmra.mrb[40].mxu1 %vm3592_vm9, %v4827_v55  ;;  %v6266_v45 = vsel %vm3641_vm7, %v10244_v52, 0 }
 0x422   : > { %11471 = vmatprep.mubr.msk.bf16.mxu1 %vm3592_vm9, %v4829_v20 }
 0x423   : > { %v4847_v33 = vpop.permute.xlu1 %4846  ;;  %11630 = vmatpush3.bf16.msra.mxu0 %v6958_v41 }
 0x424   : > { %v5506_v57 = vpop.permute.xlu0 %5505 }
 0x425   : > { %6203 = vrot.lane.b32.xlu1 %v6160_v8, %s12925_s25 }
 0x427   : > { %v5161_v35 = vpop.permute.xlu1 %5160 }
 0x428   : > { %v5510_v30 = vpop.permute.xlu0 %5509 }
 0x429   : > { %6207 = vrot.lane.b32.xlu1 %v6162_v42, %s12925_s25  ;;  %11472 = vmatmul.mubr.msk.bf16.gmra.mrb[44].mxu1 %vm3592_vm9, %v4831_v17 }
 0x42a   : > { %11475 = vmatprep.mubr.msk.bf16.mxu1 %vm3592_vm9, %v4833_v19 }
 0x42b   : > { %v5165_v43 = vpop.permute.xlu1 %5164 }
 0x42c   : > { %v5514_v56 = vpop.permute.xlu0 %5513 }
 0x42d   : > { %6211 = vrot.lane.b32.xlu1 %v6164_v58, %s12925_s25 }
 0x42f   : > { %v5169_v4 = vpop.permute.xlu1 %5168 }
 0x430   : > { %v5518_v38 = vpop.permute.xlu0 %5517 }
 0x431   : > { %11476 = vmatmul.mubr.msk.bf16.gmra.mrb[48].mxu1 %vm3592_vm9, %v4835_v10  ;;  %6215 = vrot.lane.b32.xlu1 %v6166_v50, %s12925_s25  ;;  %s9839_s25 = scalar_lea.sflag [#allocation7], %s389_s30 }
 0x432   : > { %11479 = vmatprep.mubr.msk.bf16.mxu1 %vm3592_vm9, %v4837_v46 }
 0x433   : > { %v5173_v44 = vpop.permute.xlu1 %5172 }
 0x434   : > { %v5522_v9 = vpop.permute.xlu0 %5521 }
 0x437   : > { %v5177_v24 = vpop.permute.xlu1 %5176 }
 0x438   : > { %v5526_v29 = vpop.permute.xlu0 %5525 }
 0x439   : > { %11480 = vmatmul.mubr.msk.bf16.gmra.mrb[52].mxu1 %vm3592_vm9, %v4839_v63 }
 0x43a   : > { %11483 = vmatprep.mubr.msk.bf16.mxu1 %vm3592_vm9, %v4841_v1 }
 0x43b   : > { %v5181_v26 = vpop.permute.xlu1 %5180 }
 0x43c   : > { %v5530_v21 = vpop.permute.xlu0 %5529 }
 0x43f   : > { %v5185_v62 = vpop.permute.xlu1 %5184 }
 0x440   : > { %v5844_v47 = vpop.permute.xlu0 %5843 }
 0x441   : > { %11484 = vmatmul.mubr.msk.bf16.gmra.mrb[56].mxu1 %vm3592_vm9, %v4843_v48 }
 0x442   : > { %11487 = vmatprep.mubr.msk.bf16.mxu1 %vm3592_vm9, %v4845_v18 }
 0x443   : > { %v5189_v16 = vpop.permute.xlu1 %5188 }
 0x444   : > { %v5848_v22 = vpop.permute.xlu0 %5847 }
 0x447   : > { %v5504_v28 = vpop.permute.xlu1 %5503 }
 0x448   : > { %v5852_v20 = vpop.permute.xlu0 %5851 }
 0x449   : > { %11488 = vmatmul.mubr.msk.bf16.gmra.mrb[60].mxu1 %vm3592_vm9, %v4847_v33 }
 0x44a   : > { %11493 = vmatprep.mubr.msk.bf16.mxu1 %vm3592_vm9, %v5159_v12 }
 0x44b   : > { %v5508_v13 = vpop.permute.xlu1 %5507 }
 0x44c   : > { %v5856_v27 = vpop.permute.xlu0 %5855 }
 0x44f   : > { %v5512_v7 = vpop.permute.xlu1 %5511 }
 0x450   : > { %v5860_v42 = vpop.permute.xlu0 %5859 }
 0x451   : > { %11494 = vmatmul.mubr.msk.bf16.vlgmr.msra.gmra.mrb[32].mxu1 %vm3592_vm9, %v5161_v35 }
 0x452   : > { %11526 = vmatpush3.bf16.msra.mxu1 %v5582_v11  ;;  %11497 = vmatprep.mubr.msk.bf16.mxu1 %vm3592_vm9, %v5163_v40 }
 0x453   : > { %12728 = vmatprep.subr.msk.bf16.mxu1 %vm3641_vm7, %v10227_v6  ;;  %v5516_v15 = vpop.permute.xlu1 %5515 }
 0x454   : > { %v5864_v37 = vpop.permute.xlu0 %5863 }
 0x457   : > { %v5520_v36 = vpop.permute.xlu1 %5519 }
 0x458   : > { %v5868_v19 = vpop.permute.xlu0 %5867 }
 0x459   : > { %11498 = vmatmul.mubr.msk.bf16.gmra.mrb[36].mxu1 %vm3592_vm9, %v5165_v43 }
 0x45a   : > { %11501 = vmatprep.mubr.msk.bf16.mxu1 %vm3592_vm9, %v5167_v51 }
 0x45b   : > { %v5524_v60 = vpop.permute.xlu1 %5523 }
 0x45c   : > { %v5872_v10 = vpop.permute.xlu0 %5871 }
 0x45f   : > { %v5528_v0 = vpop.permute.xlu1 %5527 }
 0x460   : > { %v6186_v63 = vpop.permute.xlu0 %6185 }
 0x461   : > { %11502 = vmatmul.mubr.msk.bf16.gmra.mrb[40].mxu1 %vm3592_vm9, %v5169_v4 }
 0x462   : > { %11505 = vmatprep.mubr.msk.bf16.mxu1 %vm3592_vm9, %v5171_v61  ;;  %v6847_v61 = vld [vmem:[#allocation3 + $0x1] sm:$0xff] }
 0x463   : > { %v5532_v25 = vpop.permute.xlu1 %5531 }
 0x464   : > { %v6190_v48 = vpop.permute.xlu0 %6189 }
 0x467   : > { %v5846_v55 = vpop.permute.xlu1 %5845 }
 0x468   : > { %v6194_v33 = vpop.permute.xlu0 %6193 }
 0x469   : > { %11506 = vmatmul.mubr.msk.bf16.gmra.mrb[44].mxu1 %vm3592_vm9, %v5173_v44  ;;  %v6848_v44 = vld [vmem:[#allocation3 + $0x9] sm:$0xff] }
 0x46a   : > { %11509 = vmatprep.mubr.msk.bf16.mxu1 %vm3592_vm9, %v5175_v5  ;;  %v6879_v5 = vpack.c.bf16 %v6848_v44, %v6847_v61 }
 0x46b   : > { %v5850_v23 = vpop.permute.xlu1 %5849 }
 0x46c   : > { %v6198_v11 = vpop.permute.xlu0 %6197  ;;  %11631 = vmatprep.mubr.msk.bf16.mxu0 %vm6908_vm10, %v6879_v5 }
 0x46f   : > { %v5854_v8 = vpop.permute.xlu1 %5853 }
 0x470   : > { %v6202_v6 = vpop.permute.xlu0 %6201 }
 0x471   : > { %11510 = vmatmul.mubr.msk.bf16.gmra.mrb[48].mxu1 %vm3592_vm9, %v5177_v24  ;;  %v14451_v24 = vld [vmem:[%s15258_s6] sm:$0xff]  }
 0x472   : > { %11513 = vmatprep.mubr.msk.bf16.mxu1 %vm3592_vm9, %v5179_v49  ;;  %11663 = vmatprep.subr.bf16.mxu0 %v14451_v24  ;;  %v6661_v49 = vlaneseq }
 0x473   : > { %v5858_v34 = vpop.permute.xlu1 %5857 }
 0x474   : > { %v6206_v32 = vpop.permute.xlu0 %6205  ;;  %vm9695_vm14 = vcmp.lt.s32.totalorder %v6661_v49, 256 }
 0x477   : > { %v5862_v17 = vpop.permute.xlu1 %5861 }
 0x478   : > { %v6210_v50 = vpop.permute.xlu0 %6209 }
 0x479   : > { %11514 = vmatmul.mubr.msk.bf16.gmra.mrb[52].mxu1 %vm3592_vm9, %v5181_v26  ;;  %v14457_v26 = vld [vmem:[%s15257_s5] ss:$0 sm:$0xff] }
 0x47a   : > { %11517 = vmatprep.mubr.msk.bf16.mxu1 %vm3592_vm9, %v5183_v3 }
 0x47b   : > { %v5866_v39 = vpop.permute.xlu1 %5865 }
 0x47c   : > { %v6214_v51 = vpop.permute.xlu0 %6213 }
 0x47f   : > { %v5870_v58 = vpop.permute.xlu1 %5869 }
 0x481   : > { %11518 = vmatmul.mubr.msk.bf16.gmra.mrb[56].mxu1 %vm3592_vm9, %v5185_v62 }
 0x482   : > { %11521 = vmatprep.mubr.msk.bf16.mxu1 %vm3592_vm9, %v5187_v59 }
 0x483   : > { %v5874_v46 = vpop.permute.xlu1 %5873 }
 0x487   : > { %v6188_v1 = vpop.permute.xlu1 %6187 }
 0x489   : > { %11522 = vmatmul.mubr.msk.bf16.gmra.mrb[60].mxu1 %vm3592_vm9, %v5189_v16  ;;  %v14461_v16 = vshrl.u32 %v6661_v49, 7 }
 0x48a   : > { %11527 = vmatprep.mubr.msk.bf16.mxu1 %vm3592_vm9, %v5502_v54 }
 0x48b   : > { %v6192_v18 = vpop.permute.xlu1 %6191 }
 0x48f   : > { %v6196_v12 = vpop.permute.xlu1 %6195 }
 0x491   : > { %11528 = vmatmul.mubr.msk.bf16.vlgmr.msra.gmra.mrb[32].mxu1 %vm3592_vm9, %v5504_v28 }
 0x492   : > { %11560 = vmatpush3.bf16.msra.mxu1 %v5924_v2  ;;  %11531 = vmatprep.mubr.msk.bf16.mxu1 %vm3592_vm9, %v5506_v57 }
 0x493   : > { %12729 = vmatprep.subr.msk.bf16.mxu1 %vm3641_vm7, %v10244_v52  ;;  %v6200_v35 = vpop.permute.xlu1 %6199 }
 0x497   : > { %v6204_v40 = vpop.permute.xlu1 %6203 }
 0x499   : > { %11532 = vmatmul.mubr.msk.bf16.gmra.mrb[36].mxu1 %vm3592_vm9, %v5508_v13 }
 0x49a   : > { %11535 = vmatprep.mubr.msk.bf16.mxu1 %vm3592_vm9, %v5510_v30 }
 0x49b   : > { %v6208_v53 = vpop.permute.xlu1 %6207 }
 0x49f   : > { %v6212_v43 = vpop.permute.xlu1 %6211 }
 0x4a1   : > { %11536 = vmatmul.mubr.msk.bf16.gmra.mrb[40].mxu1 %vm3592_vm9, %v5512_v7 }
 0x4a2   : > { %11539 = vmatprep.mubr.msk.bf16.mxu1 %vm3592_vm9, %v5514_v56  ;;  %v6663_v56 = vadd.s32 8, %v14461_v16 }
 0x4a3   : > { %v6216_v4 = vpop.permute.xlu1 %6215 }
 0x4a9   : > { %11540 = vmatmul.mubr.msk.bf16.gmra.mrb[44].mxu1 %vm3592_vm9, %v5516_v15 }
 0x4aa   : > { %11543 = vmatprep.mubr.msk.bf16.mxu1 %vm3592_vm9, %v5518_v38  ;;  %v6664_v38 = vand.u32 1, %v14461_v16 }
 0x4ac   : > { %vm14474_vm12 = vcmp.eq.s32.totalorder %v6664_v38, 1 }
 0x4b1   : > { %11544 = vmatmul.mubr.msk.bf16.gmra.mrb[48].mxu1 %vm3592_vm9, %v5520_v36 }
 0x4b2   : > { %11547 = vmatprep.mubr.msk.bf16.mxu1 %vm3592_vm9, %v5522_v9  ;;  %v6665_v9 = vand.u32 1, %v6663_v56 }
 0x4b4   : > { %vm14480_vm13 = vcmp.eq.s32.totalorder %v6665_v9, 1 }
 0x4b9   : > { %11548 = vmatmul.mubr.msk.bf16.gmra.mrb[52].mxu1 %vm3592_vm9, %v5524_v60 }
 0x4ba   : > { %11551 = vmatprep.mubr.msk.bf16.mxu1 %vm3592_vm9, %v5526_v29 }
 0x4c1   : > { %11552 = vmatmul.mubr.msk.bf16.gmra.mrb[56].mxu1 %vm3592_vm9, %v5528_v0 }
 0x4c2   : > { %11555 = vmatprep.mubr.msk.bf16.mxu1 %vm3592_vm9, %v5530_v21 }
 0x4c9   : > { %11556 = vmatmul.mubr.msk.bf16.gmra.mrb[60].mxu1 %vm3592_vm9, %v5532_v25 }
 0x4ca   : > { %11561 = vmatprep.mubr.msk.bf16.mxu1 %vm3592_vm9, %v5844_v47 }
 0x4d1   : > { %11562 = vmatmul.mubr.msk.bf16.vlgmr.msra.gmra.mrb[32].mxu1 %vm3592_vm9, %v5846_v55 }
 0x4d2   : > { %11594 = vmatpush3.bf16.msra.mxu1 %v6266_v45  ;;  %11565 = vmatprep.mubr.msk.bf16.mxu1 %vm3592_vm9, %v5848_v22 }
 0x4d9   : > { %11566 = vmatmul.mubr.msk.bf16.gmra.mrb[36].mxu1 %vm3592_vm9, %v5850_v23 }
 0x4da   : > { %11569 = vmatprep.mubr.msk.bf16.mxu1 %vm3592_vm9, %v5852_v20 }
 0x4e1   : > { %11570 = vmatmul.mubr.msk.bf16.gmra.mrb[40].mxu1 %vm3592_vm9, %v5854_v8 }
 0x4e2   : > { %11573 = vmatprep.mubr.msk.bf16.mxu1 %vm3592_vm9, %v5856_v27 }
 0x4e9   : > { %11574 = vmatmul.mubr.msk.bf16.gmra.mrb[44].mxu1 %vm3592_vm9, %v5858_v34 }
 0x4ea   : > { %11577 = vmatprep.mubr.msk.bf16.mxu1 %vm3592_vm9, %v5860_v42 }
 0x4f1   : > { %11578 = vmatmul.mubr.msk.bf16.gmra.mrb[48].mxu1 %vm3592_vm9, %v5862_v17 }
 0x4f2   : > { %11581 = vmatprep.mubr.msk.bf16.mxu1 %vm3592_vm9, %v5864_v37 }
 0x4f9   : > { %11582 = vmatmul.mubr.msk.bf16.gmra.mrb[52].mxu1 %vm3592_vm9, %v5866_v39 }
 0x4fa   : > { %11585 = vmatprep.mubr.msk.bf16.mxu1 %vm3592_vm9, %v5868_v19 }
 0x501   : > { %11586 = vmatmul.mubr.msk.bf16.gmra.mrb[56].mxu1 %vm3592_vm9, %v5870_v58 }
 0x502   : > { %11589 = vmatprep.mubr.msk.bf16.mxu1 %vm3592_vm9, %v5872_v10 }
 0x509   : > { %11590 = vmatmul.mubr.msk.bf16.gmra.mrb[60].mxu1 %vm3592_vm9, %v5874_v46 }
 0x50a   : > { %11595 = vmatprep.mubr.msk.bf16.mxu1 %vm3592_vm9, %v6186_v63 }
 0x511   : > { %11596 = vmatmul.mubr.msk.bf16.vlgmr.msra.gmra.mrb[32].mxu1 %vm3592_vm9, %v6188_v1 }
 0x512   : > { %11599 = vmatprep.mubr.msk.bf16.mxu1 %vm3592_vm9, %v6190_v48 }
 0x519   : > { %11600 = vmatmul.mubr.msk.bf16.gmra.mrb[36].mxu1 %vm3592_vm9, %v6192_v18 }
 0x51a   : > { %11603 = vmatprep.mubr.msk.bf16.mxu1 %vm3592_vm9, %v6194_v33 }
 0x521   : > { %11604 = vmatmul.mubr.msk.bf16.gmra.mrb[40].mxu1 %vm3592_vm9, %v6196_v12 }
 0x522   : > { %11607 = vmatprep.mubr.msk.bf16.mxu1 %vm3592_vm9, %v6198_v11 }
 0x529   : > { %11608 = vmatmul.mubr.msk.bf16.gmra.mrb[44].mxu1 %vm3592_vm9, %v6200_v35 }
 0x52a   : > { %11611 = vmatprep.mubr.msk.bf16.mxu1 %vm3592_vm9, %v6202_v6 }
 0x531   : > { %11612 = vmatmul.mubr.msk.bf16.gmra.mrb[48].mxu1 %vm3592_vm9, %v6204_v40 }
 0x532   : > { %11615 = vmatprep.mubr.msk.bf16.mxu1 %vm3592_vm9, %v6206_v32 }
 0x539   : > { %11616 = vmatmul.mubr.msk.bf16.gmra.mrb[52].mxu1 %vm3592_vm9, %v6208_v53 }
 0x53a   : > { %11619 = vmatprep.mubr.msk.bf16.mxu1 %vm3592_vm9, %v6210_v50 }
 0x541   : > { %11620 = vmatmul.mubr.msk.bf16.gmra.mrb[56].mxu1 %vm3592_vm9, %v6212_v43 }
 0x542   : > { %11623 = vmatprep.mubr.msk.bf16.mxu1 %vm3592_vm9, %v6214_v51 }
 0x549   : > { %11624 = vmatmul.mubr.msk.bf16.gmra.mrb[60].mxu1 %vm3592_vm9, %v6216_v4 }
 0x5e4   : > { %v11597_v3 = vpop.f32.mrb[32].mxu1 }
 0x5e5   : > { %v6470_v62 = vadd.f32 %v11597_v3, %v14457_v26  ;;  %v6302_v59 = vpop.f32.mrb[33].mxu1 }
 0x5e6   : > { %v6468_v54 = vadd.f32 %v14457_v26, %v6302_v59  ;;  %v11598_v2 = vpop.f32.mrb[34].mxu1 }
 0x5e7   : > { %v6502_v28 = vmax.f32 %v6470_v62, 0.0  ;;  %v6471_v52 = vadd.f32 %v11598_v2, %v14457_v26  ;;  %v6305_v57 = vpop.f32.mrb[35].mxu1 }
 0x5e8   : > { %v6500_v13 = vmax.f32 %v6468_v54, 0.0  ;;  %v6469_v30 = vadd.f32 %v14457_v26, %v6305_v57 }
 0x5e9   : > { %6535 = vst.msk [vmem:[#allocation3 + $0x31] sm:$0xff] %vm6532_vm11, %v6502_v28  ;;  %v6503_v7 = vmax.f32 %v6471_v52, 0.0  ;;  %v12810_v52 = vld [vmem:[%s15258_s6 + $0x8] ss:$0 sps:$4 sm:$0xff]  }
 0x5ea   : > { %6533 = vst.msk [vmem:[#allocation3 + $0x19] sm:$0xff] %vm6532_vm11, %v6500_v13  ;;  %v6501_v15 = vmax.f32 %v6469_v30, 0.0 }
 0x5eb   : > { %6536 = vst.msk [vmem:[#allocation3 + $0x39] sm:$0xff] %vm6532_vm11, %v6503_v7 }
 0x5ec   : > { %6534 = vst.msk [vmem:[#allocation3 + $0x21] sm:$0xff] %vm6532_vm11, %v6501_v15  ;;  %v11601_v36 = vpop.f32.mrb[36].mxu1 }
 0x5ed   : > { %v6474_v60 = vadd.f32 %v11601_v36, %v14457_v26  ;;  %v6318_v29 = vpop.f32.mrb[37].mxu1 }
 0x5ee   : > { %v6472_v0 = vadd.f32 %v14457_v26, %v6318_v29  ;;  %v11602_v21 = vpop.f32.mrb[38].mxu1  ;;  %v7179_v29 = vsel %vm3641_vm7, %v12810_v52, 0 }
 0x5ef   : > { %v6506_v47 = vmax.f32 %v6474_v60, 0.0  ;;  %v6475_v31 = vadd.f32 %v11602_v21, %v14457_v26  ;;  %v6321_v14 = vpop.f32.mrb[39].mxu1 }
 0x5f0   : > { %v6504_v41 = vmax.f32 %v6472_v0, 0.0  ;;  %v6473_v45 = vadd.f32 %v14457_v26, %v6321_v14  ;;  %v14542_v0 = vld [vmem:[%s15258_s6 + $0x18] sm:$0xff]  }
 0x5f1   : > { %v6567_v55 = vld [vmem:[#allocation3 + $0x19] sm:$0xff]  ;;  %6539 = vst.msk [vmem:[#allocation3 + $0x61] sm:$0xff] %vm6532_vm11, %v6506_v47  ;;  %v6507_v20 = vmax.f32 %v6475_v31, 0.0 }
 0x5f2   : > { %v6597_v22 = vld [vmem:[#allocation3 + $0x18] sm:$0xff]  ;;  %6537 = vst.msk [vmem:[#allocation3 + $0x49] sm:$0xff] %vm6532_vm11, %v6504_v41  ;;  %v6505_v34 = vmax.f32 %v6473_v45, 0.0 }
 0x5f3   : > { %v6732_v8 = vsel %vm14474_vm12, %v6597_v22, %v6500_v13  ;;  %v6734_v27 = vsel %vm14474_vm12, %v6597_v22, %v6567_v55  ;;  %v6568_v42 = vld [vmem:[#allocation3 + $0x21] sm:$0xff]  ;;  %6540 = vst.msk [vmem:[#allocation3 + $0x69] sm:$0xff] %vm6532_vm11, %v6507_v20 }
 0x5f4   : > { %6766 = vst.msk [vmem:[#allocation3 + $0x31] sm:$0xff] %vm6532_vm11, %v6734_v27  ;;  %v6598_v17 = vld [vmem:[#allocation3 + $0x20] sm:$0xff]  ;;  %6538 = vst.msk [vmem:[#allocation3 + $0x51] sm:$0xff] %vm6532_vm11, %v6505_v34  ;;  %v11605_v19 = vpop.f32.mrb[40].mxu1 }
 0x5f5   : > { %v6733_v37 = vsel %vm14480_vm13, %v6598_v17, %v6501_v15  ;;  %v6735_v39 = vsel %vm14480_vm13, %v6598_v17, %v6568_v42  ;;  %6764 = vst.msk [vmem:[#allocation3 + $0x19] sm:$0xff] %vm6532_vm11, %v6732_v8  ;;  %v6478_v58 = vadd.f32 %v11605_v19, %v14457_v26  ;;  %v6334_v10 = vpop.f32.mrb[41].mxu1 }
 0x5f6   : > { %6765 = vst.msk [vmem:[#allocation3 + $0x21] sm:$0xff] %vm6532_vm11, %v6733_v37  ;;  %6767 = vst.msk [vmem:[#allocation3 + $0x39] sm:$0xff] %vm6532_vm11, %v6735_v39  ;;  %v6476_v46 = vadd.f32 %v14457_v26, %v6334_v10  ;;  %v11606_v63 = vpop.f32.mrb[42].mxu1 }
 0x5f7   : > { %v6510_v1 = vmax.f32 %v6478_v58, 0.0  ;;  %v6479_v48 = vadd.f32 %v11606_v63, %v14457_v26  ;;  %v6337_v18 = vpop.f32.mrb[43].mxu1 }
 0x5f8   : > { %v6508_v33 = vmax.f32 %v6476_v46, 0.0  ;;  %v6477_v12 = vadd.f32 %v14457_v26, %v6337_v18 }
 0x5f9   : > { %v6601_v11 = vld [vmem:[#allocation3 + $0x48] sm:$0xff]  ;;  %6543 = vst.msk [vmem:[#allocation3 + $0x91] sm:$0xff] %vm6532_vm11, %v6510_v1  ;;  %v6511_v35 = vmax.f32 %v6479_v48, 0.0 }
 0x5fa   : > { %v6571_v6 = vld [vmem:[#allocation3 + $0x49] sm:$0xff]  ;;  %v6736_v40 = vsel %vm14474_vm12, %v6601_v11, %v6504_v41  ;;  %6541 = vst.msk [vmem:[#allocation3 + $0x79] sm:$0xff] %vm6532_vm11, %v6508_v33  ;;  %v6509_v32 = vmax.f32 %v6477_v12, 0.0 }
 0x5fb   : > { %v6738_v53 = vsel %vm14474_vm12, %v6601_v11, %v6571_v6  ;;  %v6602_v50 = vld [vmem:[#allocation3 + $0x50] sm:$0xff]  ;;  %6544 = vst.msk [vmem:[#allocation3 + $0x99] sm:$0xff] %vm6532_vm11, %v6511_v35 }
 0x5fc   : > { %v6849_v43 = vld [vmem:[#allocation3 + $0x19] sm:$0xff]  ;;  %v6572_v51 = vld [vmem:[#allocation3 + $0x51] sm:$0xff]  ;;  %6770 = vst.msk [vmem:[#allocation3 + $0x61] sm:$0xff] %vm6532_vm11, %v6738_v53  ;;  %v6737_v4 = vsel %vm14480_vm13, %v6602_v50, %v6505_v34  ;;  %6542 = vst.msk [vmem:[#allocation3 + $0x81] sm:$0xff] %vm6532_vm11, %v6509_v32  ;;  %v11609_v61 = vpop.f32.mrb[44].mxu1 }
 0x5fd   : > { %v6850_v44 = vld [vmem:[#allocation3 + $0x21] sm:$0xff]  ;;  %v6851_v5 = vld [vmem:[#allocation3 + $0x31] sm:$0xff]  ;;  %v6852_v3 = vld [vmem:[#allocation3 + $0x39] sm:$0xff]  ;;  %6768 = vst.msk [vmem:[#allocation3 + $0x49] sm:$0xff] %vm6532_vm11, %v6736_v40  ;;  %v6739_v62 = vsel %vm14480_vm13, %v6602_v50, %v6572_v51  ;;  %v6482_v59 = vadd.f32 %v11609_v61, %v14457_v26  ;;  %v6350_v54 = vpop.f32.mrb[45].mxu1 }
 0x5fe   : > { %v14519_v2 = vpack.c.bf16 %v6850_v44, %v6849_v43  ;;  %v14521_v28 = vpack.c.bf16 %v6852_v3, %v6851_v5  ;;  %6769 = vst.msk [vmem:[#allocation3 + $0x51] sm:$0xff] %vm6532_vm11, %v6737_v4  ;;  %6771 = vst.msk [vmem:[#allocation3 + $0x69] sm:$0xff] %vm6532_vm11, %v6739_v62  ;;  %v6480_v57 = vadd.f32 %v14457_v26, %v6350_v54  ;;  %v11610_v13 = vpop.f32.mrb[46].mxu1 }
 0x5ff   : > { %v6514_v30 = vmax.f32 %v6482_v59, 0.0  ;;  %v6483_v7 = vadd.f32 %v11610_v13, %v14457_v26  ;;  %v6353_v56 = vpop.f32.mrb[47].mxu1 }
 0x600   : > { %11632 = vmatmul.mubr.msk.bf16.vlgmr.msra.gmra.mrb[32].mxu0 %vm6908_vm10, %v14519_v2  ;;  %v6512_v15 = vmax.f32 %v6480_v57, 0.0  ;;  %v6481_v38 = vadd.f32 %v14457_v26, %v6353_v56 }
 0x601   : > { %11664 = vmatpush3.bf16.msra.mxu0 %v14451_v24  ;;  %11635 = vmatprep.mubr.msk.bf16.mxu0 %vm6908_vm10, %v14521_v28  ;;  %v6605_v36 = vld [vmem:[#allocation3 + $0x78] sm:$0xff]  ;;  %6547 = vst.msk [vmem:[#allocation3 + $0xc1] sm:$0xff] %vm6532_vm11, %v6514_v30  ;;  %v6515_v9 = vmax.f32 %v6483_v7, 0.0 }
 0x602   : > { %v6575_v60 = vld [vmem:[#allocation3 + $0x79] sm:$0xff]  ;;  %12731 = vmatprep.subr.msk.bf16.mxu0 %vm3641_vm7, %v12810_v52  ;;  %v6740_v24 = vsel %vm14474_vm12, %v6605_v36, %v6508_v33  ;;  %6545 = vst.msk [vmem:[#allocation3 + $0xa9] sm:$0xff] %vm6532_vm11, %v6512_v15  ;;  %v6513_v21 = vmax.f32 %v6481_v38, 0.0 }
 0x603   : > { %v6742_v47 = vsel %vm14474_vm12, %v6605_v36, %v6575_v60  ;;  %v6606_v31 = vld [vmem:[#allocation3 + $0x80] sm:$0xff]  ;;  %6548 = vst.msk [vmem:[#allocation3 + $0xc9] sm:$0xff] %vm6532_vm11, %v6515_v9 }
 0x604   : > { %v6853_v14 = vld [vmem:[#allocation3 + $0x49] sm:$0xff]  ;;  %v6576_v41 = vld [vmem:[#allocation3 + $0x81] sm:$0xff]  ;;  %6774 = vst.msk [vmem:[#allocation3 + $0x91] sm:$0xff] %vm6532_vm11, %v6742_v47  ;;  %v6741_v45 = vsel %vm14480_vm13, %v6606_v31, %v6509_v32  ;;  %6546 = vst.msk [vmem:[#allocation3 + $0xb1] sm:$0xff] %vm6532_vm11, %v6513_v21  ;;  %v11613_v55 = vpop.f32.mrb[48].mxu1 }
 0x605   : > { %v6854_v22 = vld [vmem:[#allocation3 + $0x51] sm:$0xff]  ;;  %v6855_v20 = vld [vmem:[#allocation3 + $0x61] sm:$0xff]  ;;  %v6856_v8 = vld [vmem:[#allocation3 + $0x69] sm:$0xff]  ;;  %6772 = vst.msk [vmem:[#allocation3 + $0x79] sm:$0xff] %vm6532_vm11, %v6740_v24  ;;  %v6743_v27 = vsel %vm14480_vm13, %v6606_v31, %v6576_v41  ;;  %11666 = vmatpush3.bf16.msra.mxu0 %v7179_v29  ;;  %v6486_v34 = vadd.f32 %v11613_v55, %v14457_v26  ;;  %v6366_v42 = vpop.f32.mrb[49].mxu1 }
 0x606   : > { %v14558_v17 = vpack.c.bf16 %v6854_v22, %v6853_v14  ;;  %v14560_v37 = vpack.c.bf16 %v6856_v8, %v6855_v20  ;;  %6773 = vst.msk [vmem:[#allocation3 + $0x81] sm:$0xff] %vm6532_vm11, %v6741_v45  ;;  %6775 = vst.msk [vmem:[#allocation3 + $0x99] sm:$0xff] %vm6532_vm11, %v6743_v27  ;;  %11699 = vmatprep.subr.bf16.mxu0 %v14542_v0  ;;  %v6484_v39 = vadd.f32 %v14457_v26, %v6366_v42  ;;  %v11614_v19 = vpop.f32.mrb[50].mxu1 }
 0x607   : > { %v6518_v58 = vmax.f32 %v6486_v34, 0.0  ;;  %v6487_v10 = vadd.f32 %v11614_v19, %v14457_v26  ;;  %v6369_v46 = vpop.f32.mrb[51].mxu1 }
 0x608   : > { %11636 = vmatmul.mubr.msk.bf16.gmra.mrb[36].mxu0 %vm6908_vm10, %v14558_v17  ;;  %v6516_v63 = vmax.f32 %v6484_v39, 0.0  ;;  %v6485_v1 = vadd.f32 %v14457_v26, %v6369_v46 }
 0x609   : > { %11639 = vmatprep.mubr.msk.bf16.mxu0 %vm6908_vm10, %v14560_v37  ;;  %v6609_v48 = vld [vmem:[#allocation3 + $0xa8] sm:$0xff]  ;;  %6551 = vst.msk [vmem:[#allocation3 + $0xf1] sm:$0xff] %vm6532_vm11, %v6518_v58  ;;  %v6519_v18 = vmax.f32 %v6487_v10, 0.0 }
 0x60a   : > { %v6579_v33 = vld [vmem:[#allocation3 + $0xa9] sm:$0xff]  ;;  %v6744_v12 = vsel %vm14474_vm12, %v6609_v48, %v6512_v15  ;;  %6549 = vst.msk [vmem:[#allocation3 + $0xd9] sm:$0xff] %vm6532_vm11, %v6516_v63  ;;  %v6517_v11 = vmax.f32 %v6485_v1, 0.0 }
 0x60b   : > { %v6746_v35 = vsel %vm14474_vm12, %v6609_v48, %v6579_v33  ;;  %v6610_v6 = vld [vmem:[#allocation3 + $0xb0] sm:$0xff]  ;;  %6552 = vst.msk [vmem:[#allocation3 + $0xf9] sm:$0xff] %vm6532_vm11, %v6519_v18 }
 0x60c   : > { %v6857_v40 = vld [vmem:[#allocation3 + $0x79] sm:$0xff]  ;;  %v6580_v32 = vld [vmem:[#allocation3 + $0xb1] sm:$0xff]  ;;  %6778 = vst.msk [vmem:[#allocation3 + $0xc1] sm:$0xff] %vm6532_vm11, %v6746_v35  ;;  %v6745_v53 = vsel %vm14480_vm13, %v6610_v6, %v6513_v21  ;;  %6550 = vst.msk [vmem:[#allocation3 + $0xe1] sm:$0xff] %vm6532_vm11, %v6517_v11  ;;  %v11617_v50 = vpop.f32.mrb[52].mxu1 }
 0x60d   : > { %v6858_v43 = vld [vmem:[#allocation3 + $0x81] sm:$0xff]  ;;  %v6859_v51 = vld [vmem:[#allocation3 + $0x91] sm:$0xff]  ;;  %v6860_v4 = vld [vmem:[#allocation3 + $0x99] sm:$0xff]  ;;  %6776 = vst.msk [vmem:[#allocation3 + $0xa9] sm:$0xff] %vm6532_vm11, %v6744_v12  ;;  %v6747_v61 = vsel %vm14480_vm13, %v6610_v6, %v6580_v32  ;;  %v6490_v44 = vadd.f32 %v11617_v50, %v14457_v26  ;;  %v6382_v5 = vpop.f32.mrb[53].mxu1 }
 0x60e   : > { %v14587_v3 = vpack.c.bf16 %v6858_v43, %v6857_v40  ;;  %v14589_v62 = vpack.c.bf16 %v6860_v4, %v6859_v51  ;;  %6777 = vst.msk [vmem:[#allocation3 + $0xb1] sm:$0xff] %vm6532_vm11, %v6745_v53  ;;  %6779 = vst.msk [vmem:[#allocation3 + $0xc9] sm:$0xff] %vm6532_vm11, %v6747_v61  ;;  %v6488_v59 = vadd.f32 %v14457_v26, %v6382_v5  ;;  %v11618_v54 = vpop.f32.mrb[54].mxu1 }
 0x60f   : > { %v6522_v52 = vmax.f32 %v6490_v44, 0.0  ;;  %v6491_v57 = vadd.f32 %v11618_v54, %v14457_v26  ;;  %v6385_v13 = vpop.f32.mrb[55].mxu1 }
 0x610   : > { %11640 = vmatmul.mubr.msk.bf16.gmra.mrb[40].mxu0 %vm6908_vm10, %v14587_v3  ;;  %v6520_v30 = vmax.f32 %v6488_v59, 0.0  ;;  %v6489_v7 = vadd.f32 %v14457_v26, %v6385_v13 }
 0x611   : > { %11643 = vmatprep.mubr.msk.bf16.mxu0 %vm6908_vm10, %v14589_v62  ;;  %v6613_v56 = vld [vmem:[#allocation3 + $0xd8] sm:$0xff]  ;;  %6555 = vst.msk [vmem:[#allocation3 + $0x121] sm:$0xff] %vm6532_vm11, %v6522_v52  ;;  %v6523_v15 = vmax.f32 %v6491_v57, 0.0 }
 0x612   : > { %v6583_v38 = vld [vmem:[#allocation3 + $0xd9] sm:$0xff]  ;;  %v6748_v36 = vsel %vm14474_vm12, %v6613_v56, %v6516_v63  ;;  %6553 = vst.msk [vmem:[#allocation3 + $0x109] sm:$0xff] %vm6532_vm11, %v6520_v30  ;;  %v6521_v9 = vmax.f32 %v6489_v7, 0.0 }
 0x613   : > { %v6750_v60 = vsel %vm14474_vm12, %v6613_v56, %v6583_v38  ;;  %v6614_v29 = vld [vmem:[#allocation3 + $0xe0] sm:$0xff]  ;;  %6556 = vst.msk [vmem:[#allocation3 + $0x129] sm:$0xff] %vm6532_vm11, %v6523_v15 }
 0x614   : > { %v6861_v24 = vld [vmem:[#allocation3 + $0xa9] sm:$0xff]  ;;  %v6584_v21 = vld [vmem:[#allocation3 + $0xe1] sm:$0xff]  ;;  %6782 = vst.msk [vmem:[#allocation3 + $0xf1] sm:$0xff] %vm6532_vm11, %v6750_v60  ;;  %v6749_v47 = vsel %vm14480_vm13, %v6614_v29, %v6517_v11  ;;  %6554 = vst.msk [vmem:[#allocation3 + $0x111] sm:$0xff] %vm6532_vm11, %v6521_v9  ;;  %v11621_v31 = vpop.f32.mrb[56].mxu1 }
 0x615   : > { %v6862_v14 = vld [vmem:[#allocation3 + $0xb1] sm:$0xff]  ;;  %v6863_v41 = vld [vmem:[#allocation3 + $0xc1] sm:$0xff]  ;;  %v6864_v45 = vld [vmem:[#allocation3 + $0xc9] sm:$0xff]  ;;  %6780 = vst.msk [vmem:[#allocation3 + $0xd9] sm:$0xff] %vm6532_vm11, %v6748_v36  ;;  %v6751_v55 = vsel %vm14480_vm13, %v6614_v29, %v6584_v21  ;;  %v6494_v22 = vadd.f32 %v11621_v31, %v14457_v26  ;;  %v6398_v20 = vpop.f32.mrb[57].mxu1 }
 0x616   : > { %v14615_v8 = vpack.c.bf16 %v6862_v14, %v6861_v24  ;;  %v14617_v27 = vpack.c.bf16 %v6864_v45, %v6863_v41  ;;  %6781 = vst.msk [vmem:[#allocation3 + $0xe1] sm:$0xff] %vm6532_vm11, %v6749_v47  ;;  %6783 = vst.msk [vmem:[#allocation3 + $0xf9] sm:$0xff] %vm6532_vm11, %v6751_v55  ;;  %v6492_v34 = vadd.f32 %v14457_v26, %v6398_v20  ;;  %v11622_v42 = vpop.f32.mrb[58].mxu1 }
 0x617   : > { %v6526_v39 = vmax.f32 %v6494_v22, 0.0  ;;  %v6495_v19 = vadd.f32 %v11622_v42, %v14457_v26  ;;  %v6401_v58 = vpop.f32.mrb[59].mxu1 }
 0x618   : > { %11644 = vmatmul.mubr.msk.bf16.gmra.mrb[44].mxu0 %vm6908_vm10, %v14615_v8  ;;  %v6524_v10 = vmax.f32 %v6492_v34, 0.0  ;;  %v6493_v46 = vadd.f32 %v14457_v26, %v6401_v58 }
 0x619   : > { %11647 = vmatprep.mubr.msk.bf16.mxu0 %vm6908_vm10, %v14617_v27  ;;  %v6617_v63 = vld [vmem:[#allocation3 + $0x108] sm:$0xff]  ;;  %6559 = vst.msk [vmem:[#allocation3 + $0x151] sm:$0xff] %vm6532_vm11, %v6526_v39  ;;  %v6527_v1 = vmax.f32 %v6495_v19, 0.0 }
 0x61a   : > { %v6587_v48 = vld [vmem:[#allocation3 + $0x109] sm:$0xff]  ;;  %v6752_v18 = vsel %vm14474_vm12, %v6617_v63, %v6520_v30  ;;  %6557 = vst.msk [vmem:[#allocation3 + $0x139] sm:$0xff] %vm6532_vm11, %v6524_v10  ;;  %v6525_v33 = vmax.f32 %v6493_v46, 0.0 }
 0x61b   : > { %v6754_v12 = vsel %vm14474_vm12, %v6617_v63, %v6587_v48  ;;  %v6618_v11 = vld [vmem:[#allocation3 + $0x110] sm:$0xff]  ;;  %6560 = vst.msk [vmem:[#allocation3 + $0x159] sm:$0xff] %vm6532_vm11, %v6527_v1 }
 0x61c   : > { %v6865_v35 = vld [vmem:[#allocation3 + $0xd9] sm:$0xff]  ;;  %v6588_v6 = vld [vmem:[#allocation3 + $0x111] sm:$0xff]  ;;  %6786 = vst.msk [vmem:[#allocation3 + $0x121] sm:$0xff] %vm6532_vm11, %v6754_v12  ;;  %v6753_v40 = vsel %vm14480_vm13, %v6618_v11, %v6521_v9  ;;  %6558 = vst.msk [vmem:[#allocation3 + $0x141] sm:$0xff] %vm6532_vm11, %v6525_v33  ;;  %v11625_v32 = vpop.f32.mrb[60].mxu1 }
 0x61d   : > { %v6866_v53 = vld [vmem:[#allocation3 + $0xe1] sm:$0xff]  ;;  %v6867_v50 = vld [vmem:[#allocation3 + $0xf1] sm:$0xff]  ;;  %v6868_v43 = vld [vmem:[#allocation3 + $0xf9] sm:$0xff]  ;;  %6784 = vst.msk [vmem:[#allocation3 + $0x109] sm:$0xff] %vm6532_vm11, %v6752_v18  ;;  %v6755_v51 = vsel %vm14480_vm13, %v6618_v11, %v6588_v6  ;;  %v6498_v4 = vadd.f32 %v11625_v32, %v14457_v26  ;;  %v6414_v61 = vpop.f32.mrb[61].mxu1 }
 0x61e   : > { %v14643_v44 = vpack.c.bf16 %v6866_v53, %v6865_v35  ;;  %v14645_v5 = vpack.c.bf16 %v6868_v43, %v6867_v50  ;;  %6785 = vst.msk [vmem:[#allocation3 + $0x111] sm:$0xff] %vm6532_vm11, %v6753_v40  ;;  %6787 = vst.msk [vmem:[#allocation3 + $0x129] sm:$0xff] %vm6532_vm11, %v6755_v51  ;;  %v6496_v59 = vadd.f32 %v14457_v26, %v6414_v61  ;;  %v11626_v54 = vpop.f32.mrb[62].mxu1  ;;  %v6797_v12 = vld [vmem:[#allocation3 + $0x8] sm:$0xff]  ;;  %v6798_v40 = vld [vmem:[#allocation3 + $0x18] sm:$0xff] }
 0x61f   : > { %v6530_v52 = vmax.f32 %v6498_v4, 0.0  ;;  %v6499_v57 = vadd.f32 %v11626_v54, %v14457_v26  ;;  %v6417_v13 = vpop.f32.mrb[63].mxu1  ;;  %v6799_v32 = vld [vmem:[#allocation3 + $0x20] sm:$0xff]  ;;  %v6801_v53 = vld [vmem:[#allocation3 + $0x38] sm:$0xff]  ;;  %v6800_v43 = vld [vmem:[#allocation3 + $0x30] sm:$0xff] }
 0x620   : > { %11648 = vmatmul.mubr.msk.bf16.gmra.mrb[48].mxu0 %vm6908_vm10, %v14643_v44  ;;  %v6528_v30 = vmax.f32 %v6496_v59, 0.0  ;;  %v6497_v7 = vadd.f32 %v14457_v26, %v6417_v13  ;;  %v14705_v50 = vpack.c.bf16 %v6799_v32, %v6798_v40  ;;  %v12812_v51 = vld [vmem:[%s15258_s6 + $0x20] ss:$0 sps:$4 sm:$0xff]   ;;  %v14710_v4 = vpack.c.bf16 %v6801_v53, %v6800_v43  ;;  %v14722_v59 = vld [vmem:[%s15258_s6 + $0x24] sm:$0xff]   ;;  %v6802_v54 = vld [vmem:[#allocation3 + $0x48] sm:$0xff] }
 0x621   : > { %11651 = vmatprep.mubr.msk.bf16.mxu0 %vm6908_vm10, %v14645_v5  ;;  %v6621_v56 = vld [vmem:[#allocation3 + $0x138] sm:$0xff]  ;;  %6563 = vst.msk [vmem:[#allocation3 + $0x181] sm:$0xff] %vm6532_vm11, %v6530_v52  ;;  %v6531_v15 = vmax.f32 %v6499_v57, 0.0  ;;  %v7452_v61 = vsel %vm3641_vm7, %v12812_v51, 0  ;;  %v6803_v52 = vld [vmem:[#allocation3 + $0x50] sm:$0xff]  ;;  %v6805_v57 = vld [vmem:[#allocation3 + $0x68] sm:$0xff] }
 0x622   : > { %v6591_v38 = vld [vmem:[#allocation3 + $0x139] sm:$0xff]  ;;  %v6756_v36 = vsel %vm14474_vm12, %v6621_v56, %v6524_v10  ;;  %6561 = vst.msk [vmem:[#allocation3 + $0x169] sm:$0xff] %vm6532_vm11, %v6528_v30  ;;  %v6529_v9 = vmax.f32 %v6497_v7, 0.0  ;;  %v14724_v13 = vpack.c.bf16 %v6803_v52, %v6802_v54 }
 0x623   : > { %v6758_v60 = vsel %vm14474_vm12, %v6621_v56, %v6591_v38  ;;  %v6622_v29 = vld [vmem:[#allocation3 + $0x140] sm:$0xff]  ;;  %6564 = vst.msk [vmem:[#allocation3 + $0x189] sm:$0xff] %vm6532_vm11, %v6531_v15  ;;  %v6806_v7 = vld [vmem:[#allocation3 + $0x78] sm:$0xff] }
 0x624   : > { %v6869_v26 = vld [vmem:[#allocation3 + $0x109] sm:$0xff]  ;;  %v6592_v24 = vld [vmem:[#allocation3 + $0x141] sm:$0xff]  ;;  %6790 = vst.msk [vmem:[#allocation3 + $0x151] sm:$0xff] %vm6532_vm11, %v6758_v60  ;;  %v6757_v21 = vsel %vm14480_vm13, %v6622_v29, %v6525_v33  ;;  %6562 = vst.msk [vmem:[#allocation3 + $0x171] sm:$0xff] %vm6532_vm11, %v6529_v9 }
 0x625   : > { %v6870_v47 = vld [vmem:[#allocation3 + $0x111] sm:$0xff]  ;;  %v6871_v31 = vld [vmem:[#allocation3 + $0x121] sm:$0xff]  ;;  %v6872_v14 = vld [vmem:[#allocation3 + $0x129] sm:$0xff]  ;;  %6788 = vst.msk [vmem:[#allocation3 + $0x139] sm:$0xff] %vm6532_vm11, %v6756_v36  ;;  %v6759_v41 = vsel %vm14480_vm13, %v6622_v29, %v6592_v24 }
 0x626   : > { %v14670_v45 = vpack.c.bf16 %v6870_v47, %v6869_v26  ;;  %v14672_v55 = vpack.c.bf16 %v6872_v14, %v6871_v31  ;;  %6789 = vst.msk [vmem:[#allocation3 + $0x141] sm:$0xff] %vm6532_vm11, %v6757_v21  ;;  %6791 = vst.msk [vmem:[#allocation3 + $0x159] sm:$0xff] %vm6532_vm11, %v6759_v41  ;;  %v6796_v33 = vld [vmem:[#allocation3] sm:$0xff]  ;;  %v6809_v15 = vld [vmem:[#allocation3 + $0x98] sm:$0xff] }
 0x627   : > { %v6828_v23 = vpack.c.bf16 %v6797_v12, %v6796_v33  ;;  %v6807_v56 = vld [vmem:[#allocation3 + $0x80] sm:$0xff]  ;;  %v6808_v36 = vld [vmem:[#allocation3 + $0x90] sm:$0xff]  ;;  %v6810_v60 = vld [vmem:[#allocation3 + $0xa8] sm:$0xff] }
 0x628   : > { %11652 = vmatmul.mubr.msk.bf16.gmra.mrb[52].mxu0 %vm6908_vm10, %v14670_v45  ;;  %v14733_v38 = vpack.c.bf16 %v6807_v56, %v6806_v7  ;;  %v6811_v29 = vld [vmem:[#allocation3 + $0xb0] sm:$0xff]  ;;  %v6813_v26 = vld [vmem:[#allocation3 + $0xc8] sm:$0xff]  ;;  %v6812_v21 = vld [vmem:[#allocation3 + $0xc0] sm:$0xff] }
 0x629   : > { %11655 = vmatprep.mubr.msk.bf16.mxu0 %vm6908_vm10, %v14672_v55  ;;  %v6625_v22 = vld [vmem:[#allocation3 + $0x168] sm:$0xff]  ;;  %v14741_v24 = vpack.c.bf16 %v6811_v29, %v6810_v60  ;;  %v14743_v47 = vpack.c.bf16 %v6813_v26, %v6812_v21  ;;  %v6814_v31 = vld [vmem:[#allocation3 + $0xd8] sm:$0xff]  ;;  %v6815_v14 = vld [vmem:[#allocation3 + $0xe0] sm:$0xff] }
 0x62a   : > { %v6595_v20 = vld [vmem:[#allocation3 + $0x169] sm:$0xff]  ;;  %v6760_v34 = vsel %vm14474_vm12, %v6625_v22, %v6528_v30  ;;  %v6804_v30 = vld [vmem:[#allocation3 + $0x60] sm:$0xff]  ;;  %v6817_v41 = vld [vmem:[#allocation3 + $0xf8] sm:$0xff] }
 0x62b   : > { %v6762_v42 = vsel %vm14474_vm12, %v6625_v22, %v6595_v20  ;;  %v6626_v39 = vld [vmem:[#allocation3 + $0x170] sm:$0xff]  ;;  %v14749_v22 = vpack.c.bf16 %v6815_v14, %v6814_v31  ;;  %v7347_v52 = vld [vmem:[#allocation3 + $0x3a] sm:$0xff]  ;;  %v7350_v29 = vld [vmem:[#allocation3 + $0x62] sm:$0xff] }
 0x62c   : > { %v6873_v19 = vld [vmem:[#allocation3 + $0x139] sm:$0xff]  ;;  %v6596_v58 = vld [vmem:[#allocation3 + $0x171] sm:$0xff]  ;;  %6794 = vst.msk [vmem:[#allocation3 + $0x181] sm:$0xff] %vm6532_vm11, %v6762_v42  ;;  %v6761_v10 = vsel %vm14480_vm13, %v6626_v39, %v6529_v9  ;;  %6792 = vst.msk [vmem:[#allocation3 + $0x169] sm:$0xff] %vm6532_vm11, %v6760_v34  ;;  %v14735_v9 = vpack.c.bf16 %v6809_v15, %v6808_v36 }
 0x62d   : > { %v6874_v46 = vld [vmem:[#allocation3 + $0x141] sm:$0xff]  ;;  %v6875_v63 = vld [vmem:[#allocation3 + $0x151] sm:$0xff]  ;;  %v6876_v1 = vld [vmem:[#allocation3 + $0x159] sm:$0xff]  ;;  %v6763_v48 = vsel %vm14480_vm13, %v6626_v39, %v6596_v58  ;;  %6793 = vst.msk [vmem:[#allocation3 + $0x171] sm:$0xff] %vm6532_vm11, %v6761_v10 }
 0x62e   : > { %v14690_v18 = vpack.c.bf16 %v6874_v46, %v6873_v19  ;;  %v14692_v25 = vpack.c.bf16 %v6876_v1, %v6875_v63  ;;  %6795 = vst.msk [vmem:[#allocation3 + $0x189] sm:$0xff] %vm6532_vm11, %v6763_v48  ;;  %v6816_v20 = vld [vmem:[#allocation3 + $0xf0] sm:$0xff]  ;;  %v6818_v42 = vld [vmem:[#allocation3 + $0x108] sm:$0xff]  ;;  %v6820_v10 = vld [vmem:[#allocation3 + $0x120] sm:$0xff] }
 0x62f   : > { %v14751_v34 = vpack.c.bf16 %v6817_v41, %v6816_v20  ;;  %v6819_v39 = vld [vmem:[#allocation3 + $0x110] sm:$0xff]  ;;  %v6821_v19 = vld [vmem:[#allocation3 + $0x128] sm:$0xff]  ;;  %v6822_v63 = vld [vmem:[#allocation3 + $0x138] sm:$0xff] }
 0x630   : > { %11656 = vmatmul.mubr.msk.bf16.gmra.mrb[56].mxu0 %vm6908_vm10, %v14690_v18  ;;  %v14757_v58 = vpack.c.bf16 %v6819_v39, %v6818_v42  ;;  %v14759_v46 = vpack.c.bf16 %v6821_v19, %v6820_v10  ;;  %v6823_v1 = vld [vmem:[#allocation3 + $0x140] sm:$0xff]  ;;  %v6825_v48 = vld [vmem:[#allocation3 + $0x158] sm:$0xff]  ;;  %v6824_v12 = vld [vmem:[#allocation3 + $0x150] sm:$0xff] }
 0x631   : > { %11659 = vmatprep.mubr.msk.bf16.mxu0 %vm6908_vm10, %v14692_v25  ;;  %v14765_v33 = vpack.c.bf16 %v6823_v1, %v6822_v63  ;;  %v7346_v54 = vld [vmem:[#allocation3 + $0x32] sm:$0xff]  ;;  %v12815_v15 = vld [vmem:[%s15258_s6 + $0x30] sm:$0xff]   ;;  %v7348_v36 = vld [vmem:[#allocation3 + $0x4a] sm:$0xff] }
 0x632   : > { %v14783_v7 = vpack.c.bf16 %v7347_v52, %v7346_v54  ;;  %v7349_v60 = vld [vmem:[#allocation3 + $0x52] sm:$0xff]  ;;  %v7351_v26 = vld [vmem:[#allocation3 + $0x6a] sm:$0xff]  ;;  %v7352_v31 = vld [vmem:[#allocation3 + $0x7a] sm:$0xff] }
 0x633   : > { %v6877_v11 = vld [vmem:[#allocation3 + $0x169] sm:$0xff]  ;;  %v14795_v21 = vpack.c.bf16 %v7349_v60, %v7348_v36  ;;  %v7354_v41 = vld [vmem:[#allocation3 + $0x92] sm:$0xff]  ;;  %v7355_v20 = vld [vmem:[#allocation3 + $0x9a] sm:$0xff] }
 0x634   : > { %v6878_v35 = vld [vmem:[#allocation3 + $0x171] sm:$0xff]  ;;  %v6826_v40 = vld [vmem:[#allocation3 + $0x168] sm:$0xff]  ;;  %v14805_v39 = vpack.c.bf16 %v7355_v20, %v7354_v41  ;;  %v7368_v60 = vld [vmem:[#allocation3 + $0x13a] sm:$0xff] }
 0x635   : > { %v14700_v6 = vpack.c.bf16 %v6878_v35, %v6877_v11  ;;  %v14767_v11 = vpack.c.bf16 %v6825_v48, %v6824_v12  ;;  %v7342_v35 = vld [vmem:[#allocation3 + $0x2] sm:$0xff]  ;;  %v6827_v32 = vld [vmem:[#allocation3 + $0x170] sm:$0xff] }
 0x636   : > { %v14773_v43 = vpack.c.bf16 %v6827_v32, %v6826_v40  ;;  %v7353_v14 = vld [vmem:[#allocation3 + $0x82] sm:$0xff]  ;;  %v7356_v19 = vld [vmem:[#allocation3 + $0xaa] sm:$0xff]  ;;  %v7357_v10 = vld [vmem:[#allocation3 + $0xb2] sm:$0xff] }
 0x637   : > { %v14803_v42 = vpack.c.bf16 %v7353_v14, %v7352_v31  ;;  %v7358_v63 = vld [vmem:[#allocation3 + $0xc2] sm:$0xff]  ;;  %v7359_v1 = vld [vmem:[#allocation3 + $0xca] sm:$0xff]  ;;  %v14811_v48 = vpack.c.bf16 %v7357_v10, %v7356_v19  ;;  %v7362_v40 = vld [vmem:[#allocation3 + $0xf2] sm:$0xff] }
 0x638   : > { %11660 = vmatmul.mubr.msk.bf16.gmra.mrb[60].mxu0 %vm6908_vm10, %v14700_v6  ;;  %v14813_v12 = vpack.c.bf16 %v7359_v1, %v7358_v63  ;;  %v7363_v32 = vld [vmem:[#allocation3 + $0xfa] sm:$0xff]  ;;  %v7365_v54 = vld [vmem:[#allocation3 + $0x112] sm:$0xff]  ;;  %v7366_v52 = vld [vmem:[#allocation3 + $0x122] sm:$0xff] }
 0x639   : > { %11667 = vmatprep.mubr.msk.bf16.mxu0 %vm6908_vm10, %v6828_v23  ;;  %v7343_v23 = vld [vmem:[#allocation3 + $0xa] sm:$0xff]  ;;  %v7371_v31 = vld [vmem:[#allocation3 + $0x15a] sm:$0xff]  ;;  %v7373_v19 = vld [vmem:[#allocation3 + $0x172] sm:$0xff] }
 0x63a   : > { %v7374_v53 = vpack.c.bf16 %v7343_v23, %v7342_v35  ;;  %v7360_v35 = vld [vmem:[#allocation3 + $0xda] sm:$0xff]  ;;  %v7361_v23 = vld [vmem:[#allocation3 + $0xe2] sm:$0xff]  ;;  %v7372_v20 = vld [vmem:[#allocation3 + $0x16a] sm:$0xff] }
 0x63b   : > { %v14843_v10 = vpack.c.bf16 %v7373_v19, %v7372_v20  ;;  %v12816_v63 = vld [vmem:[%s15258_s6 + $0x38] ss:$0 sps:$4 sm:$0xff]   ;;  %v8881_v19 = vld [vmem:[#allocation3 + $0xd9] sm:$0xff] }
 0x63c   : > { %v8062_v1 = vsel %vm3641_vm7, %v12816_v63, 0 }
 0x640   : > { %11668 = vmatmul.mubr.msk.bf16.vlgmr.msra.gmra.mrb[32].mxu0 %vm6908_vm10, %v14705_v50 }
 0x641   : > { %11700 = vmatpush3.bf16.msra.mxu0 %v14542_v0  ;;  %11671 = vmatprep.mubr.msk.bf16.mxu0 %vm6908_vm10, %v14710_v4  ;;  %v14727_v0 = vpack.c.bf16 %v6805_v57, %v6804_v30  ;;  %v12814_v30 = vld [vmem:[%s15258_s6 + $0x2c] ss:$0 sps:$4 sm:$0xff]  }
 0x642   : > { %12732 = vmatprep.subr.msk.bf16.mxu0 %vm3641_vm7, %v12812_v51  ;;  %v7344_v51 = vld [vmem:[#allocation3 + $0x1a] sm:$0xff]  ;;  %v7757_v56 = vsel %vm3641_vm7, %v12814_v30, 0 }
 0x645   : > { %11702 = vmatpush3.bf16.msra.mxu0 %v7452_v61  ;;  %v7345_v61 = vld [vmem:[#allocation3 + $0x22] sm:$0xff] }
 0x646   : > { %11735 = vmatprep.subr.bf16.mxu0 %v14722_v59  ;;  %v14778_v57 = vpack.c.bf16 %v7345_v61, %v7344_v51  ;;  %v14821_v51 = vpack.c.bf16 %v7363_v32, %v7362_v40  ;;  %v7364_v61 = vld [vmem:[#allocation3 + $0x10a] sm:$0xff]  ;;  %v12818_v40 = vld [vmem:[%s15258_s6 + $0x44] ss:$0 sps:$4 sm:$0xff]  }
 0x647   : > { %v8367_v32 = vsel %vm3641_vm7, %v12818_v40, 0 }
 0x648   : > { %11672 = vmatmul.mubr.msk.bf16.gmra.mrb[36].mxu0 %vm6908_vm10, %v14724_v13 }
 0x649   : > { %11675 = vmatprep.mubr.msk.bf16.mxu0 %vm6908_vm10, %v14727_v0 }
 0x650   : > { %11676 = vmatmul.mubr.msk.bf16.gmra.mrb[40].mxu0 %vm6908_vm10, %v14733_v38 }
 0x651   : > { %11679 = vmatprep.mubr.msk.bf16.mxu0 %vm6908_vm10, %v14735_v9 }
 0x658   : > { %11680 = vmatmul.mubr.msk.bf16.gmra.mrb[44].mxu0 %vm6908_vm10, %v14741_v24 }
 0x659   : > { %11683 = vmatprep.mubr.msk.bf16.mxu0 %vm6908_vm10, %v14743_v47 }
 0x660   : > { %11684 = vmatmul.mubr.msk.bf16.gmra.mrb[48].mxu0 %vm6908_vm10, %v14749_v22 }
 0x661   : > { %11687 = vmatprep.mubr.msk.bf16.mxu0 %vm6908_vm10, %v14751_v34 }
 0x668   : > { %11688 = vmatmul.mubr.msk.bf16.gmra.mrb[52].mxu0 %vm6908_vm10, %v14757_v58 }
 0x669   : > { %11691 = vmatprep.mubr.msk.bf16.mxu0 %vm6908_vm10, %v14759_v46 }
 0x670   : > { %11692 = vmatmul.mubr.msk.bf16.gmra.mrb[56].mxu0 %vm6908_vm10, %v14765_v33 }
 0x671   : > { %11695 = vmatprep.mubr.msk.bf16.mxu0 %vm6908_vm10, %v14767_v11 }
 0x678   : > { %11696 = vmatmul.mubr.msk.bf16.gmra.mrb[60].mxu0 %vm6908_vm10, %v14773_v43 }
 0x679   : > { %11703 = vmatprep.mubr.msk.bf16.mxu0 %vm6908_vm10, %v7374_v53  ;;  %v14819_v53 = vpack.c.bf16 %v7361_v23, %v7360_v35  ;;  %v12817_v35 = vld [vmem:[%s15258_s6 + $0x3c] sm:$0xff]  }
 0x680   : > { %11704 = vmatmul.mubr.msk.bf16.vlgmr.msra.gmra.mrb[32].mxu0 %vm6908_vm10, %v14778_v57 }
 0x681   : > { %11736 = vmatpush3.bf16.msra.mxu0 %v14722_v59  ;;  %11707 = vmatprep.mubr.msk.bf16.mxu0 %vm6908_vm10, %v14783_v7  ;;  %v14797_v59 = vpack.c.bf16 %v7351_v26, %v7350_v29  ;;  %v7369_v29 = vld [vmem:[#allocation3 + $0x142] sm:$0xff]  ;;  %v7370_v26 = vld [vmem:[#allocation3 + $0x152] sm:$0xff] }
 0x682   : > { %12733 = vmatprep.subr.msk.bf16.mxu0 %vm3641_vm7, %v12814_v30  ;;  %v7367_v30 = vld [vmem:[#allocation3 + $0x12a] sm:$0xff]  ;;  %v14835_v14 = vpack.c.bf16 %v7369_v29, %v7368_v60  ;;  %v14837_v41 = vpack.c.bf16 %v7371_v31, %v7370_v26  ;;  %v8879_v31 = vld [vmem:[#allocation3 + $0xc1] sm:$0xff] }
 0x683   : > { %v14829_v36 = vpack.c.bf16 %v7367_v30, %v7366_v52  ;;  %v8877_v30 = vld [vmem:[#allocation3 + $0xa9] sm:$0xff]  ;;  %v8878_v60 = vld [vmem:[#allocation3 + $0xb1] sm:$0xff] }
 0x684   : > { %v8880_v29 = vld [vmem:[#allocation3 + $0xc9] sm:$0xff]  ;;  %v8904_v26 = vpack.c.bf16 %v8878_v60, %v8877_v30 }
 0x685   : > { %11738 = vmatpush3.bf16.msra.mxu0 %v7757_v56  ;;  %v14827_v56 = vpack.c.bf16 %v7365_v54, %v7364_v61  ;;  %v12819_v61 = vld [vmem:[%s15258_s6 + $0x48] sm:$0xff]   ;;  %v8905_v20 = vpack.c.bf16 %v8880_v29, %v8879_v31 }
 0x686   : > { %11771 = vmatprep.subr.bf16.mxu0 %v12815_v15  ;;  %v8875_v54 = vld [vmem:[#allocation3 + $0x91] sm:$0xff] }
 0x688   : > { %11708 = vmatmul.mubr.msk.bf16.gmra.mrb[36].mxu0 %vm6908_vm10, %v14795_v21 }
 0x689   : > { %11711 = vmatprep.mubr.msk.bf16.mxu0 %vm6908_vm10, %v14797_v59 }
 0x690   : > { %11712 = vmatmul.mubr.msk.bf16.gmra.mrb[40].mxu0 %vm6908_vm10, %v14803_v42 }
 0x691   : > { %11715 = vmatprep.mubr.msk.bf16.mxu0 %vm6908_vm10, %v14805_v39 }
 0x698   : > { %11716 = vmatmul.mubr.msk.bf16.gmra.mrb[44].mxu0 %vm6908_vm10, %v14811_v48 }
 0x699   : > { %11719 = vmatprep.mubr.msk.bf16.mxu0 %vm6908_vm10, %v14813_v12 }
 0x6a0   : > { %11720 = vmatmul.mubr.msk.bf16.gmra.mrb[48].mxu0 %vm6908_vm10, %v14819_v53 }
 0x6a1   : > { %11723 = vmatprep.mubr.msk.bf16.mxu0 %vm6908_vm10, %v14821_v51 }
 0x6a8   : > { %11724 = vmatmul.mubr.msk.bf16.gmra.mrb[52].mxu0 %vm6908_vm10, %v14827_v56 }
 0x6a9   : > { %11727 = vmatprep.mubr.msk.bf16.mxu0 %vm6908_vm10, %v14829_v36 }
 0x6b0   : > { %11728 = vmatmul.mubr.msk.bf16.gmra.mrb[56].mxu0 %vm6908_vm10, %v14835_v14 }
 0x6b1   : > { %11731 = vmatprep.mubr.msk.bf16.mxu0 %vm6908_vm10, %v14837_v41 }
 0x6b8   : > { %11732 = vmatmul.mubr.msk.bf16.gmra.mrb[60].mxu0 %vm6908_vm10, %v14843_v10 }
 0x6b9   : > { %11739 = vmatprep.mubr.msk.bf16.mxu0 %vm6908_vm10, %v14705_v50  ;;  %v7678_v50 = vld [vmem:[#allocation3 + $0x188] sm:$0xff] }
 0x6c0   : > { %11740 = vmatmul.mubr.msk.bf16.vlgmr.msra.gmra.mrb[32].mxu0 %vm6908_vm10, %v14710_v4 }
 0x6c1   : > { %11772 = vmatpush3.bf16.msra.mxu0 %v12815_v15  ;;  %11743 = vmatprep.mubr.msk.bf16.mxu0 %vm6908_vm10, %v14724_v13  ;;  %v7677_v15 = vld [vmem:[#allocation3 + $0x180] sm:$0xff] }
 0x6c2   : > { %12734 = vmatprep.subr.msk.bf16.mxu0 %vm3641_vm7, %v12816_v63  ;;  %v14885_v23 = vpack.c.bf16 %v7678_v50, %v7677_v15  ;;  %v8882_v63 = vld [vmem:[#allocation3 + $0xe1] sm:$0xff]  ;;  %v8883_v50 = vld [vmem:[#allocation3 + $0xf1] sm:$0xff] }
 0x6c5   : > { %11774 = vmatpush3.bf16.msra.mxu0 %v8062_v1  ;;  %v8884_v1 = vld [vmem:[#allocation3 + $0xf9] sm:$0xff] }
 0x6c6   : > { %11807 = vmatprep.subr.bf16.mxu0 %v12817_v35  ;;  %v8907_v15 = vpack.c.bf16 %v8884_v1, %v8883_v50 }
 0x6c8   : > { %11744 = vmatmul.mubr.msk.bf16.gmra.mrb[36].mxu0 %vm6908_vm10, %v14727_v0 }
 0x6c9   : > { %11747 = vmatprep.mubr.msk.bf16.mxu0 %vm6908_vm10, %v14733_v38 }
 0x6d0   : > { %11748 = vmatmul.mubr.msk.bf16.gmra.mrb[40].mxu0 %vm6908_vm10, %v14735_v9 }
 0x6d1   : > { %11751 = vmatprep.mubr.msk.bf16.mxu0 %vm6908_vm10, %v14741_v24 }
 0x6d8   : > { %11752 = vmatmul.mubr.msk.bf16.gmra.mrb[44].mxu0 %vm6908_vm10, %v14743_v47 }
 0x6d9   : > { %11755 = vmatprep.mubr.msk.bf16.mxu0 %vm6908_vm10, %v14749_v22 }
 0x6e0   : > { %11756 = vmatmul.mubr.msk.bf16.gmra.mrb[48].mxu0 %vm6908_vm10, %v14751_v34 }
 0x6e1   : > { %11759 = vmatprep.mubr.msk.bf16.mxu0 %vm6908_vm10, %v14757_v58 }
 0x6e8   : > { %11760 = vmatmul.mubr.msk.bf16.gmra.mrb[52].mxu0 %vm6908_vm10, %v14759_v46 }
 0x6e9   : > { %11763 = vmatprep.mubr.msk.bf16.mxu0 %vm6908_vm10, %v14765_v33 }
 0x6f0   : > { %11764 = vmatmul.mubr.msk.bf16.gmra.mrb[56].mxu0 %vm6908_vm10, %v14767_v11 }
 0x6f1   : > { %11767 = vmatprep.mubr.msk.bf16.mxu0 %vm6908_vm10, %v14773_v43 }
 0x6f8   : > { %11768 = vmatmul.mubr.msk.bf16.gmra.mrb[60].mxu0 %vm6908_vm10, %v14885_v23 }
 0x6f9   : > { %11775 = vmatprep.mubr.msk.bf16.mxu0 %vm6908_vm10, %v14519_v2  ;;  %v7983_v2 = vld [vmem:[#allocation3 + $0x189] sm:$0xff] }
 0x700   : > { %11776 = vmatmul.mubr.msk.bf16.vlgmr.msra.gmra.mrb[32].mxu0 %vm6908_vm10, %v14521_v28  ;;  %v7982_v28 = vld [vmem:[#allocation3 + $0x181] sm:$0xff] }
 0x701   : > { %11808 = vmatpush3.bf16.msra.mxu0 %v12817_v35  ;;  %11779 = vmatprep.mubr.msk.bf16.mxu0 %vm6908_vm10, %v14558_v17  ;;  %v14927_v17 = vpack.c.bf16 %v7983_v2, %v7982_v28  ;;  %v8906_v35 = vpack.c.bf16 %v8882_v63, %v8881_v19  ;;  %v8887_v2 = vld [vmem:[#allocation3 + $0x121] sm:$0xff] }
 0x702   : > { %12735 = vmatprep.subr.msk.bf16.mxu0 %vm3641_vm7, %v12818_v40  ;;  %v8886_v40 = vld [vmem:[#allocation3 + $0x111] sm:$0xff] }
 0x705   : > { %11810 = vmatpush3.bf16.msra.mxu0 %v8367_v32  ;;  %v8888_v32 = vld [vmem:[#allocation3 + $0x129] sm:$0xff] }
 0x706   : > { %11843 = vmatprep.subr.bf16.mxu0 %v12819_v61  ;;  %v8909_v28 = vpack.c.bf16 %v8888_v32, %v8887_v2 }
 0x708   : > { %11780 = vmatmul.mubr.msk.bf16.gmra.mrb[36].mxu0 %vm6908_vm10, %v14560_v37  ;;  %v12820_v37 = vld [vmem:[%s15258_s6 + $0x50] ss:$0 sps:$4 sm:$0xff]  }
 0x709   : > { %11783 = vmatprep.mubr.msk.bf16.mxu0 %vm6908_vm10, %v14587_v3  ;;  %v8672_v3 = vsel %vm3641_vm7, %v12820_v37, 0 }
 0x710   : > { %11784 = vmatmul.mubr.msk.bf16.gmra.mrb[40].mxu0 %vm6908_vm10, %v14589_v62  ;;  %v12821_v62 = vld [vmem:[%s15258_s6 + $0x54] sm:$0xff]  }
 0x711   : > { %11787 = vmatprep.mubr.msk.bf16.mxu0 %vm6908_vm10, %v14615_v8  ;;  %v8287_v8 = vld [vmem:[#allocation3 + $0x182] sm:$0xff] }
 0x718   : > { %11788 = vmatmul.mubr.msk.bf16.gmra.mrb[44].mxu0 %vm6908_vm10, %v14617_v27  ;;  %v8288_v27 = vld [vmem:[#allocation3 + $0x18a] sm:$0xff] }
 0x719   : > { %11791 = vmatprep.mubr.msk.bf16.mxu0 %vm6908_vm10, %v14643_v44  ;;  %v14969_v44 = vpack.c.bf16 %v8288_v27, %v8287_v8  ;;  %v8891_v27 = vld [vmem:[#allocation3 + $0x151] sm:$0xff] }
 0x720   : > { %11792 = vmatmul.mubr.msk.bf16.gmra.mrb[48].mxu0 %vm6908_vm10, %v14645_v5  ;;  %v12822_v5 = vld [vmem:[%s15258_s6 + $0x5c] ss:$0 sps:$4 sm:$0xff]  }
 0x721   : > { %11795 = vmatprep.mubr.msk.bf16.mxu0 %vm6908_vm10, %v14670_v45  ;;  %v8977_v45 = vsel %vm3641_vm7, %v12822_v5, 0 }
 0x728   : > { %11796 = vmatmul.mubr.msk.bf16.gmra.mrb[52].mxu0 %vm6908_vm10, %v14672_v55  ;;  %v12823_v55 = vld [vmem:[%s15258_s6 + $0x60] sm:$0xff]  }
 0x729   : > { %11799 = vmatprep.mubr.msk.bf16.mxu0 %vm6908_vm10, %v14690_v18  ;;  %v8592_v18 = vld [vmem:[#allocation3 + $0x198] sm:$0xff] }
 0x730   : > { %11800 = vmatmul.mubr.msk.bf16.gmra.mrb[56].mxu0 %vm6908_vm10, %v14692_v25  ;;  %v8593_v25 = vld [vmem:[#allocation3 + $0x1a0] sm:$0xff] }
 0x731   : > { %11803 = vmatprep.mubr.msk.bf16.mxu0 %vm6908_vm10, %v14700_v6  ;;  %v8609_v6 = vpack.c.bf16 %v8593_v25, %v8592_v18  ;;  %v8897_v25 = vld [vmem:[#allocation3 + $0x199] sm:$0xff] }
 0x738   : > { %11804 = vmatmul.mubr.msk.bf16.gmra.mrb[60].mxu0 %vm6908_vm10, %v14927_v17 }
 0x739   : > { %11811 = vmatprep.mubr.msk.bf16.mxu0 %vm6908_vm10, %v14778_v57 }
 0x740   : > { %11812 = vmatmul.mubr.msk.bf16.vlgmr.msra.gmra.mrb[32].mxu0 %vm6908_vm10, %v14783_v7 }
 0x741   : > { %11844 = vmatpush3.bf16.msra.mxu0 %v12819_v61  ;;  %11815 = vmatprep.mubr.msk.bf16.mxu0 %vm6908_vm10, %v14795_v21 }
 0x742   : > { %12736 = vmatprep.subr.msk.bf16.mxu0 %vm3641_vm7, %v12820_v37  ;;  %v8889_v37 = vld [vmem:[#allocation3 + $0x139] sm:$0xff] }
 0x745   : > { %11846 = vmatpush3.bf16.msra.mxu0 %v8672_v3  ;;  %v8890_v3 = vld [vmem:[#allocation3 + $0x141] sm:$0xff] }
 0x746   : > { %11879 = vmatprep.subr.bf16.mxu0 %v12821_v62  ;;  %v8910_v8 = vpack.c.bf16 %v8890_v3, %v8889_v37 }
 0x748   : > { %11816 = vmatmul.mubr.msk.bf16.gmra.mrb[36].mxu0 %vm6908_vm10, %v14797_v59 }
 0x749   : > { %11819 = vmatprep.mubr.msk.bf16.mxu0 %vm6908_vm10, %v14803_v42 }
 0x750   : > { %11820 = vmatmul.mubr.msk.bf16.gmra.mrb[40].mxu0 %vm6908_vm10, %v14805_v39 }
 0x751   : > { %11823 = vmatprep.mubr.msk.bf16.mxu0 %vm6908_vm10, %v14811_v48 }
 0x758   : > { %11824 = vmatmul.mubr.msk.bf16.gmra.mrb[44].mxu0 %vm6908_vm10, %v14813_v12 }
 0x759   : > { %11827 = vmatprep.mubr.msk.bf16.mxu0 %vm6908_vm10, %v14819_v53 }
 0x760   : > { %11828 = vmatmul.mubr.msk.bf16.gmra.mrb[48].mxu0 %vm6908_vm10, %v14821_v51 }
 0x761   : > { %11831 = vmatprep.mubr.msk.bf16.mxu0 %vm6908_vm10, %v14827_v56 }
 0x768   : > { %11832 = vmatmul.mubr.msk.bf16.gmra.mrb[52].mxu0 %vm6908_vm10, %v14829_v36 }
 0x769   : > { %11835 = vmatprep.mubr.msk.bf16.mxu0 %vm6908_vm10, %v14835_v14 }
 0x770   : > { %11836 = vmatmul.mubr.msk.bf16.gmra.mrb[56].mxu0 %vm6908_vm10, %v14837_v41 }
 0x771   : > { %11839 = vmatprep.mubr.msk.bf16.mxu0 %vm6908_vm10, %v14843_v10 }
 0x778   : > { %11840 = vmatmul.mubr.msk.bf16.gmra.mrb[60].mxu0 %vm6908_vm10, %v14969_v44 }
 0x779   : > { %11847 = vmatprep.mubr.msk.bf16.mxu0 %vm6908_vm10, %v14710_v4  ;;  %v8868_v4 = vld [vmem:[#allocation3 + $0x39] sm:$0xff] }
 0x780   : > { %11848 = vmatmul.mubr.msk.bf16.vlgmr.msra.gmra.mrb[32].mxu0 %vm6908_vm10, %v14724_v13  ;;  %v8867_v13 = vld [vmem:[#allocation3 + $0x31] sm:$0xff] }
 0x781   : > { %11880 = vmatpush3.bf16.msra.mxu0 %v12821_v62  ;;  %11851 = vmatprep.mubr.msk.bf16.mxu0 %vm6908_vm10, %v14727_v0  ;;  %v8899_v0 = vpack.c.bf16 %v8868_v4, %v8867_v13  ;;  %v8892_v62 = vld [vmem:[#allocation3 + $0x159] sm:$0xff] }
 0x782   : > { %12737 = vmatprep.subr.msk.bf16.mxu0 %vm3641_vm7, %v12822_v5  ;;  %v8911_v5 = vpack.c.bf16 %v8892_v62, %v8891_v27 }
 0x785   : > { %11882 = vmatpush3.bf16.msra.mxu0 %v8977_v45  ;;  %v8893_v45 = vld [vmem:[#allocation3 + $0x169] sm:$0xff] }
 0x786   : > { %11915 = vmatprep.subr.bf16.mxu0 %v12823_v55 }
 0x788   : > { %11852 = vmatmul.mubr.msk.bf16.gmra.mrb[36].mxu0 %vm6908_vm10, %v14733_v38  ;;  %v8869_v38 = vld [vmem:[#allocation3 + $0x49] sm:$0xff] }
 0x789   : > { %11855 = vmatprep.mubr.msk.bf16.mxu0 %vm6908_vm10, %v14735_v9  ;;  %v8870_v9 = vld [vmem:[#allocation3 + $0x51] sm:$0xff] }
 0x790   : > { %11856 = vmatmul.mubr.msk.bf16.gmra.mrb[40].mxu0 %vm6908_vm10, %v14741_v24  ;;  %v8872_v24 = vld [vmem:[#allocation3 + $0x69] sm:$0xff] }
 0x791   : > { %11859 = vmatprep.mubr.msk.bf16.mxu0 %vm6908_vm10, %v14743_v47  ;;  %v8900_v47 = vpack.c.bf16 %v8870_v9, %v8869_v38 }
 0x798   : > { %11860 = vmatmul.mubr.msk.bf16.gmra.mrb[44].mxu0 %vm6908_vm10, %v14749_v22  ;;  %v8871_v22 = vld [vmem:[#allocation3 + $0x61] sm:$0xff] }
 0x799   : > { %11863 = vmatprep.mubr.msk.bf16.mxu0 %vm6908_vm10, %v14751_v34  ;;  %v12824_v34 = vld [vmem:[%s15258_s6 + $0x68] ss:$0 sps:$4 sm:$0xff]  }
 0x7a0   : > { %11864 = vmatmul.mubr.msk.bf16.gmra.mrb[48].mxu0 %vm6908_vm10, %v14757_v58  ;;  %v8901_v58 = vpack.c.bf16 %v8872_v24, %v8871_v22 }
 0x7a1   : > { %11867 = vmatprep.mubr.msk.bf16.mxu0 %vm6908_vm10, %v14759_v46  ;;  %v9282_v46 = vsel %vm3641_vm7, %v12824_v34, 0 }
 0x7a8   : > { %11868 = vmatmul.mubr.msk.bf16.gmra.mrb[52].mxu0 %vm6908_vm10, %v14765_v33  ;;  %v8873_v33 = vld [vmem:[#allocation3 + $0x79] sm:$0xff] }
 0x7a9   : > { %11871 = vmatprep.mubr.msk.bf16.mxu0 %vm6908_vm10, %v14767_v11  ;;  %v8874_v11 = vld [vmem:[#allocation3 + $0x81] sm:$0xff] }
 0x7aa   : > { %v8902_v57 = vpack.c.bf16 %v8874_v11, %v8873_v33 }
 0x7b0   : > { %11872 = vmatmul.mubr.msk.bf16.gmra.mrb[56].mxu0 %vm6908_vm10, %v14773_v43  ;;  %v8876_v43 = vld [vmem:[#allocation3 + $0x99] sm:$0xff] }
 0x7b1   : > { %11875 = vmatprep.mubr.msk.bf16.mxu0 %vm6908_vm10, %v14885_v23  ;;  %v8903_v52 = vpack.c.bf16 %v8876_v43, %v8875_v54  ;;  %v8885_v23 = vld [vmem:[#allocation3 + $0x109] sm:$0xff] }
 0x7b2   : > { %v8908_v61 = vpack.c.bf16 %v8886_v40, %v8885_v23 }
 0x7b8   : > { %11876 = vmatmul.mubr.msk.bf16.gmra.mrb[60].mxu0 %vm6908_vm10, %v8609_v6  ;;  %v8898_v6 = vld [vmem:[#allocation3 + $0x1a1] sm:$0xff] }
 0x7b9   : > { %11883 = vmatprep.mubr.msk.bf16.mxu0 %vm6908_vm10, %v8899_v0  ;;  %v8914_v4 = vpack.c.bf16 %v8898_v6, %v8897_v25 }
 0x7c0   : > { %11884 = vmatmul.mubr.msk.bf16.vlgmr.msra.gmra.mrb[32].mxu0 %vm6908_vm10, %v8900_v47 }
 0x7c1   : > { %11916 = vmatpush3.bf16.msra.mxu0 %v12823_v55  ;;  %11887 = vmatprep.mubr.msk.bf16.mxu0 %vm6908_vm10, %v8901_v58  ;;  %v8894_v55 = vld [vmem:[#allocation3 + $0x171] sm:$0xff] }
 0x7c2   : > { %12738 = vmatprep.subr.msk.bf16.mxu0 %vm3641_vm7, %v12824_v34  ;;  %v8912_v18 = vpack.c.bf16 %v8894_v55, %v8893_v45 }
 0x7c5   : > { %11918 = vmatpush3.bf16.msra.mxu0 %v9282_v46 }
 0x7c8   : > { %11888 = vmatmul.mubr.msk.bf16.gmra.mrb[36].mxu0 %vm6908_vm10, %v8902_v57 }
 0x7c9   : > { %11891 = vmatprep.mubr.msk.bf16.mxu0 %vm6908_vm10, %v8903_v52 }
 0x7d0   : > { %11892 = vmatmul.mubr.msk.bf16.gmra.mrb[40].mxu0 %vm6908_vm10, %v8904_v26 }
 0x7d1   : > { %11895 = vmatprep.mubr.msk.bf16.mxu0 %vm6908_vm10, %v8905_v20 }
 0x7d8   : > { %11896 = vmatmul.mubr.msk.bf16.gmra.mrb[44].mxu0 %vm6908_vm10, %v8906_v35 }
 0x7d9   : > { %11899 = vmatprep.mubr.msk.bf16.mxu0 %vm6908_vm10, %v8907_v15 }
 0x7e0   : > { %11900 = vmatmul.mubr.msk.bf16.gmra.mrb[48].mxu0 %vm6908_vm10, %v8908_v61 }
 0x7e1   : > { %11903 = vmatprep.mubr.msk.bf16.mxu0 %vm6908_vm10, %v8909_v28 }
 0x7e8   : > { %11904 = vmatmul.mubr.msk.bf16.gmra.mrb[52].mxu0 %vm6908_vm10, %v8910_v8 }
 0x7e9   : > { %11907 = vmatprep.mubr.msk.bf16.mxu0 %vm6908_vm10, %v8911_v5 }
 0x7f0   : > { %11908 = vmatmul.mubr.msk.bf16.gmra.mrb[56].mxu0 %vm6908_vm10, %v8912_v18 }
 0x7f1   : > { %11911 = vmatprep.mubr.msk.bf16.mxu0 %vm6908_vm10, %v14927_v17 }
 0x7f8   : > { %11912 = vmatmul.mubr.msk.bf16.gmra.mrb[60].mxu0 %vm6908_vm10, %v8914_v4 }
 0x7f9   : > { %11919 = vmatprep.mubr.msk.bf16.mxu0 %vm6908_vm10, %v14783_v7  ;;  %v9202_v7 = vld [vmem:[#allocation3 + $0x19a] sm:$0xff] }
 0x800   : > { %11920 = vmatmul.mubr.msk.bf16.vlgmr.msra.gmra.mrb[32].mxu0 %vm6908_vm10, %v14795_v21  ;;  %v9203_v21 = vld [vmem:[#allocation3 + $0x1a2] sm:$0xff] }
 0x801   : > { %11923 = vmatprep.mubr.msk.bf16.mxu0 %vm6908_vm10, %v14797_v59  ;;  %v9219_v59 = vpack.c.bf16 %v9203_v21, %v9202_v7 }
 0x808   : > { %11924 = vmatmul.mubr.msk.bf16.gmra.mrb[36].mxu0 %vm6908_vm10, %v14803_v42  ;;  %v12926_v42 = vmov 0  }
 0x809   : > { %11927 = vmatprep.mubr.msk.bf16.mxu0 %vm6908_vm10, %v14805_v39  ;;  %12806 = vset.pattern.permute.xlu0 %v12926_v42  ;;  %v9663_v39 = vld [vmem:[#allocation5] sm:$0x1] }
 0x80a   : > { %9666 = vperm.xlu0 %12806, %v9663_v39  }
 0x810   : > { %11928 = vmatmul.mubr.msk.bf16.gmra.mrb[40].mxu0 %vm6908_vm10, %v14811_v48  ;;  %v15068_v48 = vld [vmem:[%s15259_s7] ss:$0 sm:$0xff] }
 0x811   : > { %11931 = vmatprep.mubr.msk.bf16.mxu0 %vm6908_vm10, %v14813_v12 }
 0x818   : > { %11932 = vmatmul.mubr.msk.bf16.gmra.mrb[44].mxu0 %vm6908_vm10, %v14819_v53 }
 0x819   : > { %11935 = vmatprep.mubr.msk.bf16.mxu0 %vm6908_vm10, %v14821_v51 }
 0x820   : > { %11936 = vmatmul.mubr.msk.bf16.gmra.mrb[48].mxu0 %vm6908_vm10, %v14827_v56 }
 0x821   : > { %11939 = vmatprep.mubr.msk.bf16.mxu0 %vm6908_vm10, %v14829_v36  ;;  %v15074_v36 = vld [vmem:[%s15260_s8] ss:$0 sm:$0xff] }
 0x828   : > { %11940 = vmatmul.mubr.msk.bf16.gmra.mrb[52].mxu0 %vm6908_vm10, %v14835_v14 }
 0x829   : > { %11943 = vmatprep.mubr.msk.bf16.mxu0 %vm6908_vm10, %v14837_v41 }
 0x830   : > { %11944 = vmatmul.mubr.msk.bf16.gmra.mrb[56].mxu0 %vm6908_vm10, %v14843_v10 }
 0x831   : > { %11947 = vmatprep.mubr.msk.bf16.mxu0 %vm6908_vm10, %v14969_v44 }
 0x838   : > { %11948 = vmatmul.mubr.msk.bf16.gmra.mrb[60].mxu0 %vm6908_vm10, %v9219_v59 }
 0x8d3   : > { %v11921_v12 = vpop.f32.mrb[32].mxu0 }
 0x8d4   : > { %v9318_v53 = vpop.f32.mrb[33].mxu0  ;;  %v9486_v17 = vadd.f32 %v11921_v12, %v15068_v48 }
 0x8d5   : > { %v9484_v51 = vadd.f32 %v15068_v48, %v9318_v53  ;;  %v11922_v56 = vpop.f32.mrb[34].mxu0 }
 0x8d6   : > { %v9321_v14 = vpop.f32.mrb[35].mxu0  ;;  %v9518_v9 = vmax.f32 %v9486_v17, 0.0  ;;  %v9487_v24 = vadd.f32 %v11922_v56, %v15068_v48 }
 0x8d7   : > { %v9516_v41 = vmax.f32 %v9484_v51, 0.0  ;;  %v9485_v10 = vadd.f32 %v15068_v48, %v9321_v14 }
 0x8d8   : > { %v9557_v58 = vmul.f32 %v15074_v36, %v9518_v9  ;;  %v9519_v46 = vmax.f32 %v9487_v24, 0.0 }
 0x8d9   : > { %v9555_v44 = vmul.f32 %v15074_v36, %v9516_v41  ;;  %v9517_v13 = vmax.f32 %v9485_v10, 0.0 }
 0x8da   : > { %v9558_v57 = vmul.f32 %v15074_v36, %v9519_v46 }
 0x8db   : > { %9587 = vxpose.xlu1.b32.start [1/16] (narrow) %v9555_v44, 8  ;;  %v11925_v0 = vpop.f32.mrb[36].mxu0  ;;  %v9556_v47 = vmul.f32 %v15074_v36, %v9517_v13 }
 0x8dc   : > { %v9334_v38 = vpop.f32.mrb[37].mxu0  ;;  %v9490_v29 = vadd.f32 %v11925_v0, %v15068_v48 }
 0x8dd   : > { %v11926_v22 = vpop.f32.mrb[38].mxu0  ;;  %v9488_v33 = vadd.f32 %v15068_v48, %v9334_v38 }
 0x8de   : > { %v9337_v34 = vpop.f32.mrb[39].mxu0  ;;  %v9522_v63 = vmax.f32 %v9490_v29, 0.0  ;;  %v9491_v1 = vadd.f32 %v11926_v22, %v15068_v48 }
 0x8df   : > { %9588 = vxpose.xlu1.b32.cont [2/16] (narrow) %v9556_v47, 8  ;;  %v9520_v54 = vmax.f32 %v9488_v33, 0.0  ;;  %v9489_v52 = vadd.f32 %v15068_v48, %v9337_v34 }
 0x8e0   : > { %v9561_v40 = vmul.f32 %v15074_v36, %v9522_v63  ;;  %v9523_v32 = vmax.f32 %v9491_v1, 0.0 }
 0x8e1   : > { %v9559_v26 = vmul.f32 %v15074_v36, %v9520_v54  ;;  %v9521_v31 = vmax.f32 %v9489_v52, 0.0 }
 0x8e2   : > { %v9562_v37 = vmul.f32 %v15074_v36, %v9523_v32 }
 0x8e3   : > { %9589 = vxpose.xlu1.b32.cont [3/16] (narrow) %v9557_v58, 8  ;;  %v11929_v11 = vpop.f32.mrb[40].mxu0  ;;  %v9560_v35 = vmul.f32 %v15074_v36, %v9521_v31 }
 0x8e4   : > { %v9350_v43 = vpop.f32.mrb[41].mxu0  ;;  %v9494_v55 = vadd.f32 %v11929_v11, %v15068_v48 }
 0x8e5   : > { %v11930_v30 = vpop.f32.mrb[42].mxu0  ;;  %v9492_v23 = vadd.f32 %v15068_v48, %v9350_v43 }
 0x8e6   : > { %v9353_v60 = vpop.f32.mrb[43].mxu0  ;;  %v9526_v59 = vmax.f32 %v9494_v55, 0.0  ;;  %v9495_v42 = vadd.f32 %v11930_v30, %v15068_v48 }
 0x8e7   : > { %9590 = vxpose.xlu1.b32.cont [4/16] (narrow) %v9558_v57, 8  ;;  %v9524_v2 = vmax.f32 %v9492_v23, 0.0  ;;  %v9493_v3 = vadd.f32 %v15068_v48, %v9353_v60 }
 0x8e8   : > { %v9527_v17 = vmax.f32 %v9495_v42, 0.0  ;;  %v9565_v44 = vmul.f32 %v15074_v36, %v9526_v59 }
 0x8e9   : > { %v9563_v18 = vmul.f32 %v15074_v36, %v9524_v2  ;;  %v9525_v25 = vmax.f32 %v9493_v3, 0.0 }
 0x8ea   : > { %v9566_v47 = vmul.f32 %v15074_v36, %v9527_v17 }
 0x8eb   : > { %9591 = vxpose.xlu1.b32.cont [5/16] (narrow) %v9559_v26, 8  ;;  %v15087_v20 = vpop.f32.mrb[44].mxu0  ;;  %v9564_v12 = vmul.f32 %v15074_v36, %v9525_v25 }
 0x8ec   : > { %v9366_v19 = vpop.f32.mrb[45].mxu0  ;;  %v9498_v60 = vadd.f32 %v15087_v20, %v15068_v48 }
 0x8ed   : > { %v15091_v50 = vpop.f32.mrb[46].mxu0  ;;  %v9496_v10 = vadd.f32 %v15068_v48, %v9366_v19 }
 0x8ee   : > { %v9369_v15 = vpop.f32.mrb[47].mxu0 }
 0x8ef   : > { %9592 = vxpose.xlu1.b32.cont [6/16] (narrow) %v9560_v35, 8  ;;  %v9528_v9 = vmax.f32 %v9496_v10, 0.0  ;;  %v9497_v22 = vadd.f32 %v15068_v48, %v9369_v15 }
 0x8f1   : > { %v9567_v29 = vmul.f32 %v15074_v36, %v9528_v9  ;;  %v9529_v19 = vmax.f32 %v9497_v22, 0.0 }
 0x8f3   : > { %9593 = vxpose.xlu1.b32.cont [7/16] (narrow) %v9561_v40, 8  ;;  %v11937_v61 = vpop.f32.mrb[48].mxu0  ;;  %v9568_v3 = vmul.f32 %v15074_v36, %v9529_v19 }
 0x8f4   : > { %v9382_v28 = vpop.f32.mrb[49].mxu0  ;;  %v9502_v6 = vadd.f32 %v11937_v61, %v15068_v48 }
 0x8f5   : > { %v9500_v62 = vadd.f32 %v15068_v48, %v9382_v28  ;;  %v11938_v8 = vpop.f32.mrb[50].mxu0  ;;  %v9530_v28 = vmax.f32 %v9498_v60, 0.0 }
 0x8f6   : > { %v9385_v27 = vpop.f32.mrb[51].mxu0  ;;  %v9534_v53 = vmax.f32 %v9502_v6, 0.0  ;;  %v9503_v51 = vadd.f32 %v11938_v8, %v15068_v48 }
 0x8f7   : > { %v9532_v5 = vmax.f32 %v9500_v62, 0.0  ;;  %v9501_v45 = vadd.f32 %v15068_v48, %v9385_v27  ;;  %9594 = vxpose.xlu1.b32.cont [8/16] (narrow) %v9562_v37, 8  ;;  %v9499_v37 = vadd.f32 %v15091_v50, %v15068_v48 }
 0x8f8   : > { %v9573_v13 = vmul.f32 %v15074_v36, %v9534_v53  ;;  %v9535_v0 = vmax.f32 %v9503_v51, 0.0 }
 0x8f9   : > { %v9571_v4 = vmul.f32 %v15074_v36, %v9532_v5  ;;  %v9533_v7 = vmax.f32 %v9501_v45, 0.0  ;;  %v9531_v59 = vmax.f32 %v9499_v37, 0.0 }
 0x8fa   : > { %v9574_v46 = vmul.f32 %v15074_v36, %v9535_v0 }
 0x8fb   : > { %9595 = vxpose.xlu1.b32.cont [9/16] (narrow) %v9563_v18, 8  ;;  %9619 = vxpose.xlu0.b32.start [1/16] (narrow) %v9571_v4, 8  ;;  %v11941_v21 = vpop.f32.mrb[52].mxu0  ;;  %v9572_v56 = vmul.f32 %v15074_v36, %v9533_v7 }
 0x8fc   : > { %v9398_v39 = vpop.f32.mrb[53].mxu0  ;;  %v9506_v63 = vadd.f32 %v11941_v21, %v15068_v48  ;;  %v9569_v21 = vmul.f32 %v15074_v36, %v9530_v28 }
 0x8fd   : > { %v11942_v14 = vpop.f32.mrb[54].mxu0  ;;  %v9504_v38 = vadd.f32 %v15068_v48, %v9398_v39 }
 0x8fe   : > { %v9401_v41 = vpop.f32.mrb[55].mxu0  ;;  %v9538_v27 = vmax.f32 %v9506_v63, 0.0  ;;  %v9507_v5 = vadd.f32 %v11942_v14, %v15068_v48 }
 0x8ff   : > { %9596 = vxpose.xlu1.b32.cont [10/16] (narrow) %v9564_v12, 8  ;;  %9620 = vxpose.xlu0.b32.cont [2/16] (narrow) %v9572_v56, 8  ;;  %v9536_v33 = vmax.f32 %v9504_v38, 0.0  ;;  %v9505_v11 = vadd.f32 %v15068_v48, %v9401_v41 }
 0x900   : > { %v9577_v12 = vmul.f32 %v15074_v36, %v9538_v27  ;;  %v9539_v53 = vmax.f32 %v9507_v5, 0.0 }
 0x901   : > { %v9575_v15 = vmul.f32 %v15074_v36, %v9536_v33  ;;  %v9537_v23 = vmax.f32 %v9505_v11, 0.0 }
 0x902   : > { %v9578_v10 = vmul.f32 %v15074_v36, %v9539_v53 }
 0x903   : > { %9597 = vxpose.xlu1.b32.cont [11/16] (narrow) %v9565_v44, 8  ;;  %9621 = vxpose.xlu0.b32.cont [3/16] (narrow) %v9573_v13, 8  ;;  %v11945_v24 = vpop.f32.mrb[56].mxu0  ;;  %v9576_v45 = vmul.f32 %v15074_v36, %v9537_v23 }
 0x904   : > { %v9510_v34 = vadd.f32 %v11945_v24, %v15068_v48  ;;  %v9414_v58 = vpop.f32.mrb[57].mxu0  ;;  %v9671_v24 = vsub.s32 0, %v14461_v16 }
 0x905   : > { %v9508_v43 = vadd.f32 %v15068_v48, %v9414_v58  ;;  %v11946_v57 = vpop.f32.mrb[58].mxu0 }
 0x906   : > { %v9542_v54 = vmax.f32 %v9510_v34, 0.0  ;;  %v9511_v52 = vadd.f32 %v11946_v57, %v15068_v48  ;;  %v9417_v30 = vpop.f32.mrb[59].mxu0 }
 0x907   : > { %v9540_v26 = vmax.f32 %v9508_v43, 0.0  ;;  %v9509_v31 = vadd.f32 %v15068_v48, %v9417_v30  ;;  %9598 = vxpose.xlu1.b32.cont [12/16] (narrow) %v9566_v47, 8  ;;  %9622 = vxpose.xlu0.b32.cont [4/16] (narrow) %v9574_v46, 8  ;;  %v9667_v47 = vpop.permute.xlu0 %9666  ;;  %v12927_v30 = vmov 1966171168  }
 0x908   : > { %v9581_v1 = vmul.f32 %v15074_v36, %v9542_v54  ;;  %v9543_v35 = vmax.f32 %v9511_v52, 0.0  ;;  %v9672_v22 = vrot.slane %v9667_v47, %v9671_v24  ;;  %v9679_v60 = vunpack.c.l.s4 %v12927_v30 }
 0x909   : > { %v9579_v40 = vmul.f32 %v15074_v36, %v9540_v26  ;;  %v9541_v32 = vmax.f32 %v9509_v31, 0.0 }
 0x90a   : > { %v9582_v20 = vmul.f32 %v15074_v36, %v9543_v35  ;;  %v9680_v31 = vunpack.c.0.s8 %v9679_v60 }
 0x90b   : > { %v9580_v61 = vmul.f32 %v15074_v36, %v9541_v32  ;;  %9599 = vxpose.xlu1.b32.cont [13/16] (narrow) %v9567_v29, 8  ;;  %9623 = vxpose.xlu0.b32.cont [5/16] (narrow) %v9575_v15, 8  ;;  %v11949_v2 = vpop.f32.mrb[60].mxu0 }
 0x90c   : > { %v9514_v62 = vadd.f32 %v11949_v2, %v15068_v48  ;;  %v9430_v8 = vpop.f32.mrb[61].mxu0 }
 0x90d   : > { %v9512_v55 = vadd.f32 %v15068_v48, %v9430_v8  ;;  %v11950_v18 = vpop.f32.mrb[62].mxu0 }
 0x90e   : > { %v9546_v25 = vmax.f32 %v9514_v62, 0.0  ;;  %v9515_v6 = vadd.f32 %v11950_v18, %v15068_v48  ;;  %v9433_v4 = vpop.f32.mrb[63].mxu0  ;;  %v9720_v18 = vsub.s32 1, %v14461_v16 }
 0x90f   : > { %v9544_v7 = vmax.f32 %v9512_v55, 0.0  ;;  %v9513_v50 = vadd.f32 %v15068_v48, %v9433_v4  ;;  %9600 = vxpose.xlu1.b32.cont [14/16] (narrow) %v9568_v3, 8  ;;  %9624 = vxpose.xlu0.b32.cont [6/16] (narrow) %v9576_v45, 8  ;;  %v9570_v48 = vmul.f32 %v15074_v36, %v9531_v59  ;;  %v9698_v55 = vld [vmem:[%s13058_s26] sm:$0x3]  ;;  %s10467_s26 = sshll.u32 %s13014_s9, 5 }
 0x910   : > { %v9585_v42 = vmul.f32 %v15074_v36, %v9546_v25  ;;  %v9547_v39 = vmax.f32 %v9515_v6, 0.0  ;;  %v9717_v6 = vrot.slane %v9698_v55, %v9671_v24  ;;  %s15184_s13 = scalar_lea.hbm %s15262_s10, %s10467_s26 }
 0x911   : > { %v9583_v51 = vmul.f32 %v15074_v36, %v9544_v7  ;;  %v9545_v56 = vmax.f32 %v9513_v50, 0.0  ;;  %v9721_v50 = vrot.slane %v9698_v55, %v9720_v18 }
 0x912   : > { %v9586_v14 = vmul.f32 %v15074_v36, %v9547_v39 }
 0x913   : > { %v9584_v41 = vmul.f32 %v15074_v36, %v9545_v56  ;;  %9601 = vxpose.xlu1.b32.cont [15/16] (narrow) %v9569_v21, 8  ;;  %9625 = vxpose.xlu0.b32.cont [7/16] (narrow) %v9577_v12, 8  ;;  %v9792_v39 = vsel %vm773_vm4, %v9721_v50, 0.0 }
 0x917   : > { %9602 = vxpose.xlu1.b32.end [16/16] (narrow) %v9570_v48, 8  ;;  %9626 = vxpose.xlu0.b32.cont [8/16] (narrow) %v9578_v10, 8 }
 0x91b   : > { %9627 = vxpose.xlu0.b32.cont [9/16] (narrow) %v9579_v40, 8 }
 0x91f   : > { %9628 = vxpose.xlu0.b32.cont [10/16] (narrow) %v9580_v61, 8 }
 0x923   : > { %9629 = vxpose.xlu0.b32.cont [11/16] (narrow) %v9581_v1, 8  ;;  %v9683_v1 = vsub.s32 %v9680_v31, %v14461_v16 }
 0x927   : > { %9630 = vxpose.xlu0.b32.cont [12/16] (narrow) %v9582_v20, 8 }
 0x92b   : > { %9631 = vxpose.xlu0.b32.cont [13/16] (narrow) %v9583_v51, 8 }
 0x92f   : > { %9632 = vxpose.xlu0.b32.cont [14/16] (narrow) %v9584_v41, 8 }
 0x933   : > { %9633 = vxpose.xlu0.b32.cont [15/16] (narrow) %v9585_v42, 8  ;;  %v9791_v42 = vsel %vm773_vm4, %v9717_v6, 0.0 }
 0x937   : > { %9634 = vxpose.xlu0.b32.end [16/16] (narrow) %v9586_v14, 8 }
 0x95b   : > { %v9603_v17 = vpop.trf.xlu1 }
 0x95c   : > { %v9651_v44 = vrot.slane %v9603_v17, 4 }
 0x95e   : > { %v9652_v13 = vadd.f32 %v9651_v44, %v9603_v17 }
 0x960   : > { %v9653_v0 = vrot.slane %v9652_v13, 2 }
 0x962   : > { %v9654_v38 = vadd.f32 %v9653_v0, %v9652_v13 }
 0x964   : > { %v9655_v9 = vrot.slane %v9654_v38, 1 }
 0x966   : > { %v9656_v36 = vadd.f32 %v9655_v9, %v9654_v38 }
 0x968   : > { %v15146_v34 = vadd.f32 %v9672_v22, %v9656_v36 }
 0x96a   : > { %v9728_v58 = vand.u32 2147483647, %v15146_v34  ;;  %v10450_v57 = vmul.f32 -1.442695, %v15146_v34  ;;  %v9724_v51 = vmul.f32 %v9717_v6, %v15146_v34  ;;  %v9711_v56 = vmax.f32 %v15146_v34, 0.0 }
 0x96c   : > { %v9730_v33 = vsub.f32 0.0, %v9728_v58  ;;  %12825 = vpow2.f32 %v10450_v57  ;;  %v9726_v58 = vsub.f32 %v9711_v56, %v9724_v51 }
 0x96e   : > { %v9732_v54 = vmul.f32 1.442695, %v9730_v33 }
 0x970   : > { %12827 = vpow2.f32 %v9732_v54 }
 0x976   : > { %v12826_v32 = vpop.eup %12825 }
 0x977   : > { %v9705_v37 = vadd.f32 1.0, %v12826_v32 }
 0x97a   : > { %v12828_v61 = vpop.eup %12827 }
 0x97b   : > { %v9635_v46 = vpop.trf.xlu0  ;;  %v9736_v3 = vadd.f32 1.0, %v12828_v61  ;;  %v9739_v5 = vmul.f32 -0.5, %v12828_v61  ;;  %v9742_v7 = vand.u32 2147483647, %v12828_v61 }
 0x97c   : > { %v9657_v11 = vrot.slane %v9635_v46, 4 }
 0x97d   : > { %v9740_v4 = vadd.f32 1.0, %v9739_v5  ;;  %vm15166_vm15 = vcmp.lt.f32.partialorder %v9742_v7, 0.0004427343 }
 0x97e   : > { %v9658_v43 = vadd.f32 %v9657_v11, %v9635_v46 }
 0x97f   : > { %v9741_v16 = vmul.f32 %v12828_v61, %v9740_v4 }
 0x980   : > { %v9659_v52 = vrot.slane %v9658_v43, 2 }
 0x982   : > { %v9660_v29 = vadd.f32 %v9659_v52, %v9658_v43 }
 0x984   : > { %v9661_v26 = vrot.slane %v9660_v29, 1 }
 0x986   : > { %v9662_v19 = vadd.f32 %v9661_v26, %v9660_v29 }
 0x988   : > { %v15150_v63 = vadd.f32 %v9672_v22, %v9662_v19 }
 0x98a   : > { %v9729_v35 = vand.u32 2147483647, %v15150_v63  ;;  %v10451_v15 = vmul.f32 -1.442695, %v15150_v63  ;;  %v9677_v23 = vcombine.low %v15146_v34, %v15150_v63  ;;  %v9712_v13 = vmax.f32 %v15150_v63, 0.0 }
 0x98b   : > { %v9725_v0 = vmul.f32 %v9721_v50, %v15150_v63  ;;  %v9793_v34 = vadd.f32 %v9792_v39, %v9791_v42 }
 0x98c   : > { %v9731_v40 = vsub.f32 0.0, %v9729_v35  ;;  %12829 = vpow2.f32 %v10451_v15  ;;  %v9684_v20 = vrot.slane %v9677_v23, %v9683_v1 }
 0x98d   : > { %v9727_v11 = vsub.f32 %v9712_v13, %v9725_v0 }
 0x98e   : > { %v9734_v2 = vmul.f32 1.442695, %v9731_v40  ;;  %v9691_v28 = vrot.slane %v9684_v20, %v9683_v1 }
 0x990   : > { %12831 = vpow2.f32 %v9734_v2  ;;  %9697 = vst.msk [vmem:[%s391_s27] sm:$0x3] %vm9695_vm14, %v9691_v28 }
 0x991   : > { %12833 = vrcp.f32 %v9705_v37 }
 0x992   : > { %12835 = vlog2.f32 %v9736_v3 }
 0x996   : > { %v12830_v62 = vpop.eup %12829 }
 0x997   : > { %v9706_v8 = vadd.f32 1.0, %v12830_v62 }
 0x999   : > { %12837 = vrcp.f32 %v9706_v8 }
 0x99a   : > { %v12832_v27 = vpop.eup %12831 }
 0x99b   : > { %v9745_v45 = vadd.f32 1.0, %v12832_v27  ;;  %v12834_v25 = vpop.eup %12833  ;;  %v9748_v21 = vmul.f32 -0.5, %v12832_v27  ;;  %v9751_v38 = vand.u32 2147483647, %v12832_v27 }
 0x99c   : > { %v12836_v49 = vpop.eup %12835  ;;  %v9757_v59 = vmul.f32 %v12834_v25, %v9717_v6  ;;  %v9775_v41 = vsel %vm773_vm4, %v12834_v25, 0.0 }
 0x99d   : > { %12839 = vlog2.f32 %v9745_v45  ;;  %v9738_v12 = vmul.f32 0.6931472, %v12836_v49  ;;  %v9749_v17 = vadd.f32 1.0, %v9748_v21  ;;  %vm9752_vm0 = vcmp.lt.f32.partialorder %v9751_v38, 0.0004427343 }
 0x99e   : > { %v9759_v9 = vsel %vm773_vm4, %v9757_v59, 0.0 }
 0x99f   : > { %v9744_v47 = vsel %vm15166_vm15, %v9741_v16, %v9738_v12  ;;  %v9750_v33 = vmul.f32 %v12832_v27, %v9749_v17 }
 0x9a0   : > { %v9754_v43 = vadd.f32 %v9744_v47, %v9726_v58 }
 0x9a2   : > { %v9807_v52 = vsel %vm773_vm4, %v9754_v43, 0.0 }
 0x9a3   : > { %v12838_v53 = vpop.eup %12837 }
 0x9a4   : > { %v9776_v48 = vsel %vm773_vm4, %v12838_v53, 0.0  ;;  %v9758_v10 = vmul.f32 %v12838_v53, %v9721_v50 }
 0x9a5   : > { %v9777_v44 = vadd.f32 %v9776_v48, %v9775_v41 }
 0x9a6   : > { %v9760_v24 = vsel %vm773_vm4, %v9758_v10, 0.0 }
 0x9a7   : > { %v12840_v36 = vpop.eup %12839  ;;  %9778 = vadd.xlane.f32.xlu1 %v9777_v44  ;;  %v9761_v22 = vadd.f32 %v9760_v24, %v9759_v9 }
 0x9a8   : > { %v9747_v46 = vmul.f32 0.6931472, %v12840_v36 }
 0x9a9   : > { %9762 = vadd.xlane.f32.xlu0 %v9761_v22 }
 0x9aa   : > { %v9753_v57 = vsel %vm9752_vm0, %v9750_v33, %v9747_v46 }
 0x9ab   : > { %9794 = vadd.xlane.f32.xlu1 %v9793_v34  ;;  %v9755_v54 = vadd.f32 %v9753_v57, %v9727_v11 }
 0x9ad   : > { %v9808_v30 = vsel %vm773_vm4, %v9755_v54, 0.0 }
 0x9ae   : > { %v9809_v60 = vadd.f32 %v9808_v30, %v9807_v52 }
 0x9b0   : > { %9810 = vadd.xlane.f32.xlu0 %v9809_v60 }
 0x9b1   : > { %12854 = shalt.err (!%p12851_p7)
}
 0x9b2   : > { %s12855_s27 = scalar_lea.hbm %s15184_s13, 32  ;;  %s12859_s26 = scalar_lea.hbm %s15262_s10, 64 }
 0x9b3   : > { %p12856_p8 = scmp.ne.s32.totalorder %s15184_s13, %s12855_s27  ;;  %p12860_p11 = scmp.lt.u32.totalorder %s15184_s13, %s15262_s10 }
 0x9b4   : > { %p12861_p12 = scmp.lt.u32.totalorder %s12859_s26, %s12855_s27  ;;  %p12863_p0 = scmp.lt.u32.totalorder %s12855_s27, %s15184_s13 }
 0x9b5   : > { %p12857_p9 = pnand %p12856_p8, %p13033_p5 }
 0x9b6   : > { %p12862_p13 = por %p12861_p12, %p12860_p11 }
 0x9b7   : > { %p12858_p10 = pneg %p12857_p9 }
 0x9b8   : > { %p12864_p1 = por %p12863_p0, %p12862_p13 }
 0x9ba   : > { %p12865_p3 = pnand %p12864_p1, %p12858_p10 }
 0x9bc   : > { %12868 = shalt.err (!%p12865_p3)
}
 0x9bd   : > { %12752 = dma.vmem_to_hbm [thread:$0]  (%p13033_p5), %s9854_s14, 32, %s15184_s13, %s9839_s25  }
 0x9be   : > { %s9756_s0 = sld [smem:[#allocation4]]  ;;  %s10452_s28 = sld [smem:[#allocation4 + $0x1]] }
 0x9bf   : > { %s10453_s13 = sld [smem:[#allocation4 + $0x2]]  ;;  %s10454_s25 = sld [smem:[#allocation4 + $0x3]] }
 0xa34   : > { %v9779_v29 = vpop.xlane.xlu1 %9778 }
 0xa35   : > { %v9780_v26 = vrot.slane %v9779_v29, 4 }
 0xa36   : > { %v9763_v31 = vpop.xlane.xlu0 %9762 }
 0xa37   : > { %v9781_v19 = vadd.f32 %v9780_v26, %v9779_v29  ;;  %v9764_v63 = vrot.slane %v9763_v31, 4 }
 0xa38   : > { %v9795_v1 = vpop.xlane.xlu1 %9794 }
 0xa39   : > { %v9782_v35 = vrot.slane %v9781_v19, 2  ;;  %v9765_v15 = vadd.f32 %v9764_v63, %v9763_v31  ;;  %v9796_v23 = vrot.slane %v9795_v1, 4 }
 0xa3b   : > { %v9766_v40 = vrot.slane %v9765_v15, 2  ;;  %v9797_v32 = vadd.f32 %v9796_v23, %v9795_v1  ;;  %v9783_v20 = vadd.f32 %v9782_v35, %v9781_v19 }
 0xa3d   : > { %v9798_v61 = vrot.slane %v9797_v32, 2  ;;  %v9811_v2 = vpop.xlane.xlu0 %9810  ;;  %v9767_v28 = vadd.f32 %v9766_v40, %v9765_v15  ;;  %v9784_v3 = vrot.slane %v9783_v20, 1 }
 0xa3e   : > { %v9812_v37 = vrot.slane %v9811_v2, 4 }
 0xa3f   : > { %v9799_v62 = vadd.f32 %v9798_v61, %v9797_v32  ;;  %v9768_v8 = vrot.slane %v9767_v28, 1  ;;  %v9785_v18 = vadd.f32 %v9784_v3, %v9783_v20 }
 0xa40   : > { %v9813_v27 = vadd.f32 %v9812_v37, %v9811_v2 }
 0xa41   : > { %v9769_v5 = vadd.f32 %v9768_v8, %v9767_v28  ;;  %v9800_v45 = vrot.slane %v9799_v62, 1 }
 0xa42   : > { %v9814_v55 = vrot.slane %v9813_v27, 2 }
 0xa43   : > { %12739 = vpush %v9769_v5  ;;  %v9801_v25 = vadd.f32 %v9800_v45, %v9799_v62 }
 0xa44   : > { %v9815_v49 = vadd.f32 %v9814_v55, %v9813_v27  ;;  %12741 = vpush %v9785_v18 }
 0xa45   : > { %12743 = vpush %v9801_v25 }
 0xa46   : > { %v9816_v6 = vrot.slane %v9815_v49, 1 }
 0xa48   : > { %v9817_v4 = vadd.f32 %v9816_v6, %v9815_v49 }
 0xa4a   : > { %12745 = vpush %v9817_v4 }
 0xa74   : > { %s12740_s14 = spop %12739 }
 0xa75   : > { %s9771_s15 = sadd.f32 %s12740_s14, %s9756_s0  ;;  %s12742_s16 = spop %12741 }
 0xa76   : > { %s9787_s18 = sadd.f32 %s12742_s16, %s10452_s28  ;;  %s12744_s27 = spop %12743 }
 0xa77   : > { %9773 = sst [smem:[#allocation4]] %s9771_s15  ;;  %s12869_s0 = scalar_lea.hbm %s15263_s11, 16 }
 0xa78   : > { %12748 = sst [smem:[#allocation9]] (%p266_p2), %s9771_s15  ;;  %p12870_p5 = scmp.ne.s32.totalorder %s15263_s11, %s12869_s0 }
 0xa79   : > { %9789 = sst [smem:[#allocation4 + $0x1]] %s9787_s18  ;;  %p12875_p8 = scmp.lt.u32.totalorder %s12869_s0, %s15263_s11 }
 0xa7a   : > { %12749 = sst [smem:[#allocation9 + $0x1]] (%p266_p2), %s9787_s18  ;;  %p12871_p4 = pnand %p12870_p5, %p266_p2 }
 0xa7b   : > { %s9803_s30 = sadd.f32 %s12744_s27, %s10453_s13  ;;  %s12746_s12 = spop %12745 }
 0xa7c   : > { %s9819_s26 = sadd.f32 %s12746_s12, %s10454_s25  ;;  %p12872_p7 = pneg %p12871_p4 }
 0xa7d   : > { %9805 = sst [smem:[#allocation4 + $0x2]] %s9803_s30 }
 0xa7e   : > { %12750 = sst [smem:[#allocation9 + $0x2]] (%p266_p2), %s9803_s30  ;;  %p12877_p9 = pnand %p12875_p8, %p12872_p7 }
 0xa7f   : > { %9821 = sst [smem:[#allocation4 + $0x3]] %s9819_s26 }
 0xa80   : > { %12751 = sst [smem:[#allocation9 + $0x3]] (%p266_p2), %s9819_s26 }
 0xa81   : > { %12880 = shalt.err (!%p12877_p9)
}
 0xa82   : > { %s12929_s25 = smov [#allocation9]  }
 0xa83   : > { %12754 = dma.smem_to_hbm (%p266_p2), %s12929_s25, 16, %s15263_s11, [#allocation8]  }
 0xa84   : > { %12898 = dma.done.wait (%p266_p2), [#allocation8], 16  }
 0xa85   : > { %12900 = vsyncadd (%p266_p2), [#allocation8], 4294967280 }
 0xa86   : > { %9870 = sfence }
 0xa87 PF: > { %p12765_p10 = scmp.ge.s32.totalorder %s12919_s22, 2  ;;  %s9879_s27 = sand.u32 1, %s12907_s19  }
 0xa88   : > { %s9880_s30 = scalar_lea.sflag [#allocation7], %s9879_s27 }
 0xa89   : > { %p12759_p11 = pnand %p12765_p10, %p13037_p6 }
 0xa8b   : > { %12902 = dma.done.wait (!%p12759_p11), %s9880_s30, 32  }
 0xa8c   : > { %12904 = vsyncadd (!%p12759_p11), %s9880_s30, 4294967264  ;;  %s15275_s12 = sld [smem:[#allocation12_spill]]  ;;  %p25_p12 = scmp.ge.s32.totalorder %s13018_s24, 4  }
 0xa8d   : > { %s15276_s19 = smov %s12911_s20  ;;  %s15277_s20 = smov %s12915_s21 }
 0xa8e   : > { %s15279_s22 = smov %s13018_s24  ;;  %27 = sbr.rel (!%p25_p12) target bundleno = 7 (0x7), region = 155 }
 0xa92   : > { %s15278_s21 = smov %s15275_s12 }
 0xa95   :  { %9885 = vsyncpa [#allocation7], 1 }
 0xa96   :  { %9887 = vsyncpa [#allocation7 + $0x1], 1 }
 0xa97   :  { %9888 = vsyncpa [#allocation8], 1 }
 0xa98   :  { %9890 = vsyncpa [#allocation8 + $0x1], 1 }

</bundles_post_ra>
